<compile_context>
chip_gen: v7x
topology: tpu7x:2x2x1
jax: 0.10.0
libtpu: 0.0.40
codegen_flags: <defaults>
</compile_context>

<pallas_src>
import functools
import numpy as np
import jax
import jax.numpy as jnp
from jax.experimental import pallas as pl
from jax.experimental.pallas import tpu as pltpu


def _spatial_attention_kernel(C, H, W, K,
                              w_ref, x_ref, o_ref,
                              sum_ref, max_ref, pad_ref):
    """Grid = (batch blocks, channel blocks); the channel axis is the reduction.

    w_ref  : (2*K*K,) f32 conv weights in SMEM, index = chan*K*K + ky*K + kx.
    x_ref  : (BT, CT, H, W) input block in VMEM.
    o_ref  : (BT, H*Wp) flat output block (pad columns stripped in the wrapper).
    sum_ref/max_ref : (BT, H, W) running channel sum / max (VMEM scratch).
    pad_ref: (2, BT, Hp*Wp + 2p) zero-padded *flat* [avg, max] planes (VMEM scratch).
    """
    p = K // 2
    Wp = W + 2 * p
    L = H * Wp                                  # flat length of one conv-tap window
    c = pl.program_id(1)
    nc = pl.num_programs(1)
    bt = o_ref.shape[0]

    # ---- channel reduction for this (BT, CT) block: plain elementwise vreg ops.
    xb = x_ref[...].astype(jnp.float32)         # (BT, CT, H, W)
    psum = jnp.sum(xb, axis=1)                  # (BT, H, W)
    pmax = jnp.max(xb, axis=1)                  # (BT, H, W)

    @pl.when(c == 0)
    def _init():
        sum_ref[...] = psum
        max_ref[...] = pmax

    @pl.when(c > 0)
    def _accumulate():
        sum_ref[...] = sum_ref[...] + psum
        max_ref[...] = jnp.maximum(max_ref[...], pmax)

    # ---- finalize: 7x7 "same" conv over the 2-channel [avg, max] map + sigmoid.
    @pl.when(c == nc - 1)
    def _finalize():
        avg = sum_ref[...] * (1.0 / C)          # channel mean, (BT, H, W)
        mx = max_ref[...]

        # Zero-padded planes stored flat (row stride = Wp) so that
        #   padded[y+ky, x+kx] lives at flat offset (y*Wp + x) + (ky*Wp + kx):
        # each tap is then one contiguous lane-dense slice of the scratch ref.
        pad_ref[...] = jnp.zeros_like(pad_ref)
        for y in range(H):
            row = (y + p) * Wp + p
            pad_ref[0, :, pl.ds(row, W)] = avg[:, y, :]
            pad_ref[1, :, pl.ds(row, W)] = mx[:, y, :]

        # 2*K*K taps with 4 independent partial accumulators (keeps VALU pipes
        # busy instead of one 98-deep dependent add chain). Flat columns x >= W
        # accumulate garbage that the wrapper strips.
        accs = [jnp.zeros((bt, L), jnp.float32) for _ in range(4)]
        t = 0
        for chan in range(2):
            for ky in range(K):
                for kx in range(K):
                    w = w_ref[chan * K * K + ky * K + kx]
                    tap = pad_ref[chan, :, pl.ds(ky * Wp + kx, L)]
                    accs[t & 3] = accs[t & 3] + w * tap
                    t += 1
        acc = (accs[0] + accs[1]) + (accs[2] + accs[3])

        # Numerically stable sigmoid (exp goes to the EUP; no overflow for acc << 0).
        z = jnp.exp(-jnp.abs(acc))
        o_ref[...] = jnp.where(acc >= 0.0, 1.0, z) / (1.0 + z)


def spatial_attention_pallas(x, conv_w, *, block_b=None, block_c=None):
    """x: (B, C, H, W), conv_w: (1, 2, K, K) (PyTorch OIHW, bias-free).
    Returns sigmoid(conv_kxk([mean_c(x), max_c(x)])) with shape (B, 1, H, W)."""
    B, C, H, W = x.shape
    K = conv_w.shape[-1]
    p = K // 2
    Hp, Wp = H + 2 * p, W + 2 * p
    flat = Hp * Wp + 2 * p      # extra 2p so the largest tap offset stays in bounds

    # Block sizes. The output block's second-to-last dim must be a multiple of 8
    # or the full batch, so keep the whole batch when it is small.
    if block_b is None:
        block_b = B if (B <= 8 or B % 8) else 8
    if block_c is None:
        block_c = min(C, 8)
        while C % block_c:
            block_c -= 1
    assert B % block_b == 0 and C % block_c == 0
    nb, nc = B // block_b, C // block_c

    w_flat = conv_w.astype(jnp.float32).reshape(-1)       # (2*K*K,)

    # Honest memory-bound cost estimate + explicit VMEM budget with headroom for
    # the double-buffered x stream (fits v5e's 16 MiB default and v7x's 64 MiB).
    x_blk = block_b * block_c * H * W * x.dtype.itemsize
    out_blk = block_b * H * Wp * 4
    scratch = (2 * block_b * H * W + 2 * block_b * flat) * 4
    vmem_limit = int(min(64 * 1024 * 1024,
                         max(8 * 1024 * 1024, 4 * (x_blk + out_blk) + 2 * scratch)))
    cost = pl.CostEstimate(
        flops=2 * B * C * H * W + 4 * K * K * B * H * Wp,
        transcendentals=B * H * Wp,
        bytes_accessed=x.size * x.dtype.itemsize + w_flat.size * 4 + B * H * Wp * 4)

    out_flat = pl.pallas_call(
        functools.partial(_spatial_attention_kernel, C, H, W, K),
        out_shape=jax.ShapeDtypeStruct((B, H * Wp), jnp.float32),
        grid=(nb, nc),
        in_specs=[
            # small weight table, kept whole in SMEM (read as scalars)
            pl.BlockSpec(memory_space=pltpu.MemorySpace.SMEM),
            # pipelined, double-buffered x tiles
            pl.BlockSpec((block_b, block_c, H, W), lambda b, c: (b, c, 0, 0)),
        ],
        # Output block constant along the channel (reduction) axis; written only
        # at the last channel step. Flat last dim H*Wp keeps the store lane-dense.
        out_specs=pl.BlockSpec((block_b, H * Wp), lambda b, c: (b, 0)),
        scratch_shapes=[
            pltpu.VMEM((block_b, H, W), jnp.float32),      # running channel sum
            pltpu.VMEM((block_b, H, W), jnp.float32),      # running channel max
            pltpu.VMEM((2, block_b, flat), jnp.float32),   # padded flat [avg, max]
        ],
        compiler_params=pltpu.CompilerParams(
            dimension_semantics=("parallel", "arbitrary"),
            vmem_limit_bytes=vmem_limit),
        cost_estimate=cost,
    )(w_flat, x)

    # Strip the flat-layout pad columns (free XLA slice) and restore NCHW.
    out = out_flat.reshape(B, H, Wp)[:, :, :W]
    return out[:, None, :, :]                              # (B, 1, H, W)


def spatial_attention_ref(x, conv_w):
    """Pure-JAX reference mirroring the PyTorch forward."""
    avg = jnp.mean(x, axis=1, keepdims=True)
    mx = jnp.max(x, axis=1, keepdims=True)
    xc = jnp.concatenate([avg, mx], axis=1)                # (B, 2, H, W)
    pad = conv_w.shape[-1] // 2
    y = jax.lax.conv_general_dilated(
        xc, conv_w, window_strides=(1, 1),
        padding=[(pad, pad), (pad, pad)],
        dimension_numbers=("NCHW", "OIHW", "NCHW"),
        precision=jax.lax.Precision.HIGHEST)
    return jax.nn.sigmoid(y)


if __name__ == "__main__":
    key = jax.random.PRNGKey(0)
    k_x, k_w = jax.random.split(key)
    B, C, H, W, K = 2, 4, 16, 16, 7

    x = jax.random.normal(k_x, (B, C, H, W), jnp.float32)
    conv_w = 0.2 * jax.random.normal(k_w, (1, 2, K, K), jnp.float32)   # OIHW, no bias

    # block_c=2 -> grid (1, 2): exercises the pipelined channel-reduction path.
    out = jax.block_until_ready(spatial_attention_pallas(x, conv_w, block_c=2))
    ref = spatial_attention_ref(x, conv_w)

    assert out.shape == (B, 1, H, W)
    np.testing.assert_allclose(np.asarray(out), np.asarray(ref), rtol=1e-5, atol=1e-5)
    print("KERNEL_OK")
</pallas_src>

<mosaic_0001>
module attributes {stable_mosaic.version = 11 : i64} {
  func.func @_spatial_attention_kernel(%arg0: i32, %arg1: i32, %arg2: memref<98xf32, #tpu.memory_space<smem>>, %arg3: memref<2x2x16x16xf32, #tpu.memory_space<vmem>>, %arg4: memref<2x352xf32, #tpu.memory_space<vmem>>, %arg5: memref<2x16x16xf32, #tpu.memory_space<vmem>>, %arg6: memref<2x16x16xf32, #tpu.memory_space<vmem>>, %arg7: memref<2x2x490xf32, #tpu.memory_space<vmem>>) attributes {dimension_semantics = [#tpu.dimension_semantics<parallel>, #tpu.dimension_semantics<arbitrary>], iteration_bounds = array<i64: 1, 2>, scalar_prefetch = 0 : i64, scratch_operands = 3 : i64, tpu.core_type = #tpu.core_type<tc>, window_params = [{transform_indices = @transform_0, window_bounds = array<i64: 98>}, {transform_indices = @transform_1, window_bounds = array<i64: 2, 2, 16, 16>}, {transform_indices = @transform_2, window_bounds = array<i64: 2, 352>}]} {
    %c0 = arith.constant 0 : index
    %c0_0 = arith.constant 0 : index
    %c0_1 = arith.constant 0 : index
    %c0_2 = arith.constant 0 : index
    %0 = vector.load %arg3[%c0, %c0_0, %c0_1, %c0_2] : memref<2x2x16x16xf32, #tpu.memory_space<vmem>>, vector<2x2x16x16xf32>
    %cst = arith.constant dense<0.000000e+00> : vector<2x16x16xf32>
    %1 = vector.multi_reduction <add>, %0, %cst [1] : vector<2x2x16x16xf32> to vector<2x16x16xf32>
    %cst_3 = arith.constant dense<0xFF800000> : vector<2x16x16xf32>
    %2 = vector.multi_reduction <maximumf>, %0, %cst_3 [1] : vector<2x2x16x16xf32> to vector<2x16x16xf32>
    %c0_i32 = arith.constant 0 : i32
    %3 = arith.cmpi eq, %arg1, %c0_i32 : i32
    %4 = arith.extui %3 : i1 to i32
    %c0_i32_4 = arith.constant 0 : i32
    %5 = arith.cmpi ne, %4, %c0_i32_4 : i32
    scf.if %5 {
      %c0_8 = arith.constant 0 : index
      %c0_9 = arith.constant 0 : index
      %c0_10 = arith.constant 0 : index
      %12 = vector.load %arg5[%c0_8, %c0_9, %c0_10] : memref<2x16x16xf32, #tpu.memory_space<vmem>>, vector<2x16x16xf32>
      tpu.vector_store %arg5[%c0_8, %c0_9, %c0_10], %1 {strides = array<i32>} : memref<2x16x16xf32, #tpu.memory_space<vmem>>, vector<2x16x16xf32>,
      %c0_11 = arith.constant 0 : index
      %c0_12 = arith.constant 0 : index
      %c0_13 = arith.constant 0 : index
      %13 = vector.load %arg6[%c0_11, %c0_12, %c0_13] : memref<2x16x16xf32, #tpu.memory_space<vmem>>, vector<2x16x16xf32>
      tpu.vector_store %arg6[%c0_11, %c0_12, %c0_13], %2 {strides = array<i32>} : memref<2x16x16xf32, #tpu.memory_space<vmem>>, vector<2x16x16xf32>,
    } else {
    }
    %c0_i32_5 = arith.constant 0 : i32
    %6 = arith.cmpi sgt, %arg1, %c0_i32_5 : i32
    %7 = arith.extui %6 : i1 to i32
    %c0_i32_6 = arith.constant 0 : i32
    %8 = arith.cmpi ne, %7, %c0_i32_6 : i32
    scf.if %8 {
      %c0_8 = arith.constant 0 : index
      %c0_9 = arith.constant 0 : index
      %c0_10 = arith.constant 0 : index
      %12 = vector.load %arg5[%c0_8, %c0_9, %c0_10] : memref<2x16x16xf32, #tpu.memory_space<vmem>>, vector<2x16x16xf32>
      %13 = arith.addf %12, %1 : vector<2x16x16xf32>
      %c0_11 = arith.constant 0 : index
      %c0_12 = arith.constant 0 : index
      %c0_13 = arith.constant 0 : index
      %14 = vector.load %arg5[%c0_11, %c0_12, %c0_13] : memref<2x16x16xf32, #tpu.memory_space<vmem>>, vector<2x16x16xf32>
      tpu.vector_store %arg5[%c0_11, %c0_12, %c0_13], %13 {strides = array<i32>} : memref<2x16x16xf32, #tpu.memory_space<vmem>>, vector<2x16x16xf32>,
      %c0_14 = arith.constant 0 : index
      %c0_15 = arith.constant 0 : index
      %c0_16 = arith.constant 0 : index
      %15 = vector.load %arg6[%c0_14, %c0_15, %c0_16] : memref<2x16x16xf32, #tpu.memory_space<vmem>>, vector<2x16x16xf32>
      %16 = arith.maximumf %15, %2 : vector<2x16x16xf32>
      %c0_17 = arith.constant 0 : index
      %c0_18 = arith.constant 0 : index
      %c0_19 = arith.constant 0 : index
      %17 = vector.load %arg6[%c0_17, %c0_18, %c0_19] : memref<2x16x16xf32, #tpu.memory_space<vmem>>, vector<2x16x16xf32>
      tpu.vector_store %arg6[%c0_17, %c0_18, %c0_19], %16 {strides = array<i32>} : memref<2x16x16xf32, #tpu.memory_space<vmem>>, vector<2x16x16xf32>,
    } else {
    }
    %c1_i32 = arith.constant 1 : i32
    %9 = arith.cmpi eq, %arg1, %c1_i32 : i32
    %10 = arith.extui %9 : i1 to i32
    %c0_i32_7 = arith.constant 0 : i32
    %11 = arith.cmpi ne, %10, %c0_i32_7 : i32
    scf.if %11 {
      %c0_8 = arith.constant 0 : index
      %c0_9 = arith.constant 0 : index
      %c0_10 = arith.constant 0 : index
      %12 = vector.load %arg5[%c0_8, %c0_9, %c0_10] : memref<2x16x16xf32, #tpu.memory_space<vmem>>, vector<2x16x16xf32>
      %cst_11 = arith.constant 2.500000e-01 : f32
      %13 = vector.broadcast %cst_11 : f32 to vector<2x16x16xf32>
      %14 = arith.mulf %12, %13 : vector<2x16x16xf32>
      %c0_12 = arith.constant 0 : index
      %c0_13 = arith.constant 0 : index
      %c0_14 = arith.constant 0 : index
      %15 = vector.load %arg6[%c0_12, %c0_13, %c0_14] : memref<2x16x16xf32, #tpu.memory_space<vmem>>, vector<2x16x16xf32>
      %cst_15 = arith.constant 0.000000e+00 : f32
      %16 = vector.broadcast %cst_15 : f32 to vector<2x2x490xf32>
      %c0_16 = arith.constant 0 : index
      %c0_17 = arith.constant 0 : index
      %c0_18 = arith.constant 0 : index
      %17 = vector.load %arg7[%c0_16, %c0_17, %c0_18] : memref<2x2x490xf32, #tpu.memory_space<vmem>>, vector<2x2x490xf32>
      tpu.vector_store %arg7[%c0_16, %c0_17, %c0_18], %16 {strides = array<i32>} : memref<2x2x490xf32, #tpu.memory_space<vmem>>, vector<2x2x490xf32>,
      %18 = vector.extract_strided_slice %14 {offsets = [0, 0, 0], sizes = [2, 1, 16], strides = [1, 1, 1]} : vector<2x16x16xf32> to vector<2x1x16xf32>
      %19 = vector.shape_cast %18 : vector<2x1x16xf32> to vector<2x16xf32>
      %c0_19 = arith.constant 0 : index
      %c0_20 = arith.constant 0 : index
      %c69 = arith.constant 69 : index
      %20 = vector.load %arg7[%c0_19, %c0_20, %c69] : memref<2x2x490xf32, #tpu.memory_space<vmem>>, vector<1x2x16xf32>
      %21 = vector.shape_cast %20 : vector<1x2x16xf32> to vector<2x16xf32>
      %22 = vector.shape_cast %19 : vector<2x16xf32> to vector<1x2x16xf32>
      tpu.vector_store %arg7[%c0_19, %c0_20, %c69], %22 {strides = array<i32>} : memref<2x2x490xf32, #tpu.memory_space<vmem>>, vector<1x2x16xf32>,
      %23 = vector.extract_strided_slice %15 {offsets = [0, 0, 0], sizes = [2, 1, 16], strides = [1, 1, 1]} : vector<2x16x16xf32> to vector<2x1x16xf32>
      %24 = vector.shape_cast %23 : vector<2x1x16xf32> to vector<2x16xf32>
      %c1 = arith.constant 1 : index
      %c0_21 = arith.constant 0 : index
      %c69_22 = arith.constant 69 : index
      %25 = vector.load %arg7[%c1, %c0_21, %c69_22] : memref<2x2x490xf32, #tpu.memory_space<vmem>>, vector<1x2x16xf32>
      %26 = vector.shape_cast %25 : vector<1x2x16xf32> to vector<2x16xf32>
      %27 = vector.shape_cast %24 : vector<2x16xf32> to vector<1x2x16xf32>
      tpu.vector_store %arg7[%c1, %c0_21, %c69_22], %27 {strides = array<i32>} : memref<2x2x490xf32, #tpu.memory_space<vmem>>, vector<1x2x16xf32>,
      %28 = vector.extract_strided_slice %14 {offsets = [0, 1, 0], sizes = [2, 1, 16], strides = [1, 1, 1]} : vector<2x16x16xf32> to vector<2x1x16xf32>
      %29 = vector.shape_cast %28 : vector<2x1x16xf32> to vector<2x16xf32>
      %c0_23 = arith.constant 0 : index
      %c0_24 = arith.constant 0 : index
      %c91 = arith.constant 91 : index
      %30 = vector.load %arg7[%c0_23, %c0_24, %c91] : memref<2x2x490xf32, #tpu.memory_space<vmem>>, vector<1x2x16xf32>
      %31 = vector.shape_cast %30 : vector<1x2x16xf32> to vector<2x16xf32>
      %32 = vector.shape_cast %29 : vector<2x16xf32> to vector<1x2x16xf32>
      tpu.vector_store %arg7[%c0_23, %c0_24, %c91], %32 {strides = array<i32>} : memref<2x2x490xf32, #tpu.memory_space<vmem>>, vector<1x2x16xf32>,
      %33 = vector.extract_strided_slice %15 {offsets = [0, 1, 0], sizes = [2, 1, 16], strides = [1, 1, 1]} : vector<2x16x16xf32> to vector<2x1x16xf32>
      %34 = vector.shape_cast %33 : vector<2x1x16xf32> to vector<2x16xf32>
      %c1_25 = arith.constant 1 : index
      %c0_26 = arith.constant 0 : index
      %c91_27 = arith.constant 91 : index
      %35 = vector.load %arg7[%c1_25, %c0_26, %c91_27] : memref<2x2x490xf32, #tpu.memory_space<vmem>>, vector<1x2x16xf32>
      %36 = vector.shape_cast %35 : vector<1x2x16xf32> to vector<2x16xf32>
      %37 = vector.shape_cast %34 : vector<2x16xf32> to vector<1x2x16xf32>
      tpu.vector_store %arg7[%c1_25, %c0_26, %c91_27], %37 {strides = array<i32>} : memref<2x2x490xf32, #tpu.memory_space<vmem>>, vector<1x2x16xf32>,
      %38 = vector.extract_strided_slice %14 {offsets = [0, 2, 0], sizes = [2, 1, 16], strides = [1, 1, 1]} : vector<2x16x16xf32> to vector<2x1x16xf32>
      %39 = vector.shape_cast %38 : vector<2x1x16xf32> to vector<2x16xf32>
      %c0_28 = arith.constant 0 : index
      %c0_29 = arith.constant 0 : index
      %c113 = arith.constant 113 : index
      %40 = vector.load %arg7[%c0_28, %c0_29, %c113] : memref<2x2x490xf32, #tpu.memory_space<vmem>>, vector<1x2x16xf32>
      %41 = vector.shape_cast %40 : vector<1x2x16xf32> to vector<2x16xf32>
      %42 = vector.shape_cast %39 : vector<2x16xf32> to vector<1x2x16xf32>
      tpu.vector_store %arg7[%c0_28, %c0_29, %c113], %42 {strides = array<i32>} : memref<2x2x490xf32, #tpu.memory_space<vmem>>, vector<1x2x16xf32>,
      %43 = vector.extract_strided_slice %15 {offsets = [0, 2, 0], sizes = [2, 1, 16], strides = [1, 1, 1]} : vector<2x16x16xf32> to vector<2x1x16xf32>
      %44 = vector.shape_cast %43 : vector<2x1x16xf32> to vector<2x16xf32>
      %c1_30 = arith.constant 1 : index
      %c0_31 = arith.constant 0 : index
      %c113_32 = arith.constant 113 : index
      %45 = vector.load %arg7[%c1_30, %c0_31, %c113_32] : memref<2x2x490xf32, #tpu.memory_space<vmem>>, vector<1x2x16xf32>
      %46 = vector.shape_cast %45 : vector<1x2x16xf32> to vector<2x16xf32>
      %47 = vector.shape_cast %44 : vector<2x16xf32> to vector<1x2x16xf32>
      tpu.vector_store %arg7[%c1_30, %c0_31, %c113_32], %47 {strides = array<i32>} : memref<2x2x490xf32, #tpu.memory_space<vmem>>, vector<1x2x16xf32>,
      %48 = vector.extract_strided_slice %14 {offsets = [0, 3, 0], sizes = [2, 1, 16], strides = [1, 1, 1]} : vector<2x16x16xf32> to vector<2x1x16xf32>
      %49 = vector.shape_cast %48 : vector<2x1x16xf32> to vector<2x16xf32>
      %c0_33 = arith.constant 0 : index
      %c0_34 = arith.constant 0 : index
      %c135 = arith.constant 135 : index
      %50 = vector.load %arg7[%c0_33, %c0_34, %c135] : memref<2x2x490xf32, #tpu.memory_space<vmem>>, vector<1x2x16xf32>
      %51 = vector.shape_cast %50 : vector<1x2x16xf32> to vector<2x16xf32>
      %52 = vector.shape_cast %49 : vector<2x16xf32> to vector<1x2x16xf32>
      tpu.vector_store %arg7[%c0_33, %c0_34, %c135], %52 {strides = array<i32>} : memref<2x2x490xf32, #tpu.memory_space<vmem>>, vector<1x2x16xf32>,
      %53 = vector.extract_strided_slice %15 {offsets = [0, 3, 0], sizes = [2, 1, 16], strides = [1, 1, 1]} : vector<2x16x16xf32> to vector<2x1x16xf32>
      %54 = vector.shape_cast %53 : vector<2x1x16xf32> to vector<2x16xf32>
      %c1_35 = arith.constant 1 : index
      %c0_36 = arith.constant 0 : index
      %c135_37 = arith.constant 135 : index
      %55 = vector.load %arg7[%c1_35, %c0_36, %c135_37] : memref<2x2x490xf32, #tpu.memory_space<vmem>>, vector<1x2x16xf32>
      %56 = vector.shape_cast %55 : vector<1x2x16xf32> to vector<2x16xf32>
      %57 = vector.shape_cast %54 : vector<2x16xf32> to vector<1x2x16xf32>
      tpu.vector_store %arg7[%c1_35, %c0_36, %c135_37], %57 {strides = array<i32>} : memref<2x2x490xf32, #tpu.memory_space<vmem>>, vector<1x2x16xf32>,
      %58 = vector.extract_strided_slice %14 {offsets = [0, 4, 0], sizes = [2, 1, 16], strides = [1, 1, 1]} : vector<2x16x16xf32> to vector<2x1x16xf32>
      %59 = vector.shape_cast %58 : vector<2x1x16xf32> to vector<2x16xf32>
      %c0_38 = arith.constant 0 : index
      %c0_39 = arith.constant 0 : index
      %c157 = arith.constant 157 : index
      %60 = vector.load %arg7[%c0_38, %c0_39, %c157] : memref<2x2x490xf32, #tpu.memory_space<vmem>>, vector<1x2x16xf32>
      %61 = vector.shape_cast %60 : vector<1x2x16xf32> to vector<2x16xf32>
      %62 = vector.shape_cast %59 : vector<2x16xf32> to vector<1x2x16xf32>
      tpu.vector_store %arg7[%c0_38, %c0_39, %c157], %62 {strides = array<i32>} : memref<2x2x490xf32, #tpu.memory_space<vmem>>, vector<1x2x16xf32>,
      %63 = vector.extract_strided_slice %15 {offsets = [0, 4, 0], sizes = [2, 1, 16], strides = [1, 1, 1]} : vector<2x16x16xf32> to vector<2x1x16xf32>
      %64 = vector.shape_cast %63 : vector<2x1x16xf32> to vector<2x16xf32>
      %c1_40 = arith.constant 1 : index
      %c0_41 = arith.constant 0 : index
      %c157_42 = arith.constant 157 : index
      %65 = vector.load %arg7[%c1_40, %c0_41, %c157_42] : memref<2x2x490xf32, #tpu.memory_space<vmem>>, vector<1x2x16xf32>
      %66 = vector.shape_cast %65 : vector<1x2x16xf32> to vector<2x16xf32>
      %67 = vector.shape_cast %64 : vector<2x16xf32> to vector<1x2x16xf32>
      tpu.vector_store %arg7[%c1_40, %c0_41, %c157_42], %67 {strides = array<i32>} : memref<2x2x490xf32, #tpu.memory_space<vmem>>, vector<1x2x16xf32>,
      %68 = vector.extract_strided_slice %14 {offsets = [0, 5, 0], sizes = [2, 1, 16], strides = [1, 1, 1]} : vector<2x16x16xf32> to vector<2x1x16xf32>
      %69 = vector.shape_cast %68 : vector<2x1x16xf32> to vector<2x16xf32>
      %c0_43 = arith.constant 0 : index
      %c0_44 = arith.constant 0 : index
      %c179 = arith.constant 179 : index
      %70 = vector.load %arg7[%c0_43, %c0_44, %c179] : memref<2x2x490xf32, #tpu.memory_space<vmem>>, vector<1x2x16xf32>
      %71 = vector.shape_cast %70 : vector<1x2x16xf32> to vector<2x16xf32>
      %72 = vector.shape_cast %69 : vector<2x16xf32> to vector<1x2x16xf32>
      tpu.vector_store %arg7[%c0_43, %c0_44, %c179], %72 {strides = array<i32>} : memref<2x2x490xf32, #tpu.memory_space<vmem>>, vector<1x2x16xf32>,
      %73 = vector.extract_strided_slice %15 {offsets = [0, 5, 0], sizes = [2, 1, 16], strides = [1, 1, 1]} : vector<2x16x16xf32> to vector<2x1x16xf32>
      %74 = vector.shape_cast %73 : vector<2x1x16xf32> to vector<2x16xf32>
      %c1_45 = arith.constant 1 : index
      %c0_46 = arith.constant 0 : index
      %c179_47 = arith.constant 179 : index
      %75 = vector.load %arg7[%c1_45, %c0_46, %c179_47] : memref<2x2x490xf32, #tpu.memory_space<vmem>>, vector<1x2x16xf32>
      %76 = vector.shape_cast %75 : vector<1x2x16xf32> to vector<2x16xf32>
      %77 = vector.shape_cast %74 : vector<2x16xf32> to vector<1x2x16xf32>
      tpu.vector_store %arg7[%c1_45, %c0_46, %c179_47], %77 {strides = array<i32>} : memref<2x2x490xf32, #tpu.memory_space<vmem>>, vector<1x2x16xf32>,
      %78 = vector.extract_strided_slice %14 {offsets = [0, 6, 0], sizes = [2, 1, 16], strides = [1, 1, 1]} : vector<2x16x16xf32> to vector<2x1x16xf32>
      %79 = vector.shape_cast %78 : vector<2x1x16xf32> to vector<2x16xf32>
      %c0_48 = arith.constant 0 : index
      %c0_49 = arith.constant 0 : index
      %c201 = arith.constant 201 : index
      %80 = vector.load %arg7[%c0_48, %c0_49, %c201] : memref<2x2x490xf32, #tpu.memory_space<vmem>>, vector<1x2x16xf32>
      %81 = vector.shape_cast %80 : vector<1x2x16xf32> to vector<2x16xf32>
      %82 = vector.shape_cast %79 : vector<2x16xf32> to vector<1x2x16xf32>
      tpu.vector_store %arg7[%c0_48, %c0_49, %c201], %82 {strides = array<i32>} : memref<2x2x490xf32, #tpu.memory_space<vmem>>, vector<1x2x16xf32>,
      %83 = vector.extract_strided_slice %15 {offsets = [0, 6, 0], sizes = [2, 1, 16], strides = [1, 1, 1]} : vector<2x16x16xf32> to vector<2x1x16xf32>
      %84 = vector.shape_cast %83 : vector<2x1x16xf32> to vector<2x16xf32>
      %c1_50 = arith.constant 1 : index
      %c0_51 = arith.constant 0 : index
      %c201_52 = arith.constant 201 : index
      %85 = vector.load %arg7[%c1_50, %c0_51, %c201_52] : memref<2x2x490xf32, #tpu.memory_space<vmem>>, vector<1x2x16xf32>
      %86 = vector.shape_cast %85 : vector<1x2x16xf32> to vector<2x16xf32>
      %87 = vector.shape_cast %84 : vector<2x16xf32> to vector<1x2x16xf32>
      tpu.vector_store %arg7[%c1_50, %c0_51, %c201_52], %87 {strides = array<i32>} : memref<2x2x490xf32, #tpu.memory_space<vmem>>, vector<1x2x16xf32>,
      %88 = vector.extract_strided_slice %14 {offsets = [0, 7, 0], sizes = [2, 1, 16], strides = [1, 1, 1]} : vector<2x16x16xf32> to vector<2x1x16xf32>
      %89 = vector.shape_cast %88 : vector<2x1x16xf32> to vector<2x16xf32>
      %c0_53 = arith.constant 0 : index
      %c0_54 = arith.constant 0 : index
      %c223 = arith.constant 223 : index
      %90 = vector.load %arg7[%c0_53, %c0_54, %c223] : memref<2x2x490xf32, #tpu.memory_space<vmem>>, vector<1x2x16xf32>
      %91 = vector.shape_cast %90 : vector<1x2x16xf32> to vector<2x16xf32>
      %92 = vector.shape_cast %89 : vector<2x16xf32> to vector<1x2x16xf32>
      tpu.vector_store %arg7[%c0_53, %c0_54, %c223], %92 {strides = array<i32>} : memref<2x2x490xf32, #tpu.memory_space<vmem>>, vector<1x2x16xf32>,
      %93 = vector.extract_strided_slice %15 {offsets = [0, 7, 0], sizes = [2, 1, 16], strides = [1, 1, 1]} : vector<2x16x16xf32> to vector<2x1x16xf32>
      %94 = vector.shape_cast %93 : vector<2x1x16xf32> to vector<2x16xf32>
      %c1_55 = arith.constant 1 : index
      %c0_56 = arith.constant 0 : index
      %c223_57 = arith.constant 223 : index
      %95 = vector.load %arg7[%c1_55, %c0_56, %c223_57] : memref<2x2x490xf32, #tpu.memory_space<vmem>>, vector<1x2x16xf32>
      %96 = vector.shape_cast %95 : vector<1x2x16xf32> to vector<2x16xf32>
      %97 = vector.shape_cast %94 : vector<2x16xf32> to vector<1x2x16xf32>
      tpu.vector_store %arg7[%c1_55, %c0_56, %c223_57], %97 {strides = array<i32>} : memref<2x2x490xf32, #tpu.memory_space<vmem>>, vector<1x2x16xf32>,
      %98 = vector.extract_strided_slice %14 {offsets = [0, 8, 0], sizes = [2, 1, 16], strides = [1, 1, 1]} : vector<2x16x16xf32> to vector<2x1x16xf32>
      %99 = vector.shape_cast %98 : vector<2x1x16xf32> to vector<2x16xf32>
      %c0_58 = arith.constant 0 : index
      %c0_59 = arith.constant 0 : index
      %c245 = arith.constant 245 : index
      %100 = vector.load %arg7[%c0_58, %c0_59, %c245] : memref<2x2x490xf32, #tpu.memory_space<vmem>>, vector<1x2x16xf32>
      %101 = vector.shape_cast %100 : vector<1x2x16xf32> to vector<2x16xf32>
      %102 = vector.shape_cast %99 : vector<2x16xf32> to vector<1x2x16xf32>
      tpu.vector_store %arg7[%c0_58, %c0_59, %c245], %102 {strides = array<i32>} : memref<2x2x490xf32, #tpu.memory_space<vmem>>, vector<1x2x16xf32>,
      %103 = vector.extract_strided_slice %15 {offsets = [0, 8, 0], sizes = [2, 1, 16], strides = [1, 1, 1]} : vector<2x16x16xf32> to vector<2x1x16xf32>
      %104 = vector.shape_cast %103 : vector<2x1x16xf32> to vector<2x16xf32>
      %c1_60 = arith.constant 1 : index
      %c0_61 = arith.constant 0 : index
      %c245_62 = arith.constant 245 : index
      %105 = vector.load %arg7[%c1_60, %c0_61, %c245_62] : memref<2x2x490xf32, #tpu.memory_space<vmem>>, vector<1x2x16xf32>
      %106 = vector.shape_cast %105 : vector<1x2x16xf32> to vector<2x16xf32>
      %107 = vector.shape_cast %104 : vector<2x16xf32> to vector<1x2x16xf32>
      tpu.vector_store %arg7[%c1_60, %c0_61, %c245_62], %107 {strides = array<i32>} : memref<2x2x490xf32, #tpu.memory_space<vmem>>, vector<1x2x16xf32>,
      %108 = vector.extract_strided_slice %14 {offsets = [0, 9, 0], sizes = [2, 1, 16], strides = [1, 1, 1]} : vector<2x16x16xf32> to vector<2x1x16xf32>
      %109 = vector.shape_cast %108 : vector<2x1x16xf32> to vector<2x16xf32>
      %c0_63 = arith.constant 0 : index
      %c0_64 = arith.constant 0 : index
      %c267 = arith.constant 267 : index
      %110 = vector.load %arg7[%c0_63, %c0_64, %c267] : memref<2x2x490xf32, #tpu.memory_space<vmem>>, vector<1x2x16xf32>
      %111 = vector.shape_cast %110 : vector<1x2x16xf32> to vector<2x16xf32>
      %112 = vector.shape_cast %109 : vector<2x16xf32> to vector<1x2x16xf32>
      tpu.vector_store %arg7[%c0_63, %c0_64, %c267], %112 {strides = array<i32>} : memref<2x2x490xf32, #tpu.memory_space<vmem>>, vector<1x2x16xf32>,
      %113 = vector.extract_strided_slice %15 {offsets = [0, 9, 0], sizes = [2, 1, 16], strides = [1, 1, 1]} : vector<2x16x16xf32> to vector<2x1x16xf32>
      %114 = vector.shape_cast %113 : vector<2x1x16xf32> to vector<2x16xf32>
      %c1_65 = arith.constant 1 : index
      %c0_66 = arith.constant 0 : index
      %c267_67 = arith.constant 267 : index
      %115 = vector.load %arg7[%c1_65, %c0_66, %c267_67] : memref<2x2x490xf32, #tpu.memory_space<vmem>>, vector<1x2x16xf32>
      %116 = vector.shape_cast %115 : vector<1x2x16xf32> to vector<2x16xf32>
      %117 = vector.shape_cast %114 : vector<2x16xf32> to vector<1x2x16xf32>
      tpu.vector_store %arg7[%c1_65, %c0_66, %c267_67], %117 {strides = array<i32>} : memref<2x2x490xf32, #tpu.memory_space<vmem>>, vector<1x2x16xf32>,
      %118 = vector.extract_strided_slice %14 {offsets = [0, 10, 0], sizes = [2, 1, 16], strides = [1, 1, 1]} : vector<2x16x16xf32> to vector<2x1x16xf32>
      %119 = vector.shape_cast %118 : vector<2x1x16xf32> to vector<2x16xf32>
      %c0_68 = arith.constant 0 : index
      %c0_69 = arith.constant 0 : index
      %c289 = arith.constant 289 : index
      %120 = vector.load %arg7[%c0_68, %c0_69, %c289] : memref<2x2x490xf32, #tpu.memory_space<vmem>>, vector<1x2x16xf32>
      %121 = vector.shape_cast %120 : vector<1x2x16xf32> to vector<2x16xf32>
      %122 = vector.shape_cast %119 : vector<2x16xf32> to vector<1x2x16xf32>
      tpu.vector_store %arg7[%c0_68, %c0_69, %c289], %122 {strides = array<i32>} : memref<2x2x490xf32, #tpu.memory_space<vmem>>, vector<1x2x16xf32>,
      %123 = vector.extract_strided_slice %15 {offsets = [0, 10, 0], sizes = [2, 1, 16], strides = [1, 1, 1]} : vector<2x16x16xf32> to vector<2x1x16xf32>
      %124 = vector.shape_cast %123 : vector<2x1x16xf32> to vector<2x16xf32>
      %c1_70 = arith.constant 1 : index
      %c0_71 = arith.constant 0 : index
      %c289_72 = arith.constant 289 : index
      %125 = vector.load %arg7[%c1_70, %c0_71, %c289_72] : memref<2x2x490xf32, #tpu.memory_space<vmem>>, vector<1x2x16xf32>
      %126 = vector.shape_cast %125 : vector<1x2x16xf32> to vector<2x16xf32>
      %127 = vector.shape_cast %124 : vector<2x16xf32> to vector<1x2x16xf32>
      tpu.vector_store %arg7[%c1_70, %c0_71, %c289_72], %127 {strides = array<i32>} : memref<2x2x490xf32, #tpu.memory_space<vmem>>, vector<1x2x16xf32>,
      %128 = vector.extract_strided_slice %14 {offsets = [0, 11, 0], sizes = [2, 1, 16], strides = [1, 1, 1]} : vector<2x16x16xf32> to vector<2x1x16xf32>
      %129 = vector.shape_cast %128 : vector<2x1x16xf32> to vector<2x16xf32>
      %c0_73 = arith.constant 0 : index
      %c0_74 = arith.constant 0 : index
      %c311 = arith.constant 311 : index
      %130 = vector.load %arg7[%c0_73, %c0_74, %c311] : memref<2x2x490xf32, #tpu.memory_space<vmem>>, vector<1x2x16xf32>
      %131 = vector.shape_cast %130 : vector<1x2x16xf32> to vector<2x16xf32>
      %132 = vector.shape_cast %129 : vector<2x16xf32> to vector<1x2x16xf32>
      tpu.vector_store %arg7[%c0_73, %c0_74, %c311], %132 {strides = array<i32>} : memref<2x2x490xf32, #tpu.memory_space<vmem>>, vector<1x2x16xf32>,
      %133 = vector.extract_strided_slice %15 {offsets = [0, 11, 0], sizes = [2, 1, 16], strides = [1, 1, 1]} : vector<2x16x16xf32> to vector<2x1x16xf32>
      %134 = vector.shape_cast %133 : vector<2x1x16xf32> to vector<2x16xf32>
      %c1_75 = arith.constant 1 : index
      %c0_76 = arith.constant 0 : index
      %c311_77 = arith.constant 311 : index
      %135 = vector.load %arg7[%c1_75, %c0_76, %c311_77] : memref<2x2x490xf32, #tpu.memory_space<vmem>>, vector<1x2x16xf32>
      %136 = vector.shape_cast %135 : vector<1x2x16xf32> to vector<2x16xf32>
      %137 = vector.shape_cast %134 : vector<2x16xf32> to vector<1x2x16xf32>
      tpu.vector_store %arg7[%c1_75, %c0_76, %c311_77], %137 {strides = array<i32>} : memref<2x2x490xf32, #tpu.memory_space<vmem>>, vector<1x2x16xf32>,
      %138 = vector.extract_strided_slice %14 {offsets = [0, 12, 0], sizes = [2, 1, 16], strides = [1, 1, 1]} : vector<2x16x16xf32> to vector<2x1x16xf32>
      %139 = vector.shape_cast %138 : vector<2x1x16xf32> to vector<2x16xf32>
      %c0_78 = arith.constant 0 : index
      %c0_79 = arith.constant 0 : index
      %c333 = arith.constant 333 : index
      %140 = vector.load %arg7[%c0_78, %c0_79, %c333] : memref<2x2x490xf32, #tpu.memory_space<vmem>>, vector<1x2x16xf32>
      %141 = vector.shape_cast %140 : vector<1x2x16xf32> to vector<2x16xf32>
      %142 = vector.shape_cast %139 : vector<2x16xf32> to vector<1x2x16xf32>
      tpu.vector_store %arg7[%c0_78, %c0_79, %c333], %142 {strides = array<i32>} : memref<2x2x490xf32, #tpu.memory_space<vmem>>, vector<1x2x16xf32>,
      %143 = vector.extract_strided_slice %15 {offsets = [0, 12, 0], sizes = [2, 1, 16], strides = [1, 1, 1]} : vector<2x16x16xf32> to vector<2x1x16xf32>
      %144 = vector.shape_cast %143 : vector<2x1x16xf32> to vector<2x16xf32>
      %c1_80 = arith.constant 1 : index
      %c0_81 = arith.constant 0 : index
      %c333_82 = arith.constant 333 : index
      %145 = vector.load %arg7[%c1_80, %c0_81, %c333_82] : memref<2x2x490xf32, #tpu.memory_space<vmem>>, vector<1x2x16xf32>
      %146 = vector.shape_cast %145 : vector<1x2x16xf32> to vector<2x16xf32>
      %147 = vector.shape_cast %144 : vector<2x16xf32> to vector<1x2x16xf32>
      tpu.vector_store %arg7[%c1_80, %c0_81, %c333_82], %147 {strides = array<i32>} : memref<2x2x490xf32, #tpu.memory_space<vmem>>, vector<1x2x16xf32>,
      %148 = vector.extract_strided_slice %14 {offsets = [0, 13, 0], sizes = [2, 1, 16], strides = [1, 1, 1]} : vector<2x16x16xf32> to vector<2x1x16xf32>
      %149 = vector.shape_cast %148 : vector<2x1x16xf32> to vector<2x16xf32>
      %c0_83 = arith.constant 0 : index
      %c0_84 = arith.constant 0 : index
      %c355 = arith.constant 355 : index
      %150 = vector.load %arg7[%c0_83, %c0_84, %c355] : memref<2x2x490xf32, #tpu.memory_space<vmem>>, vector<1x2x16xf32>
      %151 = vector.shape_cast %150 : vector<1x2x16xf32> to vector<2x16xf32>
      %152 = vector.shape_cast %149 : vector<2x16xf32> to vector<1x2x16xf32>
      tpu.vector_store %arg7[%c0_83, %c0_84, %c355], %152 {strides = array<i32>} : memref<2x2x490xf32, #tpu.memory_space<vmem>>, vector<1x2x16xf32>,
      %153 = vector.extract_strided_slice %15 {offsets = [0, 13, 0], sizes = [2, 1, 16], strides = [1, 1, 1]} : vector<2x16x16xf32> to vector<2x1x16xf32>
      %154 = vector.shape_cast %153 : vector<2x1x16xf32> to vector<2x16xf32>
      %c1_85 = arith.constant 1 : index
      %c0_86 = arith.constant 0 : index
      %c355_87 = arith.constant 355 : index
      %155 = vector.load %arg7[%c1_85, %c0_86, %c355_87] : memref<2x2x490xf32, #tpu.memory_space<vmem>>, vector<1x2x16xf32>
      %156 = vector.shape_cast %155 : vector<1x2x16xf32> to vector<2x16xf32>
      %157 = vector.shape_cast %154 : vector<2x16xf32> to vector<1x2x16xf32>
      tpu.vector_store %arg7[%c1_85, %c0_86, %c355_87], %157 {strides = array<i32>} : memref<2x2x490xf32, #tpu.memory_space<vmem>>, vector<1x2x16xf32>,
      %158 = vector.extract_strided_slice %14 {offsets = [0, 14, 0], sizes = [2, 1, 16], strides = [1, 1, 1]} : vector<2x16x16xf32> to vector<2x1x16xf32>
      %159 = vector.shape_cast %158 : vector<2x1x16xf32> to vector<2x16xf32>
      %c0_88 = arith.constant 0 : index
      %c0_89 = arith.constant 0 : index
      %c377 = arith.constant 377 : index
      %160 = vector.load %arg7[%c0_88, %c0_89, %c377] : memref<2x2x490xf32, #tpu.memory_space<vmem>>, vector<1x2x16xf32>
      %161 = vector.shape_cast %160 : vector<1x2x16xf32> to vector<2x16xf32>
      %162 = vector.shape_cast %159 : vector<2x16xf32> to vector<1x2x16xf32>
      tpu.vector_store %arg7[%c0_88, %c0_89, %c377], %162 {strides = array<i32>} : memref<2x2x490xf32, #tpu.memory_space<vmem>>, vector<1x2x16xf32>,
      %163 = vector.extract_strided_slice %15 {offsets = [0, 14, 0], sizes = [2, 1, 16], strides = [1, 1, 1]} : vector<2x16x16xf32> to vector<2x1x16xf32>
      %164 = vector.shape_cast %163 : vector<2x1x16xf32> to vector<2x16xf32>
      %c1_90 = arith.constant 1 : index
      %c0_91 = arith.constant 0 : index
      %c377_92 = arith.constant 377 : index
      %165 = vector.load %arg7[%c1_90, %c0_91, %c377_92] : memref<2x2x490xf32, #tpu.memory_space<vmem>>, vector<1x2x16xf32>
      %166 = vector.shape_cast %165 : vector<1x2x16xf32> to vector<2x16xf32>
      %167 = vector.shape_cast %164 : vector<2x16xf32> to vector<1x2x16xf32>
      tpu.vector_store %arg7[%c1_90, %c0_91, %c377_92], %167 {strides = array<i32>} : memref<2x2x490xf32, #tpu.memory_space<vmem>>, vector<1x2x16xf32>,
      %168 = vector.extract_strided_slice %14 {offsets = [0, 15, 0], sizes = [2, 1, 16], strides = [1, 1, 1]} : vector<2x16x16xf32> to vector<2x1x16xf32>
      %169 = vector.shape_cast %168 : vector<2x1x16xf32> to vector<2x16xf32>
      %c0_93 = arith.constant 0 : index
      %c0_94 = arith.constant 0 : index
      %c399 = arith.constant 399 : index
      %170 = vector.load %arg7[%c0_93, %c0_94, %c399] : memref<2x2x490xf32, #tpu.memory_space<vmem>>, vector<1x2x16xf32>
      %171 = vector.shape_cast %170 : vector<1x2x16xf32> to vector<2x16xf32>
      %172 = vector.shape_cast %169 : vector<2x16xf32> to vector<1x2x16xf32>
      tpu.vector_store %arg7[%c0_93, %c0_94, %c399], %172 {strides = array<i32>} : memref<2x2x490xf32, #tpu.memory_space<vmem>>, vector<1x2x16xf32>,
      %173 = vector.extract_strided_slice %15 {offsets = [0, 15, 0], sizes = [2, 1, 16], strides = [1, 1, 1]} : vector<2x16x16xf32> to vector<2x1x16xf32>
      %174 = vector.shape_cast %173 : vector<2x1x16xf32> to vector<2x16xf32>
      %c1_95 = arith.constant 1 : index
      %c0_96 = arith.constant 0 : index
      %c399_97 = arith.constant 399 : index
      %175 = vector.load %arg7[%c1_95, %c0_96, %c399_97] : memref<2x2x490xf32, #tpu.memory_space<vmem>>, vector<1x2x16xf32>
      %176 = vector.shape_cast %175 : vector<1x2x16xf32> to vector<2x16xf32>
      %177 = vector.shape_cast %174 : vector<2x16xf32> to vector<1x2x16xf32>
      tpu.vector_store %arg7[%c1_95, %c0_96, %c399_97], %177 {strides = array<i32>} : memref<2x2x490xf32, #tpu.memory_space<vmem>>, vector<1x2x16xf32>,
      %cst_98 = arith.constant 0.000000e+00 : f32
      %178 = vector.broadcast %cst_98 : f32 to vector<2x352xf32>
      %cst_99 = arith.constant 0.000000e+00 : f32
      %179 = vector.broadcast %cst_99 : f32 to vector<2x352xf32>
      %cst_100 = arith.constant 0.000000e+00 : f32
      %180 = vector.broadcast %cst_100 : f32 to vector<2x352xf32>
      %cst_101 = arith.constant 0.000000e+00 : f32
      %181 = vector.broadcast %cst_101 : f32 to vector<2x352xf32>
      %c0_102 = arith.constant 0 : index
      %182 = memref.load %arg2[%c0_102] : memref<98xf32, #tpu.memory_space<smem>>
      %c0_103 = arith.constant 0 : index
      %c0_104 = arith.constant 0 : index
      %c0_105 = arith.constant 0 : index
      %183 = vector.load %arg7[%c0_103, %c0_104, %c0_105] : memref<2x2x490xf32, #tpu.memory_space<vmem>>, vector<1x2x352xf32>
      %184 = vector.shape_cast %183 : vector<1x2x352xf32> to vector<2x352xf32>
      %185 = vector.broadcast %182 : f32 to vector<2x352xf32>
      %186 = arith.mulf %185, %184 : vector<2x352xf32>
      %187 = arith.addf %178, %186 : vector<2x352xf32>
      %c1_106 = arith.constant 1 : index
      %188 = memref.load %arg2[%c1_106] : memref<98xf32, #tpu.memory_space<smem>>
      %c0_107 = arith.constant 0 : index
      %c0_108 = arith.constant 0 : index
      %c1_109 = arith.constant 1 : index
      %189 = vector.load %arg7[%c0_107, %c0_108, %c1_109] : memref<2x2x490xf32, #tpu.memory_space<vmem>>, vector<1x2x352xf32>
      %190 = vector.shape_cast %189 : vector<1x2x352xf32> to vector<2x352xf32>
      %191 = vector.broadcast %188 : f32 to vector<2x352xf32>
      %192 = arith.mulf %191, %190 : vector<2x352xf32>
      %193 = arith.addf %179, %192 : vector<2x352xf32>
      %c2 = arith.constant 2 : index
      %194 = memref.load %arg2[%c2] : memref<98xf32, #tpu.memory_space<smem>>
      %c0_110 = arith.constant 0 : index
      %c0_111 = arith.constant 0 : index
      %c2_112 = arith.constant 2 : index
      %195 = vector.load %arg7[%c0_110, %c0_111, %c2_112] : memref<2x2x490xf32, #tpu.memory_space<vmem>>, vector<1x2x352xf32>
      %196 = vector.shape_cast %195 : vector<1x2x352xf32> to vector<2x352xf32>
      %197 = vector.broadcast %194 : f32 to vector<2x352xf32>
      %198 = arith.mulf %197, %196 : vector<2x352xf32>
      %199 = arith.addf %180, %198 : vector<2x352xf32>
      %c3 = arith.constant 3 : index
      %200 = memref.load %arg2[%c3] : memref<98xf32, #tpu.memory_space<smem>>
      %c0_113 = arith.constant 0 : index
      %c0_114 = arith.constant 0 : index
      %c3_115 = arith.constant 3 : index
      %201 = vector.load %arg7[%c0_113, %c0_114, %c3_115] : memref<2x2x490xf32, #tpu.memory_space<vmem>>, vector<1x2x352xf32>
      %202 = vector.shape_cast %201 : vector<1x2x352xf32> to vector<2x352xf32>
      %203 = vector.broadcast %200 : f32 to vector<2x352xf32>
      %204 = arith.mulf %203, %202 : vector<2x352xf32>
      %205 = arith.addf %181, %204 : vector<2x352xf32>
      %c4 = arith.constant 4 : index
      %206 = memref.load %arg2[%c4] : memref<98xf32, #tpu.memory_space<smem>>
      %c0_116 = arith.constant 0 : index
      %c0_117 = arith.constant 0 : index
      %c4_118 = arith.constant 4 : index
      %207 = vector.load %arg7[%c0_116, %c0_117, %c4_118] : memref<2x2x490xf32, #tpu.memory_space<vmem>>, vector<1x2x352xf32>
      %208 = vector.shape_cast %207 : vector<1x2x352xf32> to vector<2x352xf32>
      %209 = vector.broadcast %206 : f32 to vector<2x352xf32>
      %210 = arith.mulf %209, %208 : vector<2x352xf32>
      %211 = arith.addf %187, %210 : vector<2x352xf32>
      %c5 = arith.constant 5 : index
      %212 = memref.load %arg2[%c5] : memref<98xf32, #tpu.memory_space<smem>>
      %c0_119 = arith.constant 0 : index
      %c0_120 = arith.constant 0 : index
      %c5_121 = arith.constant 5 : index
      %213 = vector.load %arg7[%c0_119, %c0_120, %c5_121] : memref<2x2x490xf32, #tpu.memory_space<vmem>>, vector<1x2x352xf32>
      %214 = vector.shape_cast %213 : vector<1x2x352xf32> to vector<2x352xf32>
      %215 = vector.broadcast %212 : f32 to vector<2x352xf32>
      %216 = arith.mulf %215, %214 : vector<2x352xf32>
      %217 = arith.addf %193, %216 : vector<2x352xf32>
      %c6 = arith.constant 6 : index
      %218 = memref.load %arg2[%c6] : memref<98xf32, #tpu.memory_space<smem>>
      %c0_122 = arith.constant 0 : index
      %c0_123 = arith.constant 0 : index
      %c6_124 = arith.constant 6 : index
      %219 = vector.load %arg7[%c0_122, %c0_123, %c6_124] : memref<2x2x490xf32, #tpu.memory_space<vmem>>, vector<1x2x352xf32>
      %220 = vector.shape_cast %219 : vector<1x2x352xf32> to vector<2x352xf32>
      %221 = vector.broadcast %218 : f32 to vector<2x352xf32>
      %222 = arith.mulf %221, %220 : vector<2x352xf32>
      %223 = arith.addf %199, %222 : vector<2x352xf32>
      %c7 = arith.constant 7 : index
      %224 = memref.load %arg2[%c7] : memref<98xf32, #tpu.memory_space<smem>>
      %c0_125 = arith.constant 0 : index
      %c0_126 = arith.constant 0 : index
      %c22 = arith.constant 22 : index
      %225 = vector.load %arg7[%c0_125, %c0_126, %c22] : memref<2x2x490xf32, #tpu.memory_space<vmem>>, vector<1x2x352xf32>
      %226 = vector.shape_cast %225 : vector<1x2x352xf32> to vector<2x352xf32>
      %227 = vector.broadcast %224 : f32 to vector<2x352xf32>
      %228 = arith.mulf %227, %226 : vector<2x352xf32>
      %229 = arith.addf %205, %228 : vector<2x352xf32>
      %c8 = arith.constant 8 : index
      %230 = memref.load %arg2[%c8] : memref<98xf32, #tpu.memory_space<smem>>
      %c0_127 = arith.constant 0 : index
      %c0_128 = arith.constant 0 : index
      %c23 = arith.constant 23 : index
      %231 = vector.load %arg7[%c0_127, %c0_128, %c23] : memref<2x2x490xf32, #tpu.memory_space<vmem>>, vector<1x2x352xf32>
      %232 = vector.shape_cast %231 : vector<1x2x352xf32> to vector<2x352xf32>
      %233 = vector.broadcast %230 : f32 to vector<2x352xf32>
      %234 = arith.mulf %233, %232 : vector<2x352xf32>
      %235 = arith.addf %211, %234 : vector<2x352xf32>
      %c9 = arith.constant 9 : index
      %236 = memref.load %arg2[%c9] : memref<98xf32, #tpu.memory_space<smem>>
      %c0_129 = arith.constant 0 : index
      %c0_130 = arith.constant 0 : index
      %c24 = arith.constant 24 : index
      %237 = vector.load %arg7[%c0_129, %c0_130, %c24] : memref<2x2x490xf32, #tpu.memory_space<vmem>>, vector<1x2x352xf32>
      %238 = vector.shape_cast %237 : vector<1x2x352xf32> to vector<2x352xf32>
      %239 = vector.broadcast %236 : f32 to vector<2x352xf32>
      %240 = arith.mulf %239, %238 : vector<2x352xf32>
      %241 = arith.addf %217, %240 : vector<2x352xf32>
      %c10 = arith.constant 10 : index
      %242 = memref.load %arg2[%c10] : memref<98xf32, #tpu.memory_space<smem>>
      %c0_131 = arith.constant 0 : index
      %c0_132 = arith.constant 0 : index
      %c25 = arith.constant 25 : index
      %243 = vector.load %arg7[%c0_131, %c0_132, %c25] : memref<2x2x490xf32, #tpu.memory_space<vmem>>, vector<1x2x352xf32>
      %244 = vector.shape_cast %243 : vector<1x2x352xf32> to vector<2x352xf32>
      %245 = vector.broadcast %242 : f32 to vector<2x352xf32>
      %246 = arith.mulf %245, %244 : vector<2x352xf32>
      %247 = arith.addf %223, %246 : vector<2x352xf32>
      %c11 = arith.constant 11 : index
      %248 = memref.load %arg2[%c11] : memref<98xf32, #tpu.memory_space<smem>>
      %c0_133 = arith.constant 0 : index
      %c0_134 = arith.constant 0 : index
      %c26 = arith.constant 26 : index
      %249 = vector.load %arg7[%c0_133, %c0_134, %c26] : memref<2x2x490xf32, #tpu.memory_space<vmem>>, vector<1x2x352xf32>
      %250 = vector.shape_cast %249 : vector<1x2x352xf32> to vector<2x352xf32>
      %251 = vector.broadcast %248 : f32 to vector<2x352xf32>
      %252 = arith.mulf %251, %250 : vector<2x352xf32>
      %253 = arith.addf %229, %252 : vector<2x352xf32>
      %c12 = arith.constant 12 : index
      %254 = memref.load %arg2[%c12] : memref<98xf32, #tpu.memory_space<smem>>
      %c0_135 = arith.constant 0 : index
      %c0_136 = arith.constant 0 : index
      %c27 = arith.constant 27 : index
      %255 = vector.load %arg7[%c0_135, %c0_136, %c27] : memref<2x2x490xf32, #tpu.memory_space<vmem>>, vector<1x2x352xf32>
      %256 = vector.shape_cast %255 : vector<1x2x352xf32> to vector<2x352xf32>
      %257 = vector.broadcast %254 : f32 to vector<2x352xf32>
      %258 = arith.mulf %257, %256 : vector<2x352xf32>
      %259 = arith.addf %235, %258 : vector<2x352xf32>
      %c13 = arith.constant 13 : index
      %260 = memref.load %arg2[%c13] : memref<98xf32, #tpu.memory_space<smem>>
      %c0_137 = arith.constant 0 : index
      %c0_138 = arith.constant 0 : index
      %c28 = arith.constant 28 : index
      %261 = vector.load %arg7[%c0_137, %c0_138, %c28] : memref<2x2x490xf32, #tpu.memory_space<vmem>>, vector<1x2x352xf32>
      %262 = vector.shape_cast %261 : vector<1x2x352xf32> to vector<2x352xf32>
      %263 = vector.broadcast %260 : f32 to vector<2x352xf32>
      %264 = arith.mulf %263, %262 : vector<2x352xf32>
      %265 = arith.addf %241, %264 : vector<2x352xf32>
      %c14 = arith.constant 14 : index
      %266 = memref.load %arg2[%c14] : memref<98xf32, #tpu.memory_space<smem>>
      %c0_139 = arith.constant 0 : index
      %c0_140 = arith.constant 0 : index
      %c44 = arith.constant 44 : index
      %267 = vector.load %arg7[%c0_139, %c0_140, %c44] : memref<2x2x490xf32, #tpu.memory_space<vmem>>, vector<1x2x352xf32>
      %268 = vector.shape_cast %267 : vector<1x2x352xf32> to vector<2x352xf32>
      %269 = vector.broadcast %266 : f32 to vector<2x352xf32>
      %270 = arith.mulf %269, %268 : vector<2x352xf32>
      %271 = arith.addf %247, %270 : vector<2x352xf32>
      %c15 = arith.constant 15 : index
      %272 = memref.load %arg2[%c15] : memref<98xf32, #tpu.memory_space<smem>>
      %c0_141 = arith.constant 0 : index
      %c0_142 = arith.constant 0 : index
      %c45 = arith.constant 45 : index
      %273 = vector.load %arg7[%c0_141, %c0_142, %c45] : memref<2x2x490xf32, #tpu.memory_space<vmem>>, vector<1x2x352xf32>
      %274 = vector.shape_cast %273 : vector<1x2x352xf32> to vector<2x352xf32>
      %275 = vector.broadcast %272 : f32 to vector<2x352xf32>
      %276 = arith.mulf %275, %274 : vector<2x352xf32>
      %277 = arith.addf %253, %276 : vector<2x352xf32>
      %c16 = arith.constant 16 : index
      %278 = memref.load %arg2[%c16] : memref<98xf32, #tpu.memory_space<smem>>
      %c0_143 = arith.constant 0 : index
      %c0_144 = arith.constant 0 : index
      %c46 = arith.constant 46 : index
      %279 = vector.load %arg7[%c0_143, %c0_144, %c46] : memref<2x2x490xf32, #tpu.memory_space<vmem>>, vector<1x2x352xf32>
      %280 = vector.shape_cast %279 : vector<1x2x352xf32> to vector<2x352xf32>
      %281 = vector.broadcast %278 : f32 to vector<2x352xf32>
      %282 = arith.mulf %281, %280 : vector<2x352xf32>
      %283 = arith.addf %259, %282 : vector<2x352xf32>
      %c17 = arith.constant 17 : index
      %284 = memref.load %arg2[%c17] : memref<98xf32, #tpu.memory_space<smem>>
      %c0_145 = arith.constant 0 : index
      %c0_146 = arith.constant 0 : index
      %c47 = arith.constant 47 : index
      %285 = vector.load %arg7[%c0_145, %c0_146, %c47] : memref<2x2x490xf32, #tpu.memory_space<vmem>>, vector<1x2x352xf32>
      %286 = vector.shape_cast %285 : vector<1x2x352xf32> to vector<2x352xf32>
      %287 = vector.broadcast %284 : f32 to vector<2x352xf32>
      %288 = arith.mulf %287, %286 : vector<2x352xf32>
      %289 = arith.addf %265, %288 : vector<2x352xf32>
      %c18 = arith.constant 18 : index
      %290 = memref.load %arg2[%c18] : memref<98xf32, #tpu.memory_space<smem>>
      %c0_147 = arith.constant 0 : index
      %c0_148 = arith.constant 0 : index
      %c48 = arith.constant 48 : index
      %291 = vector.load %arg7[%c0_147, %c0_148, %c48] : memref<2x2x490xf32, #tpu.memory_space<vmem>>, vector<1x2x352xf32>
      %292 = vector.shape_cast %291 : vector<1x2x352xf32> to vector<2x352xf32>
      %293 = vector.broadcast %290 : f32 to vector<2x352xf32>
      %294 = arith.mulf %293, %292 : vector<2x352xf32>
      %295 = arith.addf %271, %294 : vector<2x352xf32>
      %c19 = arith.constant 19 : index
      %296 = memref.load %arg2[%c19] : memref<98xf32, #tpu.memory_space<smem>>
      %c0_149 = arith.constant 0 : index
      %c0_150 = arith.constant 0 : index
      %c49 = arith.constant 49 : index
      %297 = vector.load %arg7[%c0_149, %c0_150, %c49] : memref<2x2x490xf32, #tpu.memory_space<vmem>>, vector<1x2x352xf32>
      %298 = vector.shape_cast %297 : vector<1x2x352xf32> to vector<2x352xf32>
      %299 = vector.broadcast %296 : f32 to vector<2x352xf32>
      %300 = arith.mulf %299, %298 : vector<2x352xf32>
      %301 = arith.addf %277, %300 : vector<2x352xf32>
      %c20 = arith.constant 20 : index
      %302 = memref.load %arg2[%c20] : memref<98xf32, #tpu.memory_space<smem>>
      %c0_151 = arith.constant 0 : index
      %c0_152 = arith.constant 0 : index
      %c50 = arith.constant 50 : index
      %303 = vector.load %arg7[%c0_151, %c0_152, %c50] : memref<2x2x490xf32, #tpu.memory_space<vmem>>, vector<1x2x352xf32>
      %304 = vector.shape_cast %303 : vector<1x2x352xf32> to vector<2x352xf32>
      %305 = vector.broadcast %302 : f32 to vector<2x352xf32>
      %306 = arith.mulf %305, %304 : vector<2x352xf32>
      %307 = arith.addf %283, %306 : vector<2x352xf32>
      %c21 = arith.constant 21 : index
      %308 = memref.load %arg2[%c21] : memref<98xf32, #tpu.memory_space<smem>>
      %c0_153 = arith.constant 0 : index
      %c0_154 = arith.constant 0 : index
      %c66 = arith.constant 66 : index
      %309 = vector.load %arg7[%c0_153, %c0_154, %c66] : memref<2x2x490xf32, #tpu.memory_space<vmem>>, vector<1x2x352xf32>
      %310 = vector.shape_cast %309 : vector<1x2x352xf32> to vector<2x352xf32>
      %311 = vector.broadcast %308 : f32 to vector<2x352xf32>
      %312 = arith.mulf %311, %310 : vector<2x352xf32>
      %313 = arith.addf %289, %312 : vector<2x352xf32>
      %c22_155 = arith.constant 22 : index
      %314 = memref.load %arg2[%c22_155] : memref<98xf32, #tpu.memory_space<smem>>
      %c0_156 = arith.constant 0 : index
      %c0_157 = arith.constant 0 : index
      %c67 = arith.constant 67 : index
      %315 = vector.load %arg7[%c0_156, %c0_157, %c67] : memref<2x2x490xf32, #tpu.memory_space<vmem>>, vector<1x2x352xf32>
      %316 = vector.shape_cast %315 : vector<1x2x352xf32> to vector<2x352xf32>
      %317 = vector.broadcast %314 : f32 to vector<2x352xf32>
      %318 = arith.mulf %317, %316 : vector<2x352xf32>
      %319 = arith.addf %295, %318 : vector<2x352xf32>
      %c23_158 = arith.constant 23 : index
      %320 = memref.load %arg2[%c23_158] : memref<98xf32, #tpu.memory_space<smem>>
      %c0_159 = arith.constant 0 : index
      %c0_160 = arith.constant 0 : index
      %c68 = arith.constant 68 : index
      %321 = vector.load %arg7[%c0_159, %c0_160, %c68] : memref<2x2x490xf32, #tpu.memory_space<vmem>>, vector<1x2x352xf32>
      %322 = vector.shape_cast %321 : vector<1x2x352xf32> to vector<2x352xf32>
      %323 = vector.broadcast %320 : f32 to vector<2x352xf32>
      %324 = arith.mulf %323, %322 : vector<2x352xf32>
      %325 = arith.addf %301, %324 : vector<2x352xf32>
      %c24_161 = arith.constant 24 : index
      %326 = memref.load %arg2[%c24_161] : memref<98xf32, #tpu.memory_space<smem>>
      %c0_162 = arith.constant 0 : index
      %c0_163 = arith.constant 0 : index
      %c69_164 = arith.constant 69 : index
      %327 = vector.load %arg7[%c0_162, %c0_163, %c69_164] : memref<2x2x490xf32, #tpu.memory_space<vmem>>, vector<1x2x352xf32>
      %328 = vector.shape_cast %327 : vector<1x2x352xf32> to vector<2x352xf32>
      %329 = vector.broadcast %326 : f32 to vector<2x352xf32>
      %330 = arith.mulf %329, %328 : vector<2x352xf32>
      %331 = arith.addf %307, %330 : vector<2x352xf32>
      %c25_165 = arith.constant 25 : index
      %332 = memref.load %arg2[%c25_165] : memref<98xf32, #tpu.memory_space<smem>>
      %c0_166 = arith.constant 0 : index
      %c0_167 = arith.constant 0 : index
      %c70 = arith.constant 70 : index
      %333 = vector.load %arg7[%c0_166, %c0_167, %c70] : memref<2x2x490xf32, #tpu.memory_space<vmem>>, vector<1x2x352xf32>
      %334 = vector.shape_cast %333 : vector<1x2x352xf32> to vector<2x352xf32>
      %335 = vector.broadcast %332 : f32 to vector<2x352xf32>
      %336 = arith.mulf %335, %334 : vector<2x352xf32>
      %337 = arith.addf %313, %336 : vector<2x352xf32>
      %c26_168 = arith.constant 26 : index
      %338 = memref.load %arg2[%c26_168] : memref<98xf32, #tpu.memory_space<smem>>
      %c0_169 = arith.constant 0 : index
      %c0_170 = arith.constant 0 : index
      %c71 = arith.constant 71 : index
      %339 = vector.load %arg7[%c0_169, %c0_170, %c71] : memref<2x2x490xf32, #tpu.memory_space<vmem>>, vector<1x2x352xf32>
      %340 = vector.shape_cast %339 : vector<1x2x352xf32> to vector<2x352xf32>
      %341 = vector.broadcast %338 : f32 to vector<2x352xf32>
      %342 = arith.mulf %341, %340 : vector<2x352xf32>
      %343 = arith.addf %319, %342 : vector<2x352xf32>
      %c27_171 = arith.constant 27 : index
      %344 = memref.load %arg2[%c27_171] : memref<98xf32, #tpu.memory_space<smem>>
      %c0_172 = arith.constant 0 : index
      %c0_173 = arith.constant 0 : index
      %c72 = arith.constant 72 : index
      %345 = vector.load %arg7[%c0_172, %c0_173, %c72] : memref<2x2x490xf32, #tpu.memory_space<vmem>>, vector<1x2x352xf32>
      %346 = vector.shape_cast %345 : vector<1x2x352xf32> to vector<2x352xf32>
      %347 = vector.broadcast %344 : f32 to vector<2x352xf32>
      %348 = arith.mulf %347, %346 : vector<2x352xf32>
      %349 = arith.addf %325, %348 : vector<2x352xf32>
      %c28_174 = arith.constant 28 : index
      %350 = memref.load %arg2[%c28_174] : memref<98xf32, #tpu.memory_space<smem>>
      %c0_175 = arith.constant 0 : index
      %c0_176 = arith.constant 0 : index
      %c88 = arith.constant 88 : index
      %351 = vector.load %arg7[%c0_175, %c0_176, %c88] : memref<2x2x490xf32, #tpu.memory_space<vmem>>, vector<1x2x352xf32>
      %352 = vector.shape_cast %351 : vector<1x2x352xf32> to vector<2x352xf32>
      %353 = vector.broadcast %350 : f32 to vector<2x352xf32>
      %354 = arith.mulf %353, %352 : vector<2x352xf32>
      %355 = arith.addf %331, %354 : vector<2x352xf32>
      %c29 = arith.constant 29 : index
      %356 = memref.load %arg2[%c29] : memref<98xf32, #tpu.memory_space<smem>>
      %c0_177 = arith.constant 0 : index
      %c0_178 = arith.constant 0 : index
      %c89 = arith.constant 89 : index
      %357 = vector.load %arg7[%c0_177, %c0_178, %c89] : memref<2x2x490xf32, #tpu.memory_space<vmem>>, vector<1x2x352xf32>
      %358 = vector.shape_cast %357 : vector<1x2x352xf32> to vector<2x352xf32>
      %359 = vector.broadcast %356 : f32 to vector<2x352xf32>
      %360 = arith.mulf %359, %358 : vector<2x352xf32>
      %361 = arith.addf %337, %360 : vector<2x352xf32>
      %c30 = arith.constant 30 : index
      %362 = memref.load %arg2[%c30] : memref<98xf32, #tpu.memory_space<smem>>
      %c0_179 = arith.constant 0 : index
      %c0_180 = arith.constant 0 : index
      %c90 = arith.constant 90 : index
      %363 = vector.load %arg7[%c0_179, %c0_180, %c90] : memref<2x2x490xf32, #tpu.memory_space<vmem>>, vector<1x2x352xf32>
      %364 = vector.shape_cast %363 : vector<1x2x352xf32> to vector<2x352xf32>
      %365 = vector.broadcast %362 : f32 to vector<2x352xf32>
      %366 = arith.mulf %365, %364 : vector<2x352xf32>
      %367 = arith.addf %343, %366 : vector<2x352xf32>
      %c31 = arith.constant 31 : index
      %368 = memref.load %arg2[%c31] : memref<98xf32, #tpu.memory_space<smem>>
      %c0_181 = arith.constant 0 : index
      %c0_182 = arith.constant 0 : index
      %c91_183 = arith.constant 91 : index
      %369 = vector.load %arg7[%c0_181, %c0_182, %c91_183] : memref<2x2x490xf32, #tpu.memory_space<vmem>>, vector<1x2x352xf32>
      %370 = vector.shape_cast %369 : vector<1x2x352xf32> to vector<2x352xf32>
      %371 = vector.broadcast %368 : f32 to vector<2x352xf32>
      %372 = arith.mulf %371, %370 : vector<2x352xf32>
      %373 = arith.addf %349, %372 : vector<2x352xf32>
      %c32 = arith.constant 32 : index
      %374 = memref.load %arg2[%c32] : memref<98xf32, #tpu.memory_space<smem>>
      %c0_184 = arith.constant 0 : index
      %c0_185 = arith.constant 0 : index
      %c92 = arith.constant 92 : index
      %375 = vector.load %arg7[%c0_184, %c0_185, %c92] : memref<2x2x490xf32, #tpu.memory_space<vmem>>, vector<1x2x352xf32>
      %376 = vector.shape_cast %375 : vector<1x2x352xf32> to vector<2x352xf32>
      %377 = vector.broadcast %374 : f32 to vector<2x352xf32>
      %378 = arith.mulf %377, %376 : vector<2x352xf32>
      %379 = arith.addf %355, %378 : vector<2x352xf32>
      %c33 = arith.constant 33 : index
      %380 = memref.load %arg2[%c33] : memref<98xf32, #tpu.memory_space<smem>>
      %c0_186 = arith.constant 0 : index
      %c0_187 = arith.constant 0 : index
      %c93 = arith.constant 93 : index
      %381 = vector.load %arg7[%c0_186, %c0_187, %c93] : memref<2x2x490xf32, #tpu.memory_space<vmem>>, vector<1x2x352xf32>
      %382 = vector.shape_cast %381 : vector<1x2x352xf32> to vector<2x352xf32>
      %383 = vector.broadcast %380 : f32 to vector<2x352xf32>
      %384 = arith.mulf %383, %382 : vector<2x352xf32>
      %385 = arith.addf %361, %384 : vector<2x352xf32>
      %c34 = arith.constant 34 : index
      %386 = memref.load %arg2[%c34] : memref<98xf32, #tpu.memory_space<smem>>
      %c0_188 = arith.constant 0 : index
      %c0_189 = arith.constant 0 : index
      %c94 = arith.constant 94 : index
      %387 = vector.load %arg7[%c0_188, %c0_189, %c94] : memref<2x2x490xf32, #tpu.memory_space<vmem>>, vector<1x2x352xf32>
      %388 = vector.shape_cast %387 : vector<1x2x352xf32> to vector<2x352xf32>
      %389 = vector.broadcast %386 : f32 to vector<2x352xf32>
      %390 = arith.mulf %389, %388 : vector<2x352xf32>
      %391 = arith.addf %367, %390 : vector<2x352xf32>
      %c35 = arith.constant 35 : index
      %392 = memref.load %arg2[%c35] : memref<98xf32, #tpu.memory_space<smem>>
      %c0_190 = arith.constant 0 : index
      %c0_191 = arith.constant 0 : index
      %c110 = arith.constant 110 : index
      %393 = vector.load %arg7[%c0_190, %c0_191, %c110] : memref<2x2x490xf32, #tpu.memory_space<vmem>>, vector<1x2x352xf32>
      %394 = vector.shape_cast %393 : vector<1x2x352xf32> to vector<2x352xf32>
      %395 = vector.broadcast %392 : f32 to vector<2x352xf32>
      %396 = arith.mulf %395, %394 : vector<2x352xf32>
      %397 = arith.addf %373, %396 : vector<2x352xf32>
      %c36 = arith.constant 36 : index
      %398 = memref.load %arg2[%c36] : memref<98xf32, #tpu.memory_space<smem>>
      %c0_192 = arith.constant 0 : index
      %c0_193 = arith.constant 0 : index
      %c111 = arith.constant 111 : index
      %399 = vector.load %arg7[%c0_192, %c0_193, %c111] : memref<2x2x490xf32, #tpu.memory_space<vmem>>, vector<1x2x352xf32>
      %400 = vector.shape_cast %399 : vector<1x2x352xf32> to vector<2x352xf32>
      %401 = vector.broadcast %398 : f32 to vector<2x352xf32>
      %402 = arith.mulf %401, %400 : vector<2x352xf32>
      %403 = arith.addf %379, %402 : vector<2x352xf32>
      %c37 = arith.constant 37 : index
      %404 = memref.load %arg2[%c37] : memref<98xf32, #tpu.memory_space<smem>>
      %c0_194 = arith.constant 0 : index
      %c0_195 = arith.constant 0 : index
      %c112 = arith.constant 112 : index
      %405 = vector.load %arg7[%c0_194, %c0_195, %c112] : memref<2x2x490xf32, #tpu.memory_space<vmem>>, vector<1x2x352xf32>
      %406 = vector.shape_cast %405 : vector<1x2x352xf32> to vector<2x352xf32>
      %407 = vector.broadcast %404 : f32 to vector<2x352xf32>
      %408 = arith.mulf %407, %406 : vector<2x352xf32>
      %409 = arith.addf %385, %408 : vector<2x352xf32>
      %c38 = arith.constant 38 : index
      %410 = memref.load %arg2[%c38] : memref<98xf32, #tpu.memory_space<smem>>
      %c0_196 = arith.constant 0 : index
      %c0_197 = arith.constant 0 : index
      %c113_198 = arith.constant 113 : index
      %411 = vector.load %arg7[%c0_196, %c0_197, %c113_198] : memref<2x2x490xf32, #tpu.memory_space<vmem>>, vector<1x2x352xf32>
      %412 = vector.shape_cast %411 : vector<1x2x352xf32> to vector<2x352xf32>
      %413 = vector.broadcast %410 : f32 to vector<2x352xf32>
      %414 = arith.mulf %413, %412 : vector<2x352xf32>
      %415 = arith.addf %391, %414 : vector<2x352xf32>
      %c39 = arith.constant 39 : index
      %416 = memref.load %arg2[%c39] : memref<98xf32, #tpu.memory_space<smem>>
      %c0_199 = arith.constant 0 : index
      %c0_200 = arith.constant 0 : index
      %c114 = arith.constant 114 : index
      %417 = vector.load %arg7[%c0_199, %c0_200, %c114] : memref<2x2x490xf32, #tpu.memory_space<vmem>>, vector<1x2x352xf32>
      %418 = vector.shape_cast %417 : vector<1x2x352xf32> to vector<2x352xf32>
      %419 = vector.broadcast %416 : f32 to vector<2x352xf32>
      %420 = arith.mulf %419, %418 : vector<2x352xf32>
      %421 = arith.addf %397, %420 : vector<2x352xf32>
      %c40 = arith.constant 40 : index
      %422 = memref.load %arg2[%c40] : memref<98xf32, #tpu.memory_space<smem>>
      %c0_201 = arith.constant 0 : index
      %c0_202 = arith.constant 0 : index
      %c115 = arith.constant 115 : index
      %423 = vector.load %arg7[%c0_201, %c0_202, %c115] : memref<2x2x490xf32, #tpu.memory_space<vmem>>, vector<1x2x352xf32>
      %424 = vector.shape_cast %423 : vector<1x2x352xf32> to vector<2x352xf32>
      %425 = vector.broadcast %422 : f32 to vector<2x352xf32>
      %426 = arith.mulf %425, %424 : vector<2x352xf32>
      %427 = arith.addf %403, %426 : vector<2x352xf32>
      %c41 = arith.constant 41 : index
      %428 = memref.load %arg2[%c41] : memref<98xf32, #tpu.memory_space<smem>>
      %c0_203 = arith.constant 0 : index
      %c0_204 = arith.constant 0 : index
      %c116 = arith.constant 116 : index
      %429 = vector.load %arg7[%c0_203, %c0_204, %c116] : memref<2x2x490xf32, #tpu.memory_space<vmem>>, vector<1x2x352xf32>
      %430 = vector.shape_cast %429 : vector<1x2x352xf32> to vector<2x352xf32>
      %431 = vector.broadcast %428 : f32 to vector<2x352xf32>
      %432 = arith.mulf %431, %430 : vector<2x352xf32>
      %433 = arith.addf %409, %432 : vector<2x352xf32>
      %c42 = arith.constant 42 : index
      %434 = memref.load %arg2[%c42] : memref<98xf32, #tpu.memory_space<smem>>
      %c0_205 = arith.constant 0 : index
      %c0_206 = arith.constant 0 : index
      %c132 = arith.constant 132 : index
      %435 = vector.load %arg7[%c0_205, %c0_206, %c132] : memref<2x2x490xf32, #tpu.memory_space<vmem>>, vector<1x2x352xf32>
      %436 = vector.shape_cast %435 : vector<1x2x352xf32> to vector<2x352xf32>
      %437 = vector.broadcast %434 : f32 to vector<2x352xf32>
      %438 = arith.mulf %437, %436 : vector<2x352xf32>
      %439 = arith.addf %415, %438 : vector<2x352xf32>
      %c43 = arith.constant 43 : index
      %440 = memref.load %arg2[%c43] : memref<98xf32, #tpu.memory_space<smem>>
      %c0_207 = arith.constant 0 : index
      %c0_208 = arith.constant 0 : index
      %c133 = arith.constant 133 : index
      %441 = vector.load %arg7[%c0_207, %c0_208, %c133] : memref<2x2x490xf32, #tpu.memory_space<vmem>>, vector<1x2x352xf32>
      %442 = vector.shape_cast %441 : vector<1x2x352xf32> to vector<2x352xf32>
      %443 = vector.broadcast %440 : f32 to vector<2x352xf32>
      %444 = arith.mulf %443, %442 : vector<2x352xf32>
      %445 = arith.addf %421, %444 : vector<2x352xf32>
      %c44_209 = arith.constant 44 : index
      %446 = memref.load %arg2[%c44_209] : memref<98xf32, #tpu.memory_space<smem>>
      %c0_210 = arith.constant 0 : index
      %c0_211 = arith.constant 0 : index
      %c134 = arith.constant 134 : index
      %447 = vector.load %arg7[%c0_210, %c0_211, %c134] : memref<2x2x490xf32, #tpu.memory_space<vmem>>, vector<1x2x352xf32>
      %448 = vector.shape_cast %447 : vector<1x2x352xf32> to vector<2x352xf32>
      %449 = vector.broadcast %446 : f32 to vector<2x352xf32>
      %450 = arith.mulf %449, %448 : vector<2x352xf32>
      %451 = arith.addf %427, %450 : vector<2x352xf32>
      %c45_212 = arith.constant 45 : index
      %452 = memref.load %arg2[%c45_212] : memref<98xf32, #tpu.memory_space<smem>>
      %c0_213 = arith.constant 0 : index
      %c0_214 = arith.constant 0 : index
      %c135_215 = arith.constant 135 : index
      %453 = vector.load %arg7[%c0_213, %c0_214, %c135_215] : memref<2x2x490xf32, #tpu.memory_space<vmem>>, vector<1x2x352xf32>
      %454 = vector.shape_cast %453 : vector<1x2x352xf32> to vector<2x352xf32>
      %455 = vector.broadcast %452 : f32 to vector<2x352xf32>
      %456 = arith.mulf %455, %454 : vector<2x352xf32>
      %457 = arith.addf %433, %456 : vector<2x352xf32>
      %c46_216 = arith.constant 46 : index
      %458 = memref.load %arg2[%c46_216] : memref<98xf32, #tpu.memory_space<smem>>
      %c0_217 = arith.constant 0 : index
      %c0_218 = arith.constant 0 : index
      %c136 = arith.constant 136 : index
      %459 = vector.load %arg7[%c0_217, %c0_218, %c136] : memref<2x2x490xf32, #tpu.memory_space<vmem>>, vector<1x2x352xf32>
      %460 = vector.shape_cast %459 : vector<1x2x352xf32> to vector<2x352xf32>
      %461 = vector.broadcast %458 : f32 to vector<2x352xf32>
      %462 = arith.mulf %461, %460 : vector<2x352xf32>
      %463 = arith.addf %439, %462 : vector<2x352xf32>
      %c47_219 = arith.constant 47 : index
      %464 = memref.load %arg2[%c47_219] : memref<98xf32, #tpu.memory_space<smem>>
      %c0_220 = arith.constant 0 : index
      %c0_221 = arith.constant 0 : index
      %c137 = arith.constant 137 : index
      %465 = vector.load %arg7[%c0_220, %c0_221, %c137] : memref<2x2x490xf32, #tpu.memory_space<vmem>>, vector<1x2x352xf32>
      %466 = vector.shape_cast %465 : vector<1x2x352xf32> to vector<2x352xf32>
      %467 = vector.broadcast %464 : f32 to vector<2x352xf32>
      %468 = arith.mulf %467, %466 : vector<2x352xf32>
      %469 = arith.addf %445, %468 : vector<2x352xf32>
      %c48_222 = arith.constant 48 : index
      %470 = memref.load %arg2[%c48_222] : memref<98xf32, #tpu.memory_space<smem>>
      %c0_223 = arith.constant 0 : index
      %c0_224 = arith.constant 0 : index
      %c138 = arith.constant 138 : index
      %471 = vector.load %arg7[%c0_223, %c0_224, %c138] : memref<2x2x490xf32, #tpu.memory_space<vmem>>, vector<1x2x352xf32>
      %472 = vector.shape_cast %471 : vector<1x2x352xf32> to vector<2x352xf32>
      %473 = vector.broadcast %470 : f32 to vector<2x352xf32>
      %474 = arith.mulf %473, %472 : vector<2x352xf32>
      %475 = arith.addf %451, %474 : vector<2x352xf32>
      %c49_225 = arith.constant 49 : index
      %476 = memref.load %arg2[%c49_225] : memref<98xf32, #tpu.memory_space<smem>>
      %c1_226 = arith.constant 1 : index
      %c0_227 = arith.constant 0 : index
      %c0_228 = arith.constant 0 : index
      %477 = vector.load %arg7[%c1_226, %c0_227, %c0_228] : memref<2x2x490xf32, #tpu.memory_space<vmem>>, vector<1x2x352xf32>
      %478 = vector.shape_cast %477 : vector<1x2x352xf32> to vector<2x352xf32>
      %479 = vector.broadcast %476 : f32 to vector<2x352xf32>
      %480 = arith.mulf %479, %478 : vector<2x352xf32>
      %481 = arith.addf %457, %480 : vector<2x352xf32>
      %c50_229 = arith.constant 50 : index
      %482 = memref.load %arg2[%c50_229] : memref<98xf32, #tpu.memory_space<smem>>
      %c1_230 = arith.constant 1 : index
      %c0_231 = arith.constant 0 : index
      %c1_232 = arith.constant 1 : index
      %483 = vector.load %arg7[%c1_230, %c0_231, %c1_232] : memref<2x2x490xf32, #tpu.memory_space<vmem>>, vector<1x2x352xf32>
      %484 = vector.shape_cast %483 : vector<1x2x352xf32> to vector<2x352xf32>
      %485 = vector.broadcast %482 : f32 to vector<2x352xf32>
      %486 = arith.mulf %485, %484 : vector<2x352xf32>
      %487 = arith.addf %463, %486 : vector<2x352xf32>
      %c51 = arith.constant 51 : index
      %488 = memref.load %arg2[%c51] : memref<98xf32, #tpu.memory_space<smem>>
      %c1_233 = arith.constant 1 : index
      %c0_234 = arith.constant 0 : index
      %c2_235 = arith.constant 2 : index
      %489 = vector.load %arg7[%c1_233, %c0_234, %c2_235] : memref<2x2x490xf32, #tpu.memory_space<vmem>>, vector<1x2x352xf32>
      %490 = vector.shape_cast %489 : vector<1x2x352xf32> to vector<2x352xf32>
      %491 = vector.broadcast %488 : f32 to vector<2x352xf32>
      %492 = arith.mulf %491, %490 : vector<2x352xf32>
      %493 = arith.addf %469, %492 : vector<2x352xf32>
      %c52 = arith.constant 52 : index
      %494 = memref.load %arg2[%c52] : memref<98xf32, #tpu.memory_space<smem>>
      %c1_236 = arith.constant 1 : index
      %c0_237 = arith.constant 0 : index
      %c3_238 = arith.constant 3 : index
      %495 = vector.load %arg7[%c1_236, %c0_237, %c3_238] : memref<2x2x490xf32, #tpu.memory_space<vmem>>, vector<1x2x352xf32>
      %496 = vector.shape_cast %495 : vector<1x2x352xf32> to vector<2x352xf32>
      %497 = vector.broadcast %494 : f32 to vector<2x352xf32>
      %498 = arith.mulf %497, %496 : vector<2x352xf32>
      %499 = arith.addf %475, %498 : vector<2x352xf32>
      %c53 = arith.constant 53 : index
      %500 = memref.load %arg2[%c53] : memref<98xf32, #tpu.memory_space<smem>>
      %c1_239 = arith.constant 1 : index
      %c0_240 = arith.constant 0 : index
      %c4_241 = arith.constant 4 : index
      %501 = vector.load %arg7[%c1_239, %c0_240, %c4_241] : memref<2x2x490xf32, #tpu.memory_space<vmem>>, vector<1x2x352xf32>
      %502 = vector.shape_cast %501 : vector<1x2x352xf32> to vector<2x352xf32>
      %503 = vector.broadcast %500 : f32 to vector<2x352xf32>
      %504 = arith.mulf %503, %502 : vector<2x352xf32>
      %505 = arith.addf %481, %504 : vector<2x352xf32>
      %c54 = arith.constant 54 : index
      %506 = memref.load %arg2[%c54] : memref<98xf32, #tpu.memory_space<smem>>
      %c1_242 = arith.constant 1 : index
      %c0_243 = arith.constant 0 : index
      %c5_244 = arith.constant 5 : index
      %507 = vector.load %arg7[%c1_242, %c0_243, %c5_244] : memref<2x2x490xf32, #tpu.memory_space<vmem>>, vector<1x2x352xf32>
      %508 = vector.shape_cast %507 : vector<1x2x352xf32> to vector<2x352xf32>
      %509 = vector.broadcast %506 : f32 to vector<2x352xf32>
      %510 = arith.mulf %509, %508 : vector<2x352xf32>
      %511 = arith.addf %487, %510 : vector<2x352xf32>
      %c55 = arith.constant 55 : index
      %512 = memref.load %arg2[%c55] : memref<98xf32, #tpu.memory_space<smem>>
      %c1_245 = arith.constant 1 : index
      %c0_246 = arith.constant 0 : index
      %c6_247 = arith.constant 6 : index
      %513 = vector.load %arg7[%c1_245, %c0_246, %c6_247] : memref<2x2x490xf32, #tpu.memory_space<vmem>>, vector<1x2x352xf32>
      %514 = vector.shape_cast %513 : vector<1x2x352xf32> to vector<2x352xf32>
      %515 = vector.broadcast %512 : f32 to vector<2x352xf32>
      %516 = arith.mulf %515, %514 : vector<2x352xf32>
      %517 = arith.addf %493, %516 : vector<2x352xf32>
      %c56 = arith.constant 56 : index
      %518 = memref.load %arg2[%c56] : memref<98xf32, #tpu.memory_space<smem>>
      %c1_248 = arith.constant 1 : index
      %c0_249 = arith.constant 0 : index
      %c22_250 = arith.constant 22 : index
      %519 = vector.load %arg7[%c1_248, %c0_249, %c22_250] : memref<2x2x490xf32, #tpu.memory_space<vmem>>, vector<1x2x352xf32>
      %520 = vector.shape_cast %519 : vector<1x2x352xf32> to vector<2x352xf32>
      %521 = vector.broadcast %518 : f32 to vector<2x352xf32>
      %522 = arith.mulf %521, %520 : vector<2x352xf32>
      %523 = arith.addf %499, %522 : vector<2x352xf32>
      %c57 = arith.constant 57 : index
      %524 = memref.load %arg2[%c57] : memref<98xf32, #tpu.memory_space<smem>>
      %c1_251 = arith.constant 1 : index
      %c0_252 = arith.constant 0 : index
      %c23_253 = arith.constant 23 : index
      %525 = vector.load %arg7[%c1_251, %c0_252, %c23_253] : memref<2x2x490xf32, #tpu.memory_space<vmem>>, vector<1x2x352xf32>
      %526 = vector.shape_cast %525 : vector<1x2x352xf32> to vector<2x352xf32>
      %527 = vector.broadcast %524 : f32 to vector<2x352xf32>
      %528 = arith.mulf %527, %526 : vector<2x352xf32>
      %529 = arith.addf %505, %528 : vector<2x352xf32>
      %c58 = arith.constant 58 : index
      %530 = memref.load %arg2[%c58] : memref<98xf32, #tpu.memory_space<smem>>
      %c1_254 = arith.constant 1 : index
      %c0_255 = arith.constant 0 : index
      %c24_256 = arith.constant 24 : index
      %531 = vector.load %arg7[%c1_254, %c0_255, %c24_256] : memref<2x2x490xf32, #tpu.memory_space<vmem>>, vector<1x2x352xf32>
      %532 = vector.shape_cast %531 : vector<1x2x352xf32> to vector<2x352xf32>
      %533 = vector.broadcast %530 : f32 to vector<2x352xf32>
      %534 = arith.mulf %533, %532 : vector<2x352xf32>
      %535 = arith.addf %511, %534 : vector<2x352xf32>
      %c59 = arith.constant 59 : index
      %536 = memref.load %arg2[%c59] : memref<98xf32, #tpu.memory_space<smem>>
      %c1_257 = arith.constant 1 : index
      %c0_258 = arith.constant 0 : index
      %c25_259 = arith.constant 25 : index
      %537 = vector.load %arg7[%c1_257, %c0_258, %c25_259] : memref<2x2x490xf32, #tpu.memory_space<vmem>>, vector<1x2x352xf32>
      %538 = vector.shape_cast %537 : vector<1x2x352xf32> to vector<2x352xf32>
      %539 = vector.broadcast %536 : f32 to vector<2x352xf32>
      %540 = arith.mulf %539, %538 : vector<2x352xf32>
      %541 = arith.addf %517, %540 : vector<2x352xf32>
      %c60 = arith.constant 60 : index
      %542 = memref.load %arg2[%c60] : memref<98xf32, #tpu.memory_space<smem>>
      %c1_260 = arith.constant 1 : index
      %c0_261 = arith.constant 0 : index
      %c26_262 = arith.constant 26 : index
      %543 = vector.load %arg7[%c1_260, %c0_261, %c26_262] : memref<2x2x490xf32, #tpu.memory_space<vmem>>, vector<1x2x352xf32>
      %544 = vector.shape_cast %543 : vector<1x2x352xf32> to vector<2x352xf32>
      %545 = vector.broadcast %542 : f32 to vector<2x352xf32>
      %546 = arith.mulf %545, %544 : vector<2x352xf32>
      %547 = arith.addf %523, %546 : vector<2x352xf32>
      %c61 = arith.constant 61 : index
      %548 = memref.load %arg2[%c61] : memref<98xf32, #tpu.memory_space<smem>>
      %c1_263 = arith.constant 1 : index
      %c0_264 = arith.constant 0 : index
      %c27_265 = arith.constant 27 : index
      %549 = vector.load %arg7[%c1_263, %c0_264, %c27_265] : memref<2x2x490xf32, #tpu.memory_space<vmem>>, vector<1x2x352xf32>
      %550 = vector.shape_cast %549 : vector<1x2x352xf32> to vector<2x352xf32>
      %551 = vector.broadcast %548 : f32 to vector<2x352xf32>
      %552 = arith.mulf %551, %550 : vector<2x352xf32>
      %553 = arith.addf %529, %552 : vector<2x352xf32>
      %c62 = arith.constant 62 : index
      %554 = memref.load %arg2[%c62] : memref<98xf32, #tpu.memory_space<smem>>
      %c1_266 = arith.constant 1 : index
      %c0_267 = arith.constant 0 : index
      %c28_268 = arith.constant 28 : index
      %555 = vector.load %arg7[%c1_266, %c0_267, %c28_268] : memref<2x2x490xf32, #tpu.memory_space<vmem>>, vector<1x2x352xf32>
      %556 = vector.shape_cast %555 : vector<1x2x352xf32> to vector<2x352xf32>
      %557 = vector.broadcast %554 : f32 to vector<2x352xf32>
      %558 = arith.mulf %557, %556 : vector<2x352xf32>
      %559 = arith.addf %535, %558 : vector<2x352xf32>
      %c63 = arith.constant 63 : index
      %560 = memref.load %arg2[%c63] : memref<98xf32, #tpu.memory_space<smem>>
      %c1_269 = arith.constant 1 : index
      %c0_270 = arith.constant 0 : index
      %c44_271 = arith.constant 44 : index
      %561 = vector.load %arg7[%c1_269, %c0_270, %c44_271] : memref<2x2x490xf32, #tpu.memory_space<vmem>>, vector<1x2x352xf32>
      %562 = vector.shape_cast %561 : vector<1x2x352xf32> to vector<2x352xf32>
      %563 = vector.broadcast %560 : f32 to vector<2x352xf32>
      %564 = arith.mulf %563, %562 : vector<2x352xf32>
      %565 = arith.addf %541, %564 : vector<2x352xf32>
      %c64 = arith.constant 64 : index
      %566 = memref.load %arg2[%c64] : memref<98xf32, #tpu.memory_space<smem>>
      %c1_272 = arith.constant 1 : index
      %c0_273 = arith.constant 0 : index
      %c45_274 = arith.constant 45 : index
      %567 = vector.load %arg7[%c1_272, %c0_273, %c45_274] : memref<2x2x490xf32, #tpu.memory_space<vmem>>, vector<1x2x352xf32>
      %568 = vector.shape_cast %567 : vector<1x2x352xf32> to vector<2x352xf32>
      %569 = vector.broadcast %566 : f32 to vector<2x352xf32>
      %570 = arith.mulf %569, %568 : vector<2x352xf32>
      %571 = arith.addf %547, %570 : vector<2x352xf32>
      %c65 = arith.constant 65 : index
      %572 = memref.load %arg2[%c65] : memref<98xf32, #tpu.memory_space<smem>>
      %c1_275 = arith.constant 1 : index
      %c0_276 = arith.constant 0 : index
      %c46_277 = arith.constant 46 : index
      %573 = vector.load %arg7[%c1_275, %c0_276, %c46_277] : memref<2x2x490xf32, #tpu.memory_space<vmem>>, vector<1x2x352xf32>
      %574 = vector.shape_cast %573 : vector<1x2x352xf32> to vector<2x352xf32>
      %575 = vector.broadcast %572 : f32 to vector<2x352xf32>
      %576 = arith.mulf %575, %574 : vector<2x352xf32>
      %577 = arith.addf %553, %576 : vector<2x352xf32>
      %c66_278 = arith.constant 66 : index
      %578 = memref.load %arg2[%c66_278] : memref<98xf32, #tpu.memory_space<smem>>
      %c1_279 = arith.constant 1 : index
      %c0_280 = arith.constant 0 : index
      %c47_281 = arith.constant 47 : index
      %579 = vector.load %arg7[%c1_279, %c0_280, %c47_281] : memref<2x2x490xf32, #tpu.memory_space<vmem>>, vector<1x2x352xf32>
      %580 = vector.shape_cast %579 : vector<1x2x352xf32> to vector<2x352xf32>
      %581 = vector.broadcast %578 : f32 to vector<2x352xf32>
      %582 = arith.mulf %581, %580 : vector<2x352xf32>
      %583 = arith.addf %559, %582 : vector<2x352xf32>
      %c67_282 = arith.constant 67 : index
      %584 = memref.load %arg2[%c67_282] : memref<98xf32, #tpu.memory_space<smem>>
      %c1_283 = arith.constant 1 : index
      %c0_284 = arith.constant 0 : index
      %c48_285 = arith.constant 48 : index
      %585 = vector.load %arg7[%c1_283, %c0_284, %c48_285] : memref<2x2x490xf32, #tpu.memory_space<vmem>>, vector<1x2x352xf32>
      %586 = vector.shape_cast %585 : vector<1x2x352xf32> to vector<2x352xf32>
      %587 = vector.broadcast %584 : f32 to vector<2x352xf32>
      %588 = arith.mulf %587, %586 : vector<2x352xf32>
      %589 = arith.addf %565, %588 : vector<2x352xf32>
      %c68_286 = arith.constant 68 : index
      %590 = memref.load %arg2[%c68_286] : memref<98xf32, #tpu.memory_space<smem>>
      %c1_287 = arith.constant 1 : index
      %c0_288 = arith.constant 0 : index
      %c49_289 = arith.constant 49 : index
      %591 = vector.load %arg7[%c1_287, %c0_288, %c49_289] : memref<2x2x490xf32, #tpu.memory_space<vmem>>, vector<1x2x352xf32>
      %592 = vector.shape_cast %591 : vector<1x2x352xf32> to vector<2x352xf32>
      %593 = vector.broadcast %590 : f32 to vector<2x352xf32>
      %594 = arith.mulf %593, %592 : vector<2x352xf32>
      %595 = arith.addf %571, %594 : vector<2x352xf32>
      %c69_290 = arith.constant 69 : index
      %596 = memref.load %arg2[%c69_290] : memref<98xf32, #tpu.memory_space<smem>>
      %c1_291 = arith.constant 1 : index
      %c0_292 = arith.constant 0 : index
      %c50_293 = arith.constant 50 : index
      %597 = vector.load %arg7[%c1_291, %c0_292, %c50_293] : memref<2x2x490xf32, #tpu.memory_space<vmem>>, vector<1x2x352xf32>
      %598 = vector.shape_cast %597 : vector<1x2x352xf32> to vector<2x352xf32>
      %599 = vector.broadcast %596 : f32 to vector<2x352xf32>
      %600 = arith.mulf %599, %598 : vector<2x352xf32>
      %601 = arith.addf %577, %600 : vector<2x352xf32>
      %c70_294 = arith.constant 70 : index
      %602 = memref.load %arg2[%c70_294] : memref<98xf32, #tpu.memory_space<smem>>
      %c1_295 = arith.constant 1 : index
      %c0_296 = arith.constant 0 : index
      %c66_297 = arith.constant 66 : index
      %603 = vector.load %arg7[%c1_295, %c0_296, %c66_297] : memref<2x2x490xf32, #tpu.memory_space<vmem>>, vector<1x2x352xf32>
      %604 = vector.shape_cast %603 : vector<1x2x352xf32> to vector<2x352xf32>
      %605 = vector.broadcast %602 : f32 to vector<2x352xf32>
      %606 = arith.mulf %605, %604 : vector<2x352xf32>
      %607 = arith.addf %583, %606 : vector<2x352xf32>
      %c71_298 = arith.constant 71 : index
      %608 = memref.load %arg2[%c71_298] : memref<98xf32, #tpu.memory_space<smem>>
      %c1_299 = arith.constant 1 : index
      %c0_300 = arith.constant 0 : index
      %c67_301 = arith.constant 67 : index
      %609 = vector.load %arg7[%c1_299, %c0_300, %c67_301] : memref<2x2x490xf32, #tpu.memory_space<vmem>>, vector<1x2x352xf32>
      %610 = vector.shape_cast %609 : vector<1x2x352xf32> to vector<2x352xf32>
      %611 = vector.broadcast %608 : f32 to vector<2x352xf32>
      %612 = arith.mulf %611, %610 : vector<2x352xf32>
      %613 = arith.addf %589, %612 : vector<2x352xf32>
      %c72_302 = arith.constant 72 : index
      %614 = memref.load %arg2[%c72_302] : memref<98xf32, #tpu.memory_space<smem>>
      %c1_303 = arith.constant 1 : index
      %c0_304 = arith.constant 0 : index
      %c68_305 = arith.constant 68 : index
      %615 = vector.load %arg7[%c1_303, %c0_304, %c68_305] : memref<2x2x490xf32, #tpu.memory_space<vmem>>, vector<1x2x352xf32>
      %616 = vector.shape_cast %615 : vector<1x2x352xf32> to vector<2x352xf32>
      %617 = vector.broadcast %614 : f32 to vector<2x352xf32>
      %618 = arith.mulf %617, %616 : vector<2x352xf32>
      %619 = arith.addf %595, %618 : vector<2x352xf32>
      %c73 = arith.constant 73 : index
      %620 = memref.load %arg2[%c73] : memref<98xf32, #tpu.memory_space<smem>>
      %c1_306 = arith.constant 1 : index
      %c0_307 = arith.constant 0 : index
      %c69_308 = arith.constant 69 : index
      %621 = vector.load %arg7[%c1_306, %c0_307, %c69_308] : memref<2x2x490xf32, #tpu.memory_space<vmem>>, vector<1x2x352xf32>
      %622 = vector.shape_cast %621 : vector<1x2x352xf32> to vector<2x352xf32>
      %623 = vector.broadcast %620 : f32 to vector<2x352xf32>
      %624 = arith.mulf %623, %622 : vector<2x352xf32>
      %625 = arith.addf %601, %624 : vector<2x352xf32>
      %c74 = arith.constant 74 : index
      %626 = memref.load %arg2[%c74] : memref<98xf32, #tpu.memory_space<smem>>
      %c1_309 = arith.constant 1 : index
      %c0_310 = arith.constant 0 : index
      %c70_311 = arith.constant 70 : index
      %627 = vector.load %arg7[%c1_309, %c0_310, %c70_311] : memref<2x2x490xf32, #tpu.memory_space<vmem>>, vector<1x2x352xf32>
      %628 = vector.shape_cast %627 : vector<1x2x352xf32> to vector<2x352xf32>
      %629 = vector.broadcast %626 : f32 to vector<2x352xf32>
      %630 = arith.mulf %629, %628 : vector<2x352xf32>
      %631 = arith.addf %607, %630 : vector<2x352xf32>
      %c75 = arith.constant 75 : index
      %632 = memref.load %arg2[%c75] : memref<98xf32, #tpu.memory_space<smem>>
      %c1_312 = arith.constant 1 : index
      %c0_313 = arith.constant 0 : index
      %c71_314 = arith.constant 71 : index
      %633 = vector.load %arg7[%c1_312, %c0_313, %c71_314] : memref<2x2x490xf32, #tpu.memory_space<vmem>>, vector<1x2x352xf32>
      %634 = vector.shape_cast %633 : vector<1x2x352xf32> to vector<2x352xf32>
      %635 = vector.broadcast %632 : f32 to vector<2x352xf32>
      %636 = arith.mulf %635, %634 : vector<2x352xf32>
      %637 = arith.addf %613, %636 : vector<2x352xf32>
      %c76 = arith.constant 76 : index
      %638 = memref.load %arg2[%c76] : memref<98xf32, #tpu.memory_space<smem>>
      %c1_315 = arith.constant 1 : index
      %c0_316 = arith.constant 0 : index
      %c72_317 = arith.constant 72 : index
      %639 = vector.load %arg7[%c1_315, %c0_316, %c72_317] : memref<2x2x490xf32, #tpu.memory_space<vmem>>, vector<1x2x352xf32>
      %640 = vector.shape_cast %639 : vector<1x2x352xf32> to vector<2x352xf32>
      %641 = vector.broadcast %638 : f32 to vector<2x352xf32>
      %642 = arith.mulf %641, %640 : vector<2x352xf32>
      %643 = arith.addf %619, %642 : vector<2x352xf32>
      %c77 = arith.constant 77 : index
      %644 = memref.load %arg2[%c77] : memref<98xf32, #tpu.memory_space<smem>>
      %c1_318 = arith.constant 1 : index
      %c0_319 = arith.constant 0 : index
      %c88_320 = arith.constant 88 : index
      %645 = vector.load %arg7[%c1_318, %c0_319, %c88_320] : memref<2x2x490xf32, #tpu.memory_space<vmem>>, vector<1x2x352xf32>
      %646 = vector.shape_cast %645 : vector<1x2x352xf32> to vector<2x352xf32>
      %647 = vector.broadcast %644 : f32 to vector<2x352xf32>
      %648 = arith.mulf %647, %646 : vector<2x352xf32>
      %649 = arith.addf %625, %648 : vector<2x352xf32>
      %c78 = arith.constant 78 : index
      %650 = memref.load %arg2[%c78] : memref<98xf32, #tpu.memory_space<smem>>
      %c1_321 = arith.constant 1 : index
      %c0_322 = arith.constant 0 : index
      %c89_323 = arith.constant 89 : index
      %651 = vector.load %arg7[%c1_321, %c0_322, %c89_323] : memref<2x2x490xf32, #tpu.memory_space<vmem>>, vector<1x2x352xf32>
      %652 = vector.shape_cast %651 : vector<1x2x352xf32> to vector<2x352xf32>
      %653 = vector.broadcast %650 : f32 to vector<2x352xf32>
      %654 = arith.mulf %653, %652 : vector<2x352xf32>
      %655 = arith.addf %631, %654 : vector<2x352xf32>
      %c79 = arith.constant 79 : index
      %656 = memref.load %arg2[%c79] : memref<98xf32, #tpu.memory_space<smem>>
      %c1_324 = arith.constant 1 : index
      %c0_325 = arith.constant 0 : index
      %c90_326 = arith.constant 90 : index
      %657 = vector.load %arg7[%c1_324, %c0_325, %c90_326] : memref<2x2x490xf32, #tpu.memory_space<vmem>>, vector<1x2x352xf32>
      %658 = vector.shape_cast %657 : vector<1x2x352xf32> to vector<2x352xf32>
      %659 = vector.broadcast %656 : f32 to vector<2x352xf32>
      %660 = arith.mulf %659, %658 : vector<2x352xf32>
      %661 = arith.addf %637, %660 : vector<2x352xf32>
      %c80 = arith.constant 80 : index
      %662 = memref.load %arg2[%c80] : memref<98xf32, #tpu.memory_space<smem>>
      %c1_327 = arith.constant 1 : index
      %c0_328 = arith.constant 0 : index
      %c91_329 = arith.constant 91 : index
      %663 = vector.load %arg7[%c1_327, %c0_328, %c91_329] : memref<2x2x490xf32, #tpu.memory_space<vmem>>, vector<1x2x352xf32>
      %664 = vector.shape_cast %663 : vector<1x2x352xf32> to vector<2x352xf32>
      %665 = vector.broadcast %662 : f32 to vector<2x352xf32>
      %666 = arith.mulf %665, %664 : vector<2x352xf32>
      %667 = arith.addf %643, %666 : vector<2x352xf32>
      %c81 = arith.constant 81 : index
      %668 = memref.load %arg2[%c81] : memref<98xf32, #tpu.memory_space<smem>>
      %c1_330 = arith.constant 1 : index
      %c0_331 = arith.constant 0 : index
      %c92_332 = arith.constant 92 : index
      %669 = vector.load %arg7[%c1_330, %c0_331, %c92_332] : memref<2x2x490xf32, #tpu.memory_space<vmem>>, vector<1x2x352xf32>
      %670 = vector.shape_cast %669 : vector<1x2x352xf32> to vector<2x352xf32>
      %671 = vector.broadcast %668 : f32 to vector<2x352xf32>
      %672 = arith.mulf %671, %670 : vector<2x352xf32>
      %673 = arith.addf %649, %672 : vector<2x352xf32>
      %c82 = arith.constant 82 : index
      %674 = memref.load %arg2[%c82] : memref<98xf32, #tpu.memory_space<smem>>
      %c1_333 = arith.constant 1 : index
      %c0_334 = arith.constant 0 : index
      %c93_335 = arith.constant 93 : index
      %675 = vector.load %arg7[%c1_333, %c0_334, %c93_335] : memref<2x2x490xf32, #tpu.memory_space<vmem>>, vector<1x2x352xf32>
      %676 = vector.shape_cast %675 : vector<1x2x352xf32> to vector<2x352xf32>
      %677 = vector.broadcast %674 : f32 to vector<2x352xf32>
      %678 = arith.mulf %677, %676 : vector<2x352xf32>
      %679 = arith.addf %655, %678 : vector<2x352xf32>
      %c83 = arith.constant 83 : index
      %680 = memref.load %arg2[%c83] : memref<98xf32, #tpu.memory_space<smem>>
      %c1_336 = arith.constant 1 : index
      %c0_337 = arith.constant 0 : index
      %c94_338 = arith.constant 94 : index
      %681 = vector.load %arg7[%c1_336, %c0_337, %c94_338] : memref<2x2x490xf32, #tpu.memory_space<vmem>>, vector<1x2x352xf32>
      %682 = vector.shape_cast %681 : vector<1x2x352xf32> to vector<2x352xf32>
      %683 = vector.broadcast %680 : f32 to vector<2x352xf32>
      %684 = arith.mulf %683, %682 : vector<2x352xf32>
      %685 = arith.addf %661, %684 : vector<2x352xf32>
      %c84 = arith.constant 84 : index
      %686 = memref.load %arg2[%c84] : memref<98xf32, #tpu.memory_space<smem>>
      %c1_339 = arith.constant 1 : index
      %c0_340 = arith.constant 0 : index
      %c110_341 = arith.constant 110 : index
      %687 = vector.load %arg7[%c1_339, %c0_340, %c110_341] : memref<2x2x490xf32, #tpu.memory_space<vmem>>, vector<1x2x352xf32>
      %688 = vector.shape_cast %687 : vector<1x2x352xf32> to vector<2x352xf32>
      %689 = vector.broadcast %686 : f32 to vector<2x352xf32>
      %690 = arith.mulf %689, %688 : vector<2x352xf32>
      %691 = arith.addf %667, %690 : vector<2x352xf32>
      %c85 = arith.constant 85 : index
      %692 = memref.load %arg2[%c85] : memref<98xf32, #tpu.memory_space<smem>>
      %c1_342 = arith.constant 1 : index
      %c0_343 = arith.constant 0 : index
      %c111_344 = arith.constant 111 : index
      %693 = vector.load %arg7[%c1_342, %c0_343, %c111_344] : memref<2x2x490xf32, #tpu.memory_space<vmem>>, vector<1x2x352xf32>
      %694 = vector.shape_cast %693 : vector<1x2x352xf32> to vector<2x352xf32>
      %695 = vector.broadcast %692 : f32 to vector<2x352xf32>
      %696 = arith.mulf %695, %694 : vector<2x352xf32>
      %697 = arith.addf %673, %696 : vector<2x352xf32>
      %c86 = arith.constant 86 : index
      %698 = memref.load %arg2[%c86] : memref<98xf32, #tpu.memory_space<smem>>
      %c1_345 = arith.constant 1 : index
      %c0_346 = arith.constant 0 : index
      %c112_347 = arith.constant 112 : index
      %699 = vector.load %arg7[%c1_345, %c0_346, %c112_347] : memref<2x2x490xf32, #tpu.memory_space<vmem>>, vector<1x2x352xf32>
      %700 = vector.shape_cast %699 : vector<1x2x352xf32> to vector<2x352xf32>
      %701 = vector.broadcast %698 : f32 to vector<2x352xf32>
      %702 = arith.mulf %701, %700 : vector<2x352xf32>
      %703 = arith.addf %679, %702 : vector<2x352xf32>
      %c87 = arith.constant 87 : index
      %704 = memref.load %arg2[%c87] : memref<98xf32, #tpu.memory_space<smem>>
      %c1_348 = arith.constant 1 : index
      %c0_349 = arith.constant 0 : index
      %c113_350 = arith.constant 113 : index
      %705 = vector.load %arg7[%c1_348, %c0_349, %c113_350] : memref<2x2x490xf32, #tpu.memory_space<vmem>>, vector<1x2x352xf32>
      %706 = vector.shape_cast %705 : vector<1x2x352xf32> to vector<2x352xf32>
      %707 = vector.broadcast %704 : f32 to vector<2x352xf32>
      %708 = arith.mulf %707, %706 : vector<2x352xf32>
      %709 = arith.addf %685, %708 : vector<2x352xf32>
      %c88_351 = arith.constant 88 : index
      %710 = memref.load %arg2[%c88_351] : memref<98xf32, #tpu.memory_space<smem>>
      %c1_352 = arith.constant 1 : index
      %c0_353 = arith.constant 0 : index
      %c114_354 = arith.constant 114 : index
      %711 = vector.load %arg7[%c1_352, %c0_353, %c114_354] : memref<2x2x490xf32, #tpu.memory_space<vmem>>, vector<1x2x352xf32>
      %712 = vector.shape_cast %711 : vector<1x2x352xf32> to vector<2x352xf32>
      %713 = vector.broadcast %710 : f32 to vector<2x352xf32>
      %714 = arith.mulf %713, %712 : vector<2x352xf32>
      %715 = arith.addf %691, %714 : vector<2x352xf32>
      %c89_355 = arith.constant 89 : index
      %716 = memref.load %arg2[%c89_355] : memref<98xf32, #tpu.memory_space<smem>>
      %c1_356 = arith.constant 1 : index
      %c0_357 = arith.constant 0 : index
      %c115_358 = arith.constant 115 : index
      %717 = vector.load %arg7[%c1_356, %c0_357, %c115_358] : memref<2x2x490xf32, #tpu.memory_space<vmem>>, vector<1x2x352xf32>
      %718 = vector.shape_cast %717 : vector<1x2x352xf32> to vector<2x352xf32>
      %719 = vector.broadcast %716 : f32 to vector<2x352xf32>
      %720 = arith.mulf %719, %718 : vector<2x352xf32>
      %721 = arith.addf %697, %720 : vector<2x352xf32>
      %c90_359 = arith.constant 90 : index
      %722 = memref.load %arg2[%c90_359] : memref<98xf32, #tpu.memory_space<smem>>
      %c1_360 = arith.constant 1 : index
      %c0_361 = arith.constant 0 : index
      %c116_362 = arith.constant 116 : index
      %723 = vector.load %arg7[%c1_360, %c0_361, %c116_362] : memref<2x2x490xf32, #tpu.memory_space<vmem>>, vector<1x2x352xf32>
      %724 = vector.shape_cast %723 : vector<1x2x352xf32> to vector<2x352xf32>
      %725 = vector.broadcast %722 : f32 to vector<2x352xf32>
      %726 = arith.mulf %725, %724 : vector<2x352xf32>
      %727 = arith.addf %703, %726 : vector<2x352xf32>
      %c91_363 = arith.constant 91 : index
      %728 = memref.load %arg2[%c91_363] : memref<98xf32, #tpu.memory_space<smem>>
      %c1_364 = arith.constant 1 : index
      %c0_365 = arith.constant 0 : index
      %c132_366 = arith.constant 132 : index
      %729 = vector.load %arg7[%c1_364, %c0_365, %c132_366] : memref<2x2x490xf32, #tpu.memory_space<vmem>>, vector<1x2x352xf32>
      %730 = vector.shape_cast %729 : vector<1x2x352xf32> to vector<2x352xf32>
      %731 = vector.broadcast %728 : f32 to vector<2x352xf32>
      %732 = arith.mulf %731, %730 : vector<2x352xf32>
      %733 = arith.addf %709, %732 : vector<2x352xf32>
      %c92_367 = arith.constant 92 : index
      %734 = memref.load %arg2[%c92_367] : memref<98xf32, #tpu.memory_space<smem>>
      %c1_368 = arith.constant 1 : index
      %c0_369 = arith.constant 0 : index
      %c133_370 = arith.constant 133 : index
      %735 = vector.load %arg7[%c1_368, %c0_369, %c133_370] : memref<2x2x490xf32, #tpu.memory_space<vmem>>, vector<1x2x352xf32>
      %736 = vector.shape_cast %735 : vector<1x2x352xf32> to vector<2x352xf32>
      %737 = vector.broadcast %734 : f32 to vector<2x352xf32>
      %738 = arith.mulf %737, %736 : vector<2x352xf32>
      %739 = arith.addf %715, %738 : vector<2x352xf32>
      %c93_371 = arith.constant 93 : index
      %740 = memref.load %arg2[%c93_371] : memref<98xf32, #tpu.memory_space<smem>>
      %c1_372 = arith.constant 1 : index
      %c0_373 = arith.constant 0 : index
      %c134_374 = arith.constant 134 : index
      %741 = vector.load %arg7[%c1_372, %c0_373, %c134_374] : memref<2x2x490xf32, #tpu.memory_space<vmem>>, vector<1x2x352xf32>
      %742 = vector.shape_cast %741 : vector<1x2x352xf32> to vector<2x352xf32>
      %743 = vector.broadcast %740 : f32 to vector<2x352xf32>
      %744 = arith.mulf %743, %742 : vector<2x352xf32>
      %745 = arith.addf %721, %744 : vector<2x352xf32>
      %c94_375 = arith.constant 94 : index
      %746 = memref.load %arg2[%c94_375] : memref<98xf32, #tpu.memory_space<smem>>
      %c1_376 = arith.constant 1 : index
      %c0_377 = arith.constant 0 : index
      %c135_378 = arith.constant 135 : index
      %747 = vector.load %arg7[%c1_376, %c0_377, %c135_378] : memref<2x2x490xf32, #tpu.memory_space<vmem>>, vector<1x2x352xf32>
      %748 = vector.shape_cast %747 : vector<1x2x352xf32> to vector<2x352xf32>
      %749 = vector.broadcast %746 : f32 to vector<2x352xf32>
      %750 = arith.mulf %749, %748 : vector<2x352xf32>
      %751 = arith.addf %727, %750 : vector<2x352xf32>
      %c95 = arith.constant 95 : index
      %752 = memref.load %arg2[%c95] : memref<98xf32, #tpu.memory_space<smem>>
      %c1_379 = arith.constant 1 : index
      %c0_380 = arith.constant 0 : index
      %c136_381 = arith.constant 136 : index
      %753 = vector.load %arg7[%c1_379, %c0_380, %c136_381] : memref<2x2x490xf32, #tpu.memory_space<vmem>>, vector<1x2x352xf32>
      %754 = vector.shape_cast %753 : vector<1x2x352xf32> to vector<2x352xf32>
      %755 = vector.broadcast %752 : f32 to vector<2x352xf32>
      %756 = arith.mulf %755, %754 : vector<2x352xf32>
      %757 = arith.addf %733, %756 : vector<2x352xf32>
      %c96 = arith.constant 96 : index
      %758 = memref.load %arg2[%c96] : memref<98xf32, #tpu.memory_space<smem>>
      %c1_382 = arith.constant 1 : index
      %c0_383 = arith.constant 0 : index
      %c137_384 = arith.constant 137 : index
      %759 = vector.load %arg7[%c1_382, %c0_383, %c137_384] : memref<2x2x490xf32, #tpu.memory_space<vmem>>, vector<1x2x352xf32>
      %760 = vector.shape_cast %759 : vector<1x2x352xf32> to vector<2x352xf32>
      %761 = vector.broadcast %758 : f32 to vector<2x352xf32>
      %762 = arith.mulf %761, %760 : vector<2x352xf32>
      %763 = arith.addf %739, %762 : vector<2x352xf32>
      %c97 = arith.constant 97 : index
      %764 = memref.load %arg2[%c97] : memref<98xf32, #tpu.memory_space<smem>>
      %c1_385 = arith.constant 1 : index
      %c0_386 = arith.constant 0 : index
      %c138_387 = arith.constant 138 : index
      %765 = vector.load %arg7[%c1_385, %c0_386, %c138_387] : memref<2x2x490xf32, #tpu.memory_space<vmem>>, vector<1x2x352xf32>
      %766 = vector.shape_cast %765 : vector<1x2x352xf32> to vector<2x352xf32>
      %767 = vector.broadcast %764 : f32 to vector<2x352xf32>
      %768 = arith.mulf %767, %766 : vector<2x352xf32>
      %769 = arith.addf %745, %768 : vector<2x352xf32>
      %770 = arith.addf %763, %769 : vector<2x352xf32>
      %771 = arith.addf %751, %757 : vector<2x352xf32>
      %772 = arith.addf %770, %771 : vector<2x352xf32>
      %773 = math.absf %772 : vector<2x352xf32>
      %cst_388 = arith.constant 0.000000e+00 : f32
      %774 = vector.broadcast %cst_388 : f32 to vector<2x352xf32>
      %775 = arith.subf %774, %773 : vector<2x352xf32>
      %776 = math.exp %775 : vector<2x352xf32>
      %cst_389 = arith.constant 0.000000e+00 : f32
      %777 = vector.broadcast %cst_389 : f32 to vector<2x352xf32>
      %778 = arith.cmpf oge, %772, %777 : vector<2x352xf32>
      %cst_390 = arith.constant 1.000000e+00 : f32
      %779 = vector.broadcast %cst_390 : f32 to vector<2x352xf32>
      %780 = arith.select %778, %779, %776 : vector<2x352xi1>, vector<2x352xf32>
      %cst_391 = arith.constant 1.000000e+00 : f32
      %781 = vector.broadcast %cst_391 : f32 to vector<2x352xf32>
      %782 = arith.addf %781, %776 : vector<2x352xf32>
      %783 = arith.divf %780, %782 : vector<2x352xf32>
      %c0_392 = arith.constant 0 : index
      %c0_393 = arith.constant 0 : index
      %784 = vector.load %arg4[%c0_392, %c0_393] : memref<2x352xf32, #tpu.memory_space<vmem>>, vector<2x352xf32>
      tpu.vector_store %arg4[%c0_392, %c0_393], %783 {strides = array<i32>} : memref<2x352xf32, #tpu.memory_space<vmem>>, vector<2x352xf32>,
    } else {
    }
    return
  }
  func.func @transform_0(%arg0: i32, %arg1: i32) -> i32 {
    %c0_i32 = arith.constant 0 : i32
    %c0_i32_0 = arith.constant 0 : i32
    return %c0_i32 : i32
  }
  func.func @transform_1(%arg0: i32, %arg1: i32) -> (i32, i32, i32, i32) {
    %c0_i32 = arith.constant 0 : i32
    %c0_i32_0 = arith.constant 0 : i32
    %c0_i32_1 = arith.constant 0 : i32
    return %arg0, %arg1, %c0_i32, %c0_i32_0 : i32, i32, i32, i32
  }
  func.func @transform_2(%arg0: i32, %arg1: i32) -> (i32, i32) {
    %c0_i32 = arith.constant 0 : i32
    %c0_i32_0 = arith.constant 0 : i32
    return %arg0, %c0_i32 : i32, i32
  }
}

</mosaic_0001>

<bundles_post_ra>
// kernel: tpu_custom_call.1
= control target key start
LH: loop header
LB: loop body
LE: loop exit
PB: predicated region body
PF: predicated region fallthrough
CT: control target
= control target key end

     0   :  { %7 = vsyncpa [#allocation8], 0  ;;  %s3336_s0 = inlined_call_operand.hbm [shape: f32[98], index: 0, kind: input, shape index: {}]   ;;  %s3337_s1 = inlined_call_operand.hbm [shape: f32[2,4,16,16], index: 1, kind: input, shape index: {}]   ;;  %s3338_s2 = inlined_call_operand.hbm [shape: f32[2,352], index: 2, kind: output, shape index: {}]  }
   0x1   :  { %8 = vsyncpa [#allocation6], 0 }
   0x2   :  { %10 = vsyncpa [#allocation6 + $0x1], 0 }
   0x3   :  { %11 = vsyncpa [#allocation7], 0  ;;  %s2405_s9 = smov 0   ;;  %s2407_s10 = smov 0  }
   0x4   :  { %s2409_s11 = smov 0   ;;  %s2411_s12 = smov 0  }
   0x5   :  { %s2413_s13 = smov 0   ;;  %s2415_s14 = smov 0  }
   0x6 LB: > { %s3345_s15 = sadd.s32 4294967295, %s2328_s14   ;;  %s26_s16 = sadd.s32 1, %s2324_s13  ;;  %s2328_s14 = sphi %s2415_s14, %s17_s14   ;;  %s2324_s13 = sphi %s2413_s13, %s3423_s13   ;;  %s2320_s12 = sphi %s2411_s12, %s3422_s12   ;;  %s2316_s11 = sphi %s2409_s11, %s3421_s11   ;;  %s2312_s10 = sphi %s2407_s10, %s3420_s10   ;;  %s2308_s9 = sphi %s2405_s9, %s3419_s9  }
   0x7   : > { %p27_p0 = scmp.ge.s32.totalorder %s26_s16, 2  ;;  %s59_s17 = sadd.s32 1, %s2316_s11 }
   0x8   : > { %p66_p1 = scmp.ne.s32.totalorder %s2316_s11, %s2312_s10  ;;  %p67_p2 = scmp.eq.s32.totalorder %s2328_s14, 0 }
   0x9   : > { %s3425_s16 = smov (%p27_p0, %s26_s16), 0  ;;  %p72_p4 = scmp.ne.s32.totalorder %s2312_s10, %s2308_s9 }
   0xa   : > { %p2441_p3 = por %p67_p2, %p66_p1  ;;  %s55_s19 = ssub.s32 %s2324_s13, %s3425_s16 }
   0xb   : > { %p2450_p5 = scmp.eq.s32.totalorder %s3345_s15, 0  ;;  %p57_p6 = scmp.eq.s32.totalorder %s55_s19, 0 }
   0xc   : > { %p1966_p7 = scmp.ge.s32.totalorder %s2328_s14, 1  ;;  %p109_p9 = scmp.lt.s32.totalorder %s2328_s14, 3 }
   0xd   : > { %p2457_p8 = por %p2450_p5, %p72_p4  ;;  %s2231_s26 = scalar_lea.hbm %s3336_s0, 16 }
   0xe   : > { %s2463_s22 = scalar_select %p57_p6, %s2316_s11, %s59_s17  }
   0xf   : > { %p2465_p10 = pnand %p1966_p7, %p109_p9  ;;  %p2232_p13 = scmp.ne.s32.totalorder %s3336_s0, %s2231_s26 }
  0x10   : > { %p2238_p4 = scmp.lt.u32.totalorder %s2231_s26, %s3336_s0 }
  0x11   : > { %p2101_p11 = pneg %p2465_p10 }
  0x13   : > { %p2102_p12 = pnand %p2101_p11, %p2450_p5 }
  0x15   : > { %p2233_p0 = pneg %p2102_p12 }
  0x17   : > { %p2234_p1 = pnand %p2233_p0, %p2232_p13 }
  0x19   : > { %p2235_p2 = pneg %p2234_p1 }
  0x1b   : > { %p2240_p6 = pnand %p2238_p4, %p2235_p2 }
  0x1d   : > { %2243 = shalt.err (!%p2240_p6)
}
  0x1e   : > { %s2330_s3 = smov [#allocation5]   ;;  %p1968_p7 = scmp.ge.s32.totalorder %s2328_s14, 2 }
  0x1f   : > { %2104 = dma.hbm_to_smem (!%p2102_p12), %s3336_s0, 16, %s2330_s3, [#allocation8]  }
  0x20   : > { %127 = sbr.rel (%p1968_p7) target bundleno = 52 (0x34), region = 20 }
  0x27   : > { %s131_s6 = sand.u32 1, %s2316_s11   ;;  %s2083_s7 = sshll.u32 %s2324_s13, 9 }
  0x28   : > { %s1969_s8 = sshll.u32 %s131_s6, 6  ;;  %s145_s19 = scalar_lea.hbm %s3337_s1, %s2083_s7 }
  0x29   : > { %s2086_s24 = scalar_select %p2441_p3, [#allocation0], [#allocation13] }
  0x2a   : > { %s135_s25 = scalar_lea.vmem [#allocation9], %s1969_s8  ;;  %s2331_s28 = smov 1024  }
  0x2b   : > { %s158_s26 = sshll.u32 %s135_s25, 4  ;;  %s150_s27 = sld [smem:[%s2086_s24]]   ;;  %s159_s26 = int_to_ptr.vmem [resolvable:$true] %s158_s26 }
  0x2c   : > { %2087 = sst [smem:[#allocation12]] (%p2441_p3), %s2331_s28  ;;  %s2332_s29 = smov 512  }
  0x2d   : > { %2088 = sst [smem:[#allocation12 + $0x1]] (%p2441_p3), %s2332_s29  ;;  %s2333_s30 = smov 4  }
  0x2e   : > { %2089 = sst [smem:[#allocation12 + $0x2]] (%p2441_p3), %s2333_s30  ;;  %s2334_s3 = smov 128  }
  0x2f   : > { %2090 = sst [smem:[#allocation12 + $0x3]] (%p2441_p3), %s2334_s3  ;;  %s2335_s5 = smov 8  }
  0x30   : > { %2091 = sst [smem:[#allocation12 + $0x4]] (%p2441_p3), %s2334_s3  ;;  %s132_s8 = scalar_lea.sflag [#allocation6], %s131_s6 }
  0x31   : > { %s1973_s4 = sshll.u32 %s150_s27, 26  ;;  %2092 = sst [smem:[#allocation12 + $0x5]] (%p2441_p3), %s2335_s5 }
  0x32   : > { %s1974_s7 = sadd.s32 134217728, %s1973_s4  ;;  %s2336_s9 = smov [#allocation11]  }
  0x33   : > { %2093 = dma.general (%p2441_p3), %s145_s19, 1024, %s159_s26, %s132_s8, %s2336_s9, [#allocation12], %s1974_s7, 0  }
  0x34 PF: > { %183 = sbr.rel (%p2465_p10) target bundleno = 773 (0x305), region = 28 }
  0x3b   : > { %2295 = dma.done.wait (%p2450_p5), [#allocation8], 16  }
  0x3c   : > { %2297 = vsyncadd (%p2450_p5), [#allocation8], 4294967280  ;;  %s189_s17 = sand.u32 1, %s2312_s10  }
  0x3d   : > { %s1977_s24 = sshll.u32 %s189_s17, 6  ;;  %s190_s25 = scalar_lea.sflag [#allocation6], %s189_s17 }
  0x3e   : > { %s193_s27 = scalar_lea.vmem [#allocation9], %s1977_s24 }
  0x3f   : > { %2299 = dma.done.wait (%p2457_p8), %s190_s25, 1024  }
  0x40   : > { %2301 = vsyncadd (%p2457_p8), %s190_s25, 4294966272 }
  0x41   : > { %198 = sfence }
  0x42   : > { %v212_v0 = vld [vmem:[%s193_s27] sm:$0xff]  ;;  %v213_v1 = vld [vmem:[%s193_s27 + $0x8] sm:$0xff]  ;;  %v214_v2 = vld [vmem:[%s193_s27 + $0x10] sm:$0xff]  ;;  %vm220_vm0 = vcmask 130048   ;;  %p1978_p3 = scmp.ne.s32.totalorder %s2320_s12, 0 }
  0x43   : > { %v215_v3 = vld [vmem:[%s193_s27 + $0x18] sm:$0xff]  ;;  %v216_v4 = vld [vmem:[%s193_s27 + $0x20] sm:$0xff]  ;;  %v217_v5 = vld [vmem:[%s193_s27 + $0x28] sm:$0xff]  ;;  %v221_v6 = vsel %vm220_vm0, %v212_v0, 0.0  ;;  %v222_v7 = vsel %vm220_vm0, %v214_v2, 0.0  ;;  %v224_v8 = vsel %vm220_vm0, %v213_v1, 0.0 }
  0x44   : > { %v218_v9 = vld [vmem:[%s193_s27 + $0x30] sm:$0xff]  ;;  %v219_v10 = vld [vmem:[%s193_s27 + $0x38] sm:$0xff]  ;;  %v223_v11 = vadd.f32 %v222_v7, %v221_v6  ;;  %v225_v12 = vsel %vm220_vm0, %v215_v3, 0.0  ;;  %v227_v13 = vsel %vm220_vm0, %v216_v4, 0.0  ;;  %v230_v14 = vsel %vm220_vm0, %v217_v5, 0.0  ;;  %248 = sbr.rel (%p1978_p3) target bundleno = 76 (0x4c), region = 40 }
  0x45   : > { %v226_v15 = vadd.f32 %v225_v12, %v224_v8  ;;  %v228_v16 = vsel %vm220_vm0, %v218_v9, 0.0  ;;  %v231_v17 = vsel %vm220_vm0, %v219_v10, 0.0  ;;  %v233_v18 = vsel %vm220_vm0, %v212_v0, -inf }
  0x46   : > { %v229_v19 = vadd.f32 %v228_v16, %v227_v13  ;;  %v232_v20 = vadd.f32 %v231_v17, %v230_v14  ;;  %v234_v21 = vsel %vm220_vm0, %v214_v2, -inf  ;;  %v236_v22 = vsel %vm220_vm0, %v213_v1, -inf  ;;  %249 = vst.msk [vmem:[#allocation2] sm:$0xff] (!%p1978_p3), %vm220_vm0, %v223_v11 }
  0x47   : > { %v235_v23 = vmax.f32 %v233_v18, %v234_v21  ;;  %v237_v24 = vsel %vm220_vm0, %v215_v3, -inf  ;;  %v239_v25 = vsel %vm220_vm0, %v216_v4, -inf  ;;  %v240_v26 = vsel %vm220_vm0, %v218_v9, -inf  ;;  %250 = vst.msk [vmem:[#allocation2 + $0x8] sm:$0xff] (!%p1978_p3), %vm220_vm0, %v226_v15 }
  0x48   : > { %v238_v27 = vmax.f32 %v236_v22, %v237_v24  ;;  %v241_v28 = vmax.f32 %v239_v25, %v240_v26  ;;  %v242_v29 = vsel %vm220_vm0, %v217_v5, -inf  ;;  %v243_v30 = vsel %vm220_vm0, %v219_v10, -inf  ;;  %251 = vst.msk [vmem:[#allocation2 + $0x10] sm:$0xff] (!%p1978_p3), %vm220_vm0, %v229_v19  ;;  %252 = vst.msk [vmem:[#allocation2 + $0x18] sm:$0xff] (!%p1978_p3), %vm220_vm0, %v232_v20 }
  0x49   : > { %v244_v31 = vmax.f32 %v242_v29, %v243_v30  ;;  %253 = vst.msk [vmem:[#allocation3] sm:$0xff] (!%p1978_p3), %vm220_vm0, %v235_v23 }
  0x4a   : > { %254 = vst.msk [vmem:[#allocation3 + $0x8] sm:$0xff] (!%p1978_p3), %vm220_vm0, %v238_v27  ;;  %255 = vst.msk [vmem:[#allocation3 + $0x10] sm:$0xff] (!%p1978_p3), %vm220_vm0, %v241_v28 }
  0x4b   : > { %256 = vst.msk [vmem:[#allocation3 + $0x18] sm:$0xff] %vm220_vm0, %v244_v31 }
  0x4c PF: > { %p1979_p5 = scmp.le.s32.totalorder %s2320_s12, 0 }
  0x4e   : > { %260 = sbr.rel (%p1979_p5) target bundleno = 87 (0x57), region = 44  ;;  %v261_v32 = vld [vmem:[#allocation2] sm:$0xff] (!%p1979_p5) }
  0x4f   : > { %v262_v33 = vld [vmem:[#allocation2 + $0x8] sm:$0xff] (!%p1979_p5)  ;;  %v265_v35 = vadd.f32 (!%p1979_p5), %v261_v32, %v223_v11 }
  0x50   : > { %v263_v34 = vld [vmem:[#allocation2 + $0x10] sm:$0xff] (!%p1979_p5)  ;;  %v266_v36 = vadd.f32 (!%p1979_p5), %v262_v33, %v226_v15  ;;  %v264_v38 = vld [vmem:[#allocation2 + $0x18] sm:$0xff] (!%p1979_p5) }
  0x51   : > { %v267_v37 = vadd.f32 (!%p1979_p5), %v263_v34, %v229_v19  ;;  %v273_v39 = vld [vmem:[#allocation3] sm:$0xff] (!%p1979_p5)  ;;  %v268_v41 = vadd.f32 (!%p1979_p5), %v264_v38, %v232_v20  ;;  %269 = vst.msk [vmem:[#allocation2] sm:$0xff] (!%p1979_p5), %vm220_vm0, %v265_v35 }
  0x52   : > { %v274_v40 = vld [vmem:[#allocation3 + $0x8] sm:$0xff] (!%p1979_p5)  ;;  %v277_v42 = vmax.f32 (!%p1979_p5), %v273_v39, %v235_v23  ;;  %v275_v44 = vld [vmem:[#allocation3 + $0x10] sm:$0xff] (!%p1979_p5)  ;;  %v276_v45 = vld [vmem:[#allocation3 + $0x18] sm:$0xff] (!%p1979_p5)  ;;  %270 = vst.msk [vmem:[#allocation2 + $0x8] sm:$0xff] (!%p1979_p5), %vm220_vm0, %v266_v36 }
  0x53   : > { %v278_v43 = vmax.f32 (!%p1979_p5), %v274_v40, %v238_v27  ;;  %271 = vst.msk [vmem:[#allocation2 + $0x10] sm:$0xff] (!%p1979_p5), %vm220_vm0, %v267_v37  ;;  %v279_v46 = vmax.f32 (!%p1979_p5), %v275_v44, %v241_v28  ;;  %v280_v47 = vmax.f32 (!%p1979_p5), %v276_v45, %v244_v31  ;;  %272 = vst.msk [vmem:[#allocation2 + $0x18] sm:$0xff] (!%p1979_p5), %vm220_vm0, %v268_v41 }
  0x54   : > { %281 = vst.msk [vmem:[#allocation3] sm:$0xff] (!%p1979_p5), %vm220_vm0, %v277_v42 }
  0x55   : > { %282 = vst.msk [vmem:[#allocation3 + $0x8] sm:$0xff] %vm220_vm0, %v278_v43  ;;  %283 = vst.msk [vmem:[#allocation3 + $0x10] sm:$0xff] %vm220_vm0, %v279_v46 }
  0x56   : > { %284 = vst.msk [vmem:[#allocation3 + $0x18] sm:$0xff] %vm220_vm0, %v280_v47 }
  0x57 PF: > { %p1980_p8 = scmp.ne.s32.totalorder %s2320_s12, 1 }
  0x58   : > { %v315_v50 = vlaneseq (!%p1980_p8)  ;;  %v2337_v53 = vmov (!%p1980_p8), 1983009808   ;;  %vm331_vm1 = vcmask (!%p1980_p8), 1041409   ;;  %vm333_vm2 = vcmask (!%p1980_p8), 1043459   ;;  %s2339_s12 = smov (!%p1980_p8), 69   ;;  %s2340_s18 = smov (!%p1980_p8), 91  }
  0x59   : > { %288 = sbr.rel (%p1980_p8) target bundleno = 748 (0x2ec), region = 48  ;;  %v313_v54 = vunpack.c.l.s4 (!%p1980_p8), %v2337_v53  ;;  %vm335_vm3 = vcmask (!%p1980_p8), 1045509   ;;  %vm337_vm4 = vcmask (!%p1980_p8), 1047559   ;;  %vm301_vm5 = vcmask (!%p1980_p8), 1041408   ;;  %s2341_s20 = smov (!%p1980_p8), 29  }
  0x5a   : > { %v289_v48 = vld [vmem:[#allocation2] sm:$0xff] (!%p1980_p8)  ;;  %v316_v56 = vshrl.u32 (!%p1980_p8), %v315_v50, 7  ;;  %vm302_vm6 = vcmask (!%p1980_p8), 1043458   ;;  %vm304_vm7 = vcmask (!%p1980_p8), 1045508   ;;  %vm306_vm8 = vcmask (!%p1980_p8), 867334   ;;  %s2342_s21 = smov (!%p1980_p8), 51  }
  0x5b   : > { %v293_v51 = vmul.f32 (!%p1980_p8), 0.25, %v289_v48  ;;  %v290_v55 = vld [vmem:[#allocation2 + $0x8] sm:$0xff] (!%p1980_p8)  ;;  %v314_v58 = vunpack.c.0.s8 (!%p1980_p8), %v313_v54  ;;  %vm2561_vm9 = vmor (!%p1980_p8), %vm302_vm6, %vm301_vm5  ;;  %v2338_v18 = vmov (!%p1980_p8), 0.0   ;;  %s2343_s23 = smov (!%p1980_p8), 117   ;;  %s2344_s6 = smov (!%p1980_p8), 11   ;;  %vm342_vm12 = vcmask (!%p1980_p8), 689704  }
  0x5c   : > { %v291_v49 = vld [vmem:[#allocation2 + $0x10] sm:$0xff] (!%p1980_p8)  ;;  %v292_v57 = vld [vmem:[#allocation2 + $0x18] sm:$0xff] (!%p1980_p8)  ;;  %v2553_v62 = vmul.f32 (!%p1980_p8), 0.25, %v290_v55  ;;  %vm305_vm10 = vmor (!%p1980_p8), %vm304_vm7, %vm2561_vm9  ;;  %s2345_s19 = smov (!%p1980_p8), 113   ;;  %s2346_s26 = smov (!%p1980_p8), 7   ;;  %vm382_vm13 = vcmask (!%p1980_p8), 870104  }
  0x5d   : > { %v295_v52 = vmul.f32 (!%p1980_p8), 0.25, %v291_v49  ;;  %v452_v59 = vcombine.high (!%p1980_p8), %v293_v51, %v293_v51  ;;  %v296_v61 = vmul.f32 (!%p1980_p8), 0.25, %v292_v57  ;;  %v2555_v63 = vsub.s32 (!%p1980_p8), %v314_v58, %v316_v56  ;;  %vm307_vm11 = vmor (!%p1980_p8), %vm306_vm8, %vm305_vm10  ;;  %s2347_s28 = smov (!%p1980_p8), 95   ;;  %s2348_s29 = smov (!%p1980_p8), 73  }
  0x5e   : > { %v715_v8 = vcombine.high (!%p1980_p8), %v2553_v62, %v2553_v62  ;;  %308 = vst.msk [vmem:[#allocation4] sm:$0xff] (!%p1980_p8), %vm307_vm11, %v2338_v18  ;;  %309 = vst.msk [vmem:[#allocation4 + $0x8] sm:$0xff] (!%p1980_p8), %vm307_vm11, %v2338_v18  ;;  %s2349_s30 = smov (!%p1980_p8), 33   ;;  %s2350_s3 = smov (!%p1980_p8), 55   ;;  %vm410_vm14 = vcmask (!%p1980_p8), 1042312   ;;  %vm411_vm15 = vcmask (!%p1980_p8), 3074  }
  0x5f   : > { %v460_v60 = vcombine.high (!%p1980_p8), %v295_v52, %v295_v52  ;;  %v723_v0 = vcombine.high (!%p1980_p8), %v296_v61, %v296_v61  ;;  %v318_v1 = vrot.slane (!%p1980_p8), %v293_v51, %v2555_v63  ;;  %v325_v2 = vrot.slane (!%p1980_p8), %v295_v52, %v2555_v63  ;;  %s2351_s4 = smov (!%p1980_p8), 121   ;;  %s2352_s5 = smov (!%p1980_p8), 77  }
  0x60   : > { %v459_v3 = vrot.slane %v452_v59, %v2555_v63  ;;  %v588_v6 = vrot.slane %v2553_v62, %v2555_v63  ;;  %v595_v7 = vrot.slane %v296_v61, %v2555_v63  ;;  %v722_v52 = vrot.slane %v715_v8, %v2555_v63  ;;  %s2353_s7 = smov 99   ;;  %s2354_s8 = smov 15  }
  0x61   : > { %v467_v4 = vrot.slane %v460_v60, %v2555_v63  ;;  %v2571_v9 = vrot.slane %v723_v0, %v2555_v63  ;;  %v330_v10 = vrot.slane %v325_v2, 7  ;;  %v372_v11 = vrot.slane %v318_v1, 1  ;;  %s1991_s9 = sld [smem:[#allocation5 + $0xb]]  ;;  %s1987_s17 = sld [smem:[#allocation5 + $0x7]] }
  0x62   : > { %v507_v13 = vrot.slane %v459_v3, 1  ;;  %v598_v14 = vrot.slane %v595_v7, 7  ;;  %v642_v15 = vrot.slane %v588_v6, 1  ;;  %v395_v16 = vcombine.high %v318_v1, %v318_v1  ;;  %s3346_s24 = smov 105   ;;  %s2356_s25 = smov 109  }
  0x63   : > { %v470_v12 = vrot.slane %v467_v4, 7  ;;  %v2576_v17 = vcombine.high %v325_v2, %v325_v2  ;;  %v332_v19 = vsel %vm331_vm1, %v330_v10, %v318_v1  ;;  %v375_v20 = vsel %vm331_vm1, %v325_v2, %v372_v11  ;;  %s2035_s27 = sld [smem:[#allocation5 + $0x37]] }
  0x64   : > { %v510_v22 = vsel %vm331_vm1, %v467_v4, %v507_v13  ;;  %v334_v23 = vsel %vm333_vm2, %v330_v10, %v332_v19  ;;  %v376_v24 = vsel %vm333_vm2, %v325_v2, %v375_v20  ;;  %v599_v35 = vsel %vm331_vm1, %v598_v14, %v588_v6  ;;  %v297_v13 = vld [vmem:[#allocation3] sm:$0xff]  ;;  %s2075_s15 = sld [smem:[#allocation5 + $0x5f]] }
  0x65   : > { %v471_v21 = vsel %vm331_vm1, %v470_v12, %v459_v3  ;;  %v511_v26 = vsel %vm333_vm2, %v467_v4, %v510_v22  ;;  %v336_v27 = vsel %vm335_vm3, %v330_v10, %v334_v23  ;;  %v377_v28 = vsel %vm335_vm3, %v325_v2, %v376_v24 }
  0x66   : > { %v472_v25 = vsel %vm333_vm2, %v470_v12, %v471_v21  ;;  %v512_v30 = vsel %vm335_vm3, %v467_v4, %v511_v26  ;;  %v338_v31 = vsel %vm337_vm4, %v330_v10, %v336_v27  ;;  %v378_v32 = vsel %vm337_vm4, %v325_v2, %v377_v28 }
  0x67   : > { %v473_v29 = vsel %vm335_vm3, %v470_v12, %v472_v25  ;;  %v513_v34 = vsel %vm337_vm4, %v467_v4, %v512_v30  ;;  %339 = vrot.lane.b32.xlu0 %v338_v31, %s2339_s12  ;;  %379 = vrot.lane.b32.xlu1 %v378_v32, %s2340_s18  ;;  %v645_v36 = vsel %vm331_vm1, %v595_v7, %v642_v15  ;;  %v399_v37 = vrot.slane %v2576_v17, 7 }
  0x68   : > { %v474_v33 = vsel %vm337_vm4, %v470_v12, %v473_v29  ;;  %v429_v38 = vrot.slane %v395_v16, 1  ;;  %v600_v39 = vsel %vm333_vm2, %v598_v14, %v599_v35  ;;  %v646_v40 = vsel %vm333_vm2, %v595_v7, %v645_v36 }
  0x69   : > { %v530_v41 = vcombine.high %v459_v3, %v459_v3  ;;  %v531_v42 = vcombine.high %v467_v4, %v467_v4  ;;  %v601_v43 = vsel %vm335_vm3, %v598_v14, %v600_v39  ;;  %v647_v44 = vsel %vm335_vm3, %v595_v7, %v646_v40 }
  0x6a   : > { %v400_v45 = vsel %vm331_vm1, %v399_v37, %v395_v16  ;;  %v432_v46 = vsel %vm331_vm1, %v2576_v17, %v429_v38  ;;  %v602_v49 = vsel %vm337_vm4, %v598_v14, %v601_v43  ;;  %v648_v53 = vsel %vm337_vm4, %v595_v7, %v647_v44  ;;  %v299_v16 = vld [vmem:[#allocation3 + $0x10] sm:$0xff] }
  0x6b   : > { %v401_v47 = vsel %vm333_vm2, %v399_v37, %v400_v45  ;;  %v433_v48 = vsel %vm333_vm2, %v2576_v17, %v432_v46  ;;  %475 = vrot.lane.b32.xlu0 %v474_v33, %s2341_s20  ;;  %514 = vrot.lane.b32.xlu1 %v513_v34, %s2342_s21  ;;  %v557_v50 = vrot.slane %v530_v41, 1  ;;  %v534_v51 = vrot.slane %v531_v42, 7 }
  0x6c   : > { %v402_v54 = vsel %vm335_vm3, %v399_v37, %v401_v47  ;;  %v665_v55 = vcombine.high %v588_v6, %v588_v6  ;;  %v666_v56 = vcombine.high %v595_v7, %v595_v7  ;;  %v434_v57 = vsel %vm335_vm3, %v2576_v17, %v433_v48 }
  0x6d   : > { %v560_v58 = vsel %vm331_vm1, %v531_v42, %v557_v50  ;;  %v535_v59 = vsel %vm331_vm1, %v534_v51, %v530_v41  ;;  %v2621_v60 = vcombine.high %v2571_v9, %v2571_v9  ;;  %v793_v2 = vcombine.high %v722_v52, %v722_v52 }
  0x6e   : > { %v561_v61 = vsel %vm333_vm2, %v531_v42, %v560_v58  ;;  %v536_v62 = vsel %vm333_vm2, %v534_v51, %v535_v59  ;;  %v669_v0 = vrot.slane %v666_v56, 7  ;;  %v692_v1 = vrot.slane %v665_v55, 1 }
  0x6f   : > { %603 = vrot.lane.b32.xlu0 %v602_v49, %s2343_s23  ;;  %649 = vrot.lane.b32.xlu1 %v648_v53, %s2344_s6  ;;  %v797_v3 = vrot.slane %v2621_v60, 7  ;;  %v733_v4 = vrot.slane %v2571_v9, 7  ;;  %v403_v6 = vsel %vm337_vm4, %v399_v37, %v402_v54  ;;  %v435_v7 = vsel %vm337_vm4, %v2576_v17, %v434_v57 }
  0x70   : > { %v670_v8 = vsel %vm331_vm1, %v669_v0, %v665_v55  ;;  %v695_v10 = vsel %vm331_vm1, %v666_v56, %v692_v1  ;;  %v562_v11 = vsel %vm335_vm3, %v531_v42, %v561_v61  ;;  %v537_v12 = vsel %vm335_vm3, %v534_v51, %v536_v62  ;;  %v298_v61 = vld [vmem:[#allocation3 + $0x8] sm:$0xff] }
  0x71   : > { %v671_v14 = vsel %vm333_vm2, %v669_v0, %v670_v8  ;;  %v696_v15 = vsel %vm333_vm2, %v666_v56, %v695_v10  ;;  %v798_v17 = vsel %vm331_vm1, %v797_v3, %v793_v2  ;;  %v734_v18 = vsel %vm331_vm1, %v733_v4, %v722_v52 }
  0x72   : > { %v770_v19 = vrot.slane %v722_v52, 1  ;;  %v563_v20 = vsel %vm337_vm4, %v531_v42, %v562_v11  ;;  %v538_v21 = vsel %vm337_vm4, %v534_v51, %v537_v12  ;;  %v827_v22 = vrot.slane %v793_v2, 1  ;;  %v300_v51 = vld [vmem:[#allocation3 + $0x18] sm:$0xff] }
  0x73   : > { %404 = vrot.lane.b32.xlu0 %v403_v6, %s2345_s19  ;;  %436 = vrot.lane.b32.xlu1 %v435_v7, %s2346_s26  ;;  %v352_v23 = vrot.slane %v297_v13, %v2555_v63  ;;  %v672_v24 = vsel %vm335_vm3, %v669_v0, %v671_v14  ;;  %v697_v25 = vsel %vm335_vm3, %v666_v56, %v696_v15  ;;  %vm407_vm0 = vcmask 924672  }
  0x74   : > { %v2648_v26 = vrot.slane %v299_v16, %v2555_v63  ;;  %v480_v27 = vcombine.high %v297_v13, %v297_v13  ;;  %v799_v28 = vsel %vm333_vm2, %v797_v3, %v798_v17  ;;  %v735_v29 = vsel %vm333_vm2, %v733_v4, %v734_v18 }
  0x75   : > { %v773_v30 = vsel %vm331_vm1, %v2571_v9, %v770_v19  ;;  %v488_v31 = vcombine.high %v299_v16, %v299_v16  ;;  %v830_v32 = vsel %vm331_vm1, %v2621_v60, %v827_v22  ;;  %v414_v33 = vcombine.high %v352_v23, %v352_v23 }
  0x76   : > { %v2660_v34 = vcombine.high %v2648_v26, %v2648_v26  ;;  %v362_v35 = vrot.slane %v2648_v26, 7  ;;  %v673_v36 = vsel %vm337_vm4, %v669_v0, %v672_v24  ;;  %v698_v37 = vsel %vm337_vm4, %v666_v56, %v697_v25 }
  0x77   : > { %564 = vrot.lane.b32.xlu0 %v563_v20, %s2347_s28  ;;  %539 = vrot.lane.b32.xlu1 %v538_v21, %s2348_s29  ;;  %v800_v38 = vsel %vm335_vm3, %v797_v3, %v799_v28  ;;  %v736_v39 = vsel %vm335_vm3, %v733_v4, %v735_v29  ;;  %v774_v41 = vsel %vm333_vm2, %v2571_v9, %v773_v30  ;;  %v384_v43 = vrot.slane %v352_v23, 1 }
  0x78   : > { %v418_v40 = vrot.slane %v2660_v34, 7  ;;  %v831_v42 = vsel %vm333_vm2, %v2621_v60, %v830_v32  ;;  %v487_v44 = vrot.slane %v480_v27, %v2555_v63  ;;  %v363_v46 = vsel %vm331_vm1, %v362_v35, %v352_v23 }
  0x79   : > { %v441_v47 = vrot.slane %v414_v33, 1  ;;  %v2678_v48 = vrot.slane %v488_v31, %v2555_v63  ;;  %v801_v49 = vsel %vm337_vm4, %v797_v3, %v800_v38  ;;  %v737_v50 = vsel %vm337_vm4, %v733_v4, %v736_v39 }
  0x7a   : > { %v419_v45 = vsel %vm331_vm1, %v418_v40, %v414_v33  ;;  %v775_v52 = vsel %vm335_vm3, %v2571_v9, %v774_v41  ;;  %v832_v53 = vsel %vm335_vm3, %v2621_v60, %v831_v42  ;;  %v364_v55 = vsel %vm333_vm2, %v362_v35, %v363_v46 }
  0x7b   : > { %674 = vrot.lane.b32.xlu0 %v673_v36, %s2349_s30  ;;  %699 = vrot.lane.b32.xlu1 %v698_v37, %s2350_s3  ;;  %v420_v54 = vsel %vm333_vm2, %v418_v40, %v419_v45  ;;  %v519_v56 = vrot.slane %v487_v44, 1  ;;  %v387_v57 = vsel %vm331_vm1, %v2648_v26, %v384_v43  ;;  %v444_v58 = vsel %vm331_vm1, %v2660_v34, %v441_v47 }
  0x7c   : > { %v498_v59 = vrot.slane %v2678_v48, 7  ;;  %v2696_v62 = vrot.slane %v300_v51, %v2555_v63  ;;  %v776_v0 = vsel %vm337_vm4, %v2571_v9, %v775_v52  ;;  %v833_v1 = vsel %vm337_vm4, %v2621_v60, %v832_v53 }
  0x7d   : > { %v421_v2 = vsel %vm335_vm3, %v418_v40, %v420_v54  ;;  %v365_v3 = vsel %vm335_vm3, %v362_v35, %v364_v55  ;;  %v751_v4 = vcombine.high %v300_v51, %v300_v51  ;;  %v2706_v6 = vcombine.high %v2678_v48, %v2678_v48 }
  0x7e   : > { %v388_v7 = vsel %vm333_vm2, %v2648_v26, %v387_v57  ;;  %v445_v8 = vsel %vm333_vm2, %v2660_v34, %v444_v58  ;;  %v522_v9 = vsel %vm331_vm1, %v2678_v48, %v519_v56  ;;  %v621_v60 = vrot.slane %v298_v61, %v2555_v63 }
  0x7f   : > { %802 = vrot.lane.b32.xlu0 %v801_v49, %s2351_s4  ;;  %738 = vrot.lane.b32.xlu1 %v737_v50, %s2352_s5  ;;  %v499_v10 = vsel %vm331_vm1, %v498_v59, %v487_v44  ;;  %v631_v11 = vrot.slane %v2696_v62, 7  ;;  %v544_v12 = vcombine.high %v487_v44, %v487_v44  ;;  %v548_v13 = vrot.slane %v2706_v6, 7 }
  0x80   : > { %v422_v14 = vsel %vm337_vm4, %v418_v40, %v421_v2  ;;  %v366_v15 = vsel %vm337_vm4, %v362_v35, %v365_v3  ;;  %v389_v16 = vsel %vm335_vm3, %v2648_v26, %v388_v7  ;;  %v446_v17 = vsel %vm335_vm3, %v2660_v34, %v445_v8 }
  0x81   : > { %v523_v18 = vsel %vm333_vm2, %v2678_v48, %v522_v9  ;;  %v743_v19 = vcombine.high %v298_v61, %v298_v61  ;;  %v500_v20 = vsel %vm333_vm2, %v498_v59, %v499_v10  ;;  %v2730_v21 = vrot.slane %v751_v4, %v2555_v63 }
  0x82   : > { %v654_v22 = vrot.slane %v621_v60, 1  ;;  %v679_v23 = vcombine.high %v621_v60, %v621_v60  ;;  %v632_v24 = vsel %vm331_vm1, %v631_v11, %v621_v60  ;;  %v549_v25 = vsel %vm331_vm1, %v548_v13, %v544_v12 }
  0x83   : > { %777 = vrot.lane.b32.xlu0 %v776_v0, %s2353_s7  ;;  %834 = vrot.lane.b32.xlu1 %v833_v1, %s2354_s8  ;;  %v569_v27 = vrot.slane %v544_v12, 1  ;;  %v680_v28 = vcombine.high %v2696_v62, %v2696_v62  ;;  %v390_v29 = vsel %vm337_vm4, %v2648_v26, %v389_v16  ;;  %v447_v30 = vsel %vm337_vm4, %v2660_v34, %v446_v17 }
  0x84   : > { %v501_v31 = vsel %vm335_vm3, %v498_v59, %v500_v20  ;;  %v524_v32 = vsel %vm335_vm3, %v2678_v48, %v523_v18  ;;  %v633_v33 = vsel %vm333_vm2, %v631_v11, %v632_v24  ;;  %v750_v35 = vrot.slane %v743_v19, %v2555_v63 }
  0x85   : > { %v550_v36 = vsel %vm333_vm2, %v548_v13, %v549_v25  ;;  %v657_v37 = vsel %vm331_vm1, %v2696_v62, %v654_v22  ;;  %v572_v26 = vsel %vm331_vm1, %v2706_v6, %v569_v27  ;;  %v683_v34 = vrot.slane %v680_v28, 7 }
  0x86   : > { %v704_v38 = vrot.slane %v679_v23, 1  ;;  %v813_v39 = vcombine.high %v2730_v21, %v2730_v21  ;;  %v502_v40 = vsel %vm337_vm4, %v498_v59, %v501_v31  ;;  %v525_v63 = vsel %vm337_vm4, %v2678_v48, %v524_v32 }
  0x87   : > { %423 = vrot.lane.b32.xlu0 %v422_v14, %s2345_s19  ;;  %367 = vrot.lane.b32.xlu1 %v366_v15, %s2339_s12  ;;  %v634_v41 = vsel %vm335_vm3, %v631_v11, %v633_v33  ;;  %v551_v42 = vsel %vm335_vm3, %v548_v13, %v550_v36  ;;  %v573_v43 = vsel %vm333_vm2, %v2706_v6, %v572_v26  ;;  %v761_v49 = vrot.slane %v2730_v21, 7  ;;  %s2031_s12 = sld [smem:[#allocation5 + $0x33]]  ;;  %s2030_s19 = sld [smem:[#allocation5 + $0x32]] }
  0x88   : > { %v658_v44 = vsel %vm333_vm2, %v2696_v62, %v657_v37  ;;  %v812_v45 = vcombine.high %v750_v35, %v750_v35  ;;  %v684_v46 = vsel %vm331_vm1, %v683_v34, %v679_v23  ;;  %v707_v47 = vsel %vm331_vm1, %v680_v28, %v704_v38 }
  0x89   : > { %v816_v48 = vrot.slane %v813_v39, 7  ;;  %v635_v50 = vsel %vm337_vm4, %v631_v11, %v634_v41  ;;  %v552_v51 = vsel %vm337_vm4, %v548_v13, %v551_v42  ;;  %v574_v52 = vsel %vm335_vm3, %v2706_v6, %v573_v43 }
  0x8a   : > { %v659_v53 = vsel %vm335_vm3, %v2696_v62, %v658_v44  ;;  %v685_v54 = vsel %vm333_vm2, %v683_v34, %v684_v46  ;;  %v708_v55 = vsel %vm333_vm2, %v680_v28, %v707_v47  ;;  %v762_v57 = vsel %vm331_vm1, %v761_v49, %v750_v35 }
  0x8b   : > { %391 = vrot.lane.b32.xlu0 %v390_v29, %s2340_s18  ;;  %448 = vrot.lane.b32.xlu1 %v447_v30, %s2346_s26  ;;  %v817_v56 = vsel %vm331_vm1, %v816_v48, %v812_v45  ;;  %v782_v58 = vrot.slane %v750_v35, 1  ;;  %v839_v59 = vrot.slane %v812_v45, 1  ;;  %v575_v61 = vsel %vm337_vm4, %v2706_v6, %v574_v52  ;;  %s1986_s18 = sld [smem:[#allocation5 + $0x6]]  ;;  %s2357_s26 = smov 125  }
  0x8c   : > { %v660_v0 = vsel %vm337_vm4, %v2696_v62, %v659_v53  ;;  %v686_v1 = vsel %vm335_vm3, %v683_v34, %v685_v54  ;;  %v709_v2 = vsel %vm335_vm3, %v680_v28, %v708_v55  ;;  %v818_v3 = vsel %vm333_vm2, %v816_v48, %v817_v56 }
  0x8d   : > { %v763_v4 = vsel %vm333_vm2, %v761_v49, %v762_v57  ;;  %v785_v7 = vsel %vm331_vm1, %v2730_v21, %v782_v58  ;;  %v842_v6 = vsel %vm331_vm1, %v813_v39, %v839_v59  ;;  %v687_v8 = vsel %vm337_vm4, %v683_v34, %v686_v1  ;;  %vm2818_vm1 = vmor %vm411_vm15, %vm410_vm14 }
  0x8e   : > { %v710_v62 = vsel %vm337_vm4, %v680_v28, %v709_v2  ;;  %v819_v9 = vsel %vm335_vm3, %v816_v48, %v818_v3  ;;  %v764_v60 = vsel %vm335_vm3, %v761_v49, %v763_v4  ;;  %v786_v10 = vsel %vm333_vm2, %v2730_v21, %v785_v7 }
  0x8f   : > { %503 = vrot.lane.b32.xlu0 %v502_v40, %s2341_s20  ;;  %526 = vrot.lane.b32.xlu1 %v525_v63, %s2342_s21  ;;  %v843_v11 = vsel %vm333_vm2, %v813_v39, %v842_v6  ;;  %v820_v12 = vsel %vm337_vm4, %v816_v48, %v819_v9  ;;  %v765_v13 = vsel %vm337_vm4, %v761_v49, %v764_v60  ;;  %vm439_vm2 = vcmask 181304   ;;  %s2039_s20 = sld [smem:[#allocation5 + $0x3b]]  ;;  %s1990_s21 = sld [smem:[#allocation5 + $0xa]] }
  0x90   : > { %v787_v14 = vsel %vm335_vm3, %v2730_v21, %v786_v10  ;;  %v844_v15 = vsel %vm335_vm3, %v813_v39, %v843_v11  ;;  %vm3339_vm3 = vcmask 361704   ;;  %vm609_vm5 = vcmask 1042344  }
  0x91   : > { %v788_v16 = vsel %vm337_vm4, %v2730_v21, %v787_v14  ;;  %v845_v17 = vsel %vm337_vm4, %v813_v39, %v844_v15  ;;  %vm3343_vm4 = vcmask 542104   ;;  %vm610_vm6 = vcmask 35842  }
  0x92   : > { %vm3340_vm7 = vcmask 722504   ;;  %vm3341_vm8 = vcmask 957440   ;;  %vm3342_vm10 = vcmask 902904   ;;  %vm2828_vm11 = vmor %vm610_vm6, %vm609_vm5  ;;  %vm3344_vm14 = vcmask 214104  }
  0x93   : > { %636 = vrot.lane.b32.xlu0 %v635_v50, %s2343_s23  ;;  %553 = vrot.lane.b32.xlu1 %v552_v51, %s2348_s29  ;;  %vm677_vm15 = vcmask 394504   ;;  %vm741_vm5 = vcmask 755304   ;;  %vm808_vm6 = vcmask 1042376   ;;  %v941_v45 = vstv %s1991_s9  ;;  %s1985_s23 = sld [smem:[#allocation5 + $0x5]] }
  0x94   : > { %v899_v46 = vstv %s1987_s17  ;;  %v1359_v9 = vstv %s2031_s12  ;;  %s1993_s29 = sld [smem:[#allocation5 + $0xd]]  ;;  %s2019_s17 = sld [smem:[#allocation5 + $0x27]] }
  0x95   : > { %s2033_s9 = sld [smem:[#allocation5 + $0x35]]  ;;  %s2362_s12 = smov 86  }
  0x97   : > { %576 = vrot.lane.b32.xlu0 %v575_v61, %s2347_s28  ;;  %661 = vrot.lane.b32.xlu1 %v660_v0, %s2344_s6  ;;  %s1989_s6 = sld [smem:[#allocation5 + $0x9]]  ;;  %s2358_s28 = smov 1  }
  0x9b   : > { %688 = vrot.lane.b32.xlu0 %v687_v8, %s2349_s30  ;;  %711 = vrot.lane.b32.xlu1 %v710_v62, %s2350_s3  ;;  %v1400_v62 = vstv %s2035_s27  ;;  %s1995_s30 = sld [smem:[#allocation5 + $0xf]]  ;;  %s3348_s3 = smov 124  }
  0x9c   : > { %s3347_s27 = smov 101  }
  0x9f   : > { %821 = vrot.lane.b32.xlu0 %v820_v12, %s2351_s4  ;;  %766 = vrot.lane.b32.xlu1 %v765_v13, %s2352_s5  ;;  %v889_v12 = vstv %s1986_s18  ;;  %v1441_v13 = vstv %s2039_s20  ;;  %s3357_s4 = smov 106   ;;  %s2003_s5 = sld [smem:[#allocation5 + $0x17]] }
  0xa0   : > { %s2027_s18 = sld [smem:[#allocation5 + $0x2f]]  ;;  %s2007_s20 = sld [smem:[#allocation5 + $0x1b]] }
  0xa3   : > { %789 = vrot.lane.b32.xlu0 %v788_v16, %s2353_s7  ;;  %846 = vrot.lane.b32.xlu1 %v845_v17, %s2354_s8  ;;  %v931_v16 = vstv %s1990_s21  ;;  %v879_v17 = vstv %s1985_s23  ;;  %s2029_s7 = sld [smem:[#allocation5 + $0x31]]  ;;  %s2011_s8 = sld [smem:[#allocation5 + $0x1f]] }
  0xa4   : > { %s2363_s21 = smov 63   ;;  %s2015_s23 = sld [smem:[#allocation5 + $0x23]] }
  0xd9   : > { %v340_v18 = vpop.permute.xlu0 %339  ;;  %v380_v19 = vpop.permute.xlu1 %379 }
  0xda   : > { %343 = vst.msk [vmem:[#allocation4] sm:$0x3] %vm342_vm12, %v340_v18 }
  0xdb   : > { %383 = vst.msk [vmem:[#allocation4] sm:$0x3] %vm382_vm13, %v380_v19 }
  0xdd   : > { %v476_v20 = vpop.permute.xlu0 %475  ;;  %v515_v22 = vpop.permute.xlu1 %514 }
  0xe1   : > { %v604_v23 = vpop.permute.xlu0 %603  ;;  %v650_v24 = vpop.permute.xlu1 %649 }
  0xe2   : > { %v605_v32 = vrot.slane %v604_v23, 6 }
  0xe4   : > { %v607_v37 = vsel %vm3341_vm8, %v605_v32, %v604_v23  ;;  %vm805_vm8 = vcmask 990208  }
  0xe5   : > { %v405_v21 = vpop.permute.xlu0 %404  ;;  %v437_v25 = vpop.permute.xlu1 %436 }
  0xe6   : > { %v406_v27 = vrot.slane %v405_v21, 6 }
  0xe8   : > { %v408_v29 = vsel %vm407_vm0, %v406_v27, %v405_v21  ;;  %v984_v27 = vstv %s1995_s30  ;;  %s2365_s30 = smov 17  }
  0xe9   : > { %413 = vst.msk [vmem:[#allocation4] sm:$0xf] %vm2818_vm1, %v408_v29  ;;  %v565_v30 = vpop.permute.xlu0 %564  ;;  %v540_v31 = vpop.permute.xlu1 %539 }
  0xea   : > { %440 = vst.msk [vmem:[#allocation4 + $0x2] sm:$0x3] %vm439_vm2, %v437_v25  ;;  %v962_v25 = vstv %s1993_s29  ;;  %s2051_s29 = sld [smem:[#allocation5 + $0x47]] }
  0xeb   : > { %479 = vst.msk [vmem:[#allocation4 + $0x2] sm:$0x3] %vm3339_vm3, %v476_v20  ;;  %vm702_vm3 = vcmask 574904   ;;  %v921_v20 = vstv %s1989_s6  ;;  %s2043_s6 = sld [smem:[#allocation5 + $0x3f]] }
  0xec   : > { %518 = vst.msk [vmem:[#allocation4 + $0x2] sm:$0x3] %vm3343_vm4, %v515_v22  ;;  %v1349_v22 = vstv %s2030_s19  ;;  %s2364_s19 = smov 40  }
  0xed   : > { %543 = vst.msk [vmem:[#allocation4 + $0x2] sm:$0x3] %vm3340_vm7, %v540_v31  ;;  %v675_v35 = vpop.permute.xlu0 %674  ;;  %v700_v36 = vpop.permute.xlu1 %699  ;;  %vm809_vm7 = vcmask 68610   ;;  %v1338_v31 = vstv %s2029_s7  ;;  %s2047_s7 = sld [smem:[#allocation5 + $0x43]] }
  0xee   : > { %568 = vst.msk [vmem:[#allocation4 + $0x2] sm:$0x3] %vm3342_vm10, %v565_v30  ;;  %vm780_vm10 = vcmask 935704   ;;  %vm2841_vm4 = vmor %vm809_vm7, %vm808_vm6  ;;  %vm3390_vm7 = vcmask 214104   ;;  %v1067_v30 = vstv %s2003_s5  ;;  %s2366_s5 = smov 82   ;;  %vm3365_vm6 = vcmask 482304  }
  0xef   : > { %612 = vst.msk [vmem:[#allocation4 + $0x2] sm:$0xf] %vm2828_vm11, %v607_v37 }
  0xf0   : > { %653 = vst.msk [vmem:[#allocation4 + $0x4] sm:$0x3] %vm3344_vm14, %v650_v24  ;;  %vm837_vm14 = vcmask 246904  }
  0xf1   : > { %678 = vst.msk [vmem:[#allocation4 + $0x4] sm:$0x3] %vm677_vm15, %v675_v35  ;;  %v803_v26 = vpop.permute.xlu0 %802  ;;  %v739_v34 = vpop.permute.xlu1 %738  ;;  %v1149_v35 = vstv %s2011_s8  ;;  %s2059_s8 = sld [smem:[#allocation5 + $0x4f]] }
  0xf2   : > { %703 = vst.msk [vmem:[#allocation4 + $0x4] sm:$0x3] %vm702_vm3, %v700_v36  ;;  %v804_v38 = vrot.slane %v803_v26, 6  ;;  %v1380_v36 = vstv %s2033_s9  ;;  %s2367_s9 = smov 122  }
  0xf3   : > { %742 = vst.msk [vmem:[#allocation4 + $0x4] sm:$0x3] %vm741_vm5, %v739_v34  ;;  %v1232_v34 = vstv %s2019_s17  ;;  %s2368_s17 = smov 59  }
  0xf4   : > { %v806_v41 = vsel %vm805_vm8, %v804_v38, %v803_v26 }
  0xf5   : > { %v778_v40 = vpop.permute.xlu0 %777  ;;  %v835_v63 = vpop.permute.xlu1 %834 }
  0xf6   : > { %781 = vst.msk [vmem:[#allocation4 + $0x4] sm:$0x3] %vm780_vm10, %v778_v40 }
  0xf7   : > { %811 = vst.msk [vmem:[#allocation4 + $0x4] sm:$0xf] %vm2841_vm4, %v806_v41  ;;  %v1316_v41 = vstv %s2027_s18  ;;  %s2067_s18 = sld [smem:[#allocation5 + $0x57]] }
  0xf8   : > { %838 = vst.msk [vmem:[#allocation4 + $0x6] sm:$0x3] %vm837_vm14, %v835_v63 }
  0xf9   : > { %v424_v42 = vpop.permute.xlu0 %423  ;;  %v368_v43 = vpop.permute.xlu1 %367 }
  0xfa   : > { %v425_v44 = vrot.slane %v424_v42, 6  ;;  %371 = vst.msk [vmem:[#allocation4 + $0x8] sm:$0x3] %vm342_vm12, %v368_v43  ;;  %vm3385_vm12 = vcmask 361704  }
  0xfc   : > { %v426_v50 = vsel %vm407_vm0, %v425_v44, %v424_v42  ;;  %vm3386_vm0 = vcmask 542104   ;;  %v1108_v42 = vstv %s2007_s20  ;;  %s2369_s20 = smov 21  }
  0xfd   : > { %v392_v47 = vpop.permute.xlu0 %391  ;;  %v449_v48 = vpop.permute.xlu1 %448 }
  0xfe   : > { %v2851_v49 = vld [vmem:[#allocation4] sm:$0x3f]  ;;  %394 = vst.msk [vmem:[#allocation4 + $0x8] sm:$0x3] %vm382_vm13, %v392_v47  ;;  %vm3387_vm13 = vcmask 722504   ;;  %v1483_v47 = vstv %s2043_s6  ;;  %s2063_s6 = sld [smem:[#allocation5 + $0x53]] }
  0xff   : > { %428 = vst.msk [vmem:[#allocation4 + $0x8] sm:$0xf] %vm2818_vm1, %v426_v50  ;;  %v942_v51 = vmul.f32 %v941_v45, %v2851_v49  ;;  %v900_v52 = vmul.f32 %v899_v46, %v2851_v49  ;;  %vm3388_vm1 = vcmask 957440   ;;  %v890_v14 = vmul.f32 %v889_v12, %v2851_v49  ;;  %v2893_v21 = vld [vmem:[#allocation4] sm:$0xff] }
 0x100   : > { %451 = vst.msk [vmem:[#allocation4 + $0xa] sm:$0x3] %vm439_vm2, %v449_v48  ;;  %vm3389_vm2 = vcmask 902904   ;;  %v932_v18 = vmul.f32 %v931_v16, %v2851_v49  ;;  %v880_v19 = vmul.f32 %v879_v17, %v2851_v49  ;;  %v922_v23 = vmul.f32 %v921_v20, %v2851_v49  ;;  %v2911_v63 = vld [vmem:[#allocation4 + $0x2] sm:$0x3f] }
 0x101   : > { %944 = vrot.lane.b32.xlu1 %v942_v51, %s3346_s24  ;;  %902 = vrot.lane.b32.xlu0 %v900_v52, %s2356_s25  ;;  %v504_v53 = vpop.permute.xlu0 %503  ;;  %v527_v54 = vpop.permute.xlu1 %526  ;;  %v963_v28 = vmul.f32 %v962_v25, %v2851_v49  ;;  %v985_v29 = vmul.f32 %v984_v27, %v2893_v21  ;;  %s1999_s25 = sld [smem:[#allocation5 + $0x13]]  ;;  %v1068_v32 = vmul.f32 %v1067_v30, %v2893_v21  ;;  %v1190_v46 = vstv %s2015_s23  ;;  %s2370_s23 = smov 87  }
 0x102   : > { %506 = vst.msk [vmem:[#allocation4 + $0xa] sm:$0x3] %vm3385_vm12, %v504_v53  ;;  %v1150_v37 = vmul.f32 %v1149_v35, %v2893_v21  ;;  %v1233_v39 = vmul.f32 %v1232_v34, %v2893_v21  ;;  %v1317_v43 = vmul.f32 %v1316_v41, %v2911_v63  ;;  %v1109_v44 = vmul.f32 %v1108_v42, %v2893_v21 }
 0x103   : > { %529 = vst.msk [vmem:[#allocation4 + $0xa] sm:$0x3] %vm3386_vm0, %v527_v54  ;;  %v1191_v48 = vmul.f32 %v1190_v46, %v2893_v21  ;;  %v1567_v52 = vstv %s2051_s29  ;;  %s1994_s29 = sld [smem:[#allocation5 + $0xe]]  ;;  %vm1124_vm12 = vcmask 326656   ;;  %vm1196_vm0 = vcmask 171008  }
 0x105   : > { %v637_v55 = vpop.permute.xlu0 %636  ;;  %v554_v56 = vpop.permute.xlu1 %553 }
 0x106   : > { %v638_v57 = vrot.slane %v637_v55, 6  ;;  %556 = vst.msk [vmem:[#allocation4 + $0xa] sm:$0x3] %vm3387_vm13, %v554_v56  ;;  %v1650_v56 = vstv %s2059_s8  ;;  %s1997_s8 = sld [smem:[#allocation5 + $0x11]]  ;;  %vm3370_vm13 = vcmask 138240  }
 0x107   : > { %v1025_v38 = vstv %s1999_s25  ;;  %s2055_s25 = sld [smem:[#allocation5 + $0x4b]] }
 0x108   : > { %v639_v61 = vsel %vm3388_vm1, %v638_v57, %v637_v55  ;;  %v1026_v40 = vmul.f32 %v1025_v38, %v2893_v21  ;;  %v1525_v55 = vstv %s2047_s7  ;;  %s3349_s7 = smov 41   ;;  %vm3366_vm1 = vcmask 1031168  }
 0x109   : > { %v577_v58 = vpop.permute.xlu0 %576  ;;  %v662_v59 = vpop.permute.xlu1 %661 }
 0x10a   : > { %579 = vst.msk [vmem:[#allocation4 + $0xa] sm:$0x3] %vm3389_vm2, %v577_v58  ;;  %vm3367_vm2 = vcmask 998400  }
 0x10b   : > { %641 = vst.msk [vmem:[#allocation4 + $0xa] sm:$0xf] %vm2828_vm11, %v639_v61  ;;  %v1732_v61 = vstv %s2067_s18  ;;  %s3351_s18 = smov 18   ;;  %vm905_vm11 = vcmask 891904  }
 0x10c   : > { %664 = vst.msk [vmem:[#allocation4 + $0xc] sm:$0x3] %vm3390_vm7, %v662_v59  ;;  %vm1375_vm7 = vcmask 1022976  }
 0x10d   : > { %v689_v0 = vpop.permute.xlu0 %688  ;;  %v712_v1 = vpop.permute.xlu1 %711  ;;  %v1608_v59 = vstv %s2055_s25  ;;  %s3354_s25 = smov 60  }
 0x10e   : > { %691 = vst.msk [vmem:[#allocation4 + $0xc] sm:$0x3] %vm677_vm15, %v689_v0  ;;  %vm1000_vm15 = vcmask 670720  }
 0x10f   : > { %714 = vst.msk [vmem:[#allocation4 + $0xc] sm:$0x3] %vm702_vm3, %v712_v1  ;;  %vm3362_vm3 = vcmask 1014784  }
 0x111   : > { %v822_v2 = vpop.permute.xlu0 %821  ;;  %v767_v3 = vpop.permute.xlu1 %766 }
 0x112   : > { %v823_v4 = vrot.slane %v822_v2, 6  ;;  %769 = vst.msk [vmem:[#allocation4 + $0xc] sm:$0x3] %vm741_vm5, %v767_v3  ;;  %vm1052_vm5 = vcmask 515072  }
 0x114   : > { %v824_v8 = vsel %vm805_vm8, %v823_v4, %v822_v2  ;;  %v1691_v2 = vstv %s2063_s6  ;;  %v1816_v4 = vstv %s2075_s15  ;;  %s2377_s6 = smov 37   ;;  %s2378_s15 = smov 123   ;;  %vm1344_vm8 = vcmask 7168  }
 0x115   : > { %v790_v7 = vpop.permute.xlu0 %789  ;;  %v847_v6 = vpop.permute.xlu1 %846 }
 0x116   : > { %792 = vst.msk [vmem:[#allocation4 + $0xc] sm:$0x3] %vm780_vm10, %v790_v7  ;;  %vm3360_vm10 = vcmask 826368  }
 0x117   : > { %826 = vst.msk [vmem:[#allocation4 + $0xc] sm:$0xf] %vm2841_vm4, %v824_v8  ;;  %vm3361_vm4 = vcmask 859136  }
 0x118   : > { %849 = vst.msk [vmem:[#allocation4 + $0xe] sm:$0x3] %vm837_vm14, %v847_v6  ;;  %vm979_vm14 = vcmask 703488  }
 0x11e   : > { %v2877_v60 = vld [vmem:[#allocation4 + $0x8] sm:$0x3f] }
 0x11f   : > { %v1401_v10 = vmul.f32 %v1400_v62, %v2877_v60  ;;  %v1360_v11 = vmul.f32 %v1359_v9, %v2877_v60  ;;  %v1442_v15 = vmul.f32 %v1441_v13, %v2877_v60  ;;  %v1350_v24 = vmul.f32 %v1349_v22, %v2877_v60  ;;  %v2917_v45 = vld [vmem:[#allocation4 + $0x8] sm:$0xff] }
 0x120   : > { %v1339_v33 = vmul.f32 %v1338_v31, %v2877_v60  ;;  %v1381_v26 = vmul.f32 %v1380_v36, %v2877_v60  ;;  %v1484_v50 = vmul.f32 %v1483_v47, %v2917_v45  ;;  %v1568_v54 = vmul.f32 %v1567_v52, %v2917_v45  ;;  %v2933_v3 = vld [vmem:[#allocation4 + $0xa] sm:$0x3f] }
 0x121   : > { %1403 = vrot.lane.b32.xlu0 %v1401_v10, %s2357_s26  ;;  %1362 = vrot.lane.b32.xlu1 %v1360_v11, %s2358_s28  ;;  %v1526_v57 = vmul.f32 %v1525_v55, %v2917_v45  ;;  %v1651_v58 = vmul.f32 %v1650_v56, %v2917_v45  ;;  %v1609_v0 = vmul.f32 %v1608_v59, %v2917_v45  ;;  %v973_v62 = vstv %s1994_s29  ;;  %s2010_s29 = sld [smem:[#allocation5 + $0x1e]] }
 0x122   : > { %v1733_v1 = vmul.f32 %v1732_v61, %v2917_v45  ;;  %v1692_v7 = vmul.f32 %v1691_v2, %v2917_v45  ;;  %v1817_v6 = vmul.f32 %v1816_v4, %v2933_v3  ;;  %v974_v10 = vmul.f32 %v973_v62, %v2893_v21 }
 0x123   : > { %v1005_v11 = vstv %s1997_s8  ;;  %s2013_s8 = sld [smem:[#allocation5 + $0x21]] }
 0x124   : > { %v1006_v13 = vmul.f32 %v1005_v11, %v2893_v21 }
 0x125   : > { %892 = vrot.lane.b32.xlu0 %v890_v14, %s3348_s3  ;;  %1444 = vrot.lane.b32.xlu1 %v1442_v15, %s3357_s4 }
 0x127   : > { %v1139_v25 = vstv %s2010_s29  ;;  %s2037_s29 = sld [smem:[#allocation5 + $0x39]] }
 0x129   : > { %934 = vrot.lane.b32.xlu0 %v932_v18, %s3346_s24  ;;  %882 = vrot.lane.b32.xlu1 %v880_v19, %s3348_s3  ;;  %s2001_s3 = sld [smem:[#allocation5 + $0x15]] }
 0x12d   : > { %924 = vrot.lane.b32.xlu1 %v922_v23, %s3346_s24  ;;  %1352 = vrot.lane.b32.xlu0 %v1350_v24, %s2358_s28  ;;  %s3356_s24 = smov 126  }
 0x12f   : > { %v1046_v15 = vstv %s2001_s3  ;;  %s2017_s3 = sld [smem:[#allocation5 + $0x25]] }
 0x130   : > { %v1047_v17 = vmul.f32 %v1046_v15, %v2893_v21 }
 0x131   : > { %965 = vrot.lane.b32.xlu1 %v963_v28, %s3347_s27  ;;  %987 = vrot.lane.b32.xlu0 %v985_v29, %s2362_s12  ;;  %s3353_s27 = smov 64   ;;  %v1140_v28 = vmul.f32 %v1139_v25, %v2893_v21  ;;  %v1170_v29 = vstv %s2013_s8  ;;  %s2034_s8 = sld [smem:[#allocation5 + $0x36]] }
 0x132   : > { %v1171_v31 = vmul.f32 %v1170_v29, %v2893_v21 }
 0x135   : > { %1070 = vrot.lane.b32.xlu0 %v1068_v32, %s2363_s21  ;;  %1341 = vrot.lane.b32.xlu1 %v1339_v33, %s2358_s28  ;;  %s2023_s28 = sld [smem:[#allocation5 + $0x2b]]  ;;  %v1212_v33 = vstv %s2017_s3  ;;  %s2038_s3 = sld [smem:[#allocation5 + $0x3a]] }
 0x136   : > { %v1213_v36 = vmul.f32 %v1212_v33, %v2893_v21 }
 0x137   : > { %v1390_v46 = vstv %s2034_s8  ;;  %s2050_s8 = sld [smem:[#allocation5 + $0x46]] }
 0x139   : > { %1152 = vrot.lane.b32.xlu0 %v1150_v37, %s2364_s19  ;;  %1383 = vrot.lane.b32.xlu1 %v1381_v26, %s2357_s26 }
 0x13b   : > { %v1275_v51 = vstv %s2023_s28  ;;  %s2071_s28 = sld [smem:[#allocation5 + $0x5b]] }
 0x13c   : > { %v1276_v53 = vmul.f32 %v1275_v51, %v2911_v63  ;;  %v1431_v51 = vstv %s2038_s3  ;;  %s2054_s3 = sld [smem:[#allocation5 + $0x4a]] }
 0x13d   : > { %1235 = vrot.lane.b32.xlu0 %v1233_v39, %s2365_s30  ;;  %1028 = vrot.lane.b32.xlu1 %v1026_v40, %s2366_s5  ;;  %v1556_v2 = vstv %s2050_s8  ;;  %s3005_s8 = sld [smem:[#allocation5 + $0x59]] }
 0x141   : > { %1319 = vrot.lane.b32.xlu0 %v1317_v43, %s2367_s9  ;;  %1111 = vrot.lane.b32.xlu1 %v1109_v44, %s2368_s17  ;;  %v1774_v8 = vstv %s2071_s28  ;;  %s2009_s28 = sld [smem:[#allocation5 + $0x1d]]  ;;  %v1421_v44 = vstv %s2037_s29  ;;  %s2053_s29 = sld [smem:[#allocation5 + $0x49]] }
 0x142   : > { %v1775_v9 = vmul.f32 %v1774_v8, %v2933_v3  ;;  %v1422_v47 = vmul.f32 %v1421_v44, %v2877_v60  ;;  %v1598_v8 = vstv %s2054_s3  ;;  %s3393_s3 = smov 41  }
 0x143   : > { %v1599_v11 = vmul.f32 %v1598_v8, %v2917_v45 }
 0x145   : > { %1193 = vrot.lane.b32.xlu1 %v1191_v48, %s2369_s20  ;;  %1486 = vrot.lane.b32.xlu0 %v1484_v50, %s2370_s23  ;;  %s2373_s20 = smov 83   ;;  %s1998_s23 = sld [smem:[#allocation5 + $0x12]]  ;;  %v1391_v48 = vmul.f32 %v1390_v46, %v2877_v60 }
 0x147   : > { %v1129_v24 = vstv %s2009_s28  ;;  %s3359_s28 = smov 36  }
 0x148   : > { %v1130_v27 = vmul.f32 %v1129_v24, %v2893_v21 }
 0x149   : > { %1278 = vrot.lane.b32.xlu1 %v1276_v53, %s3356_s24  ;;  %1570 = vrot.lane.b32.xlu0 %v1568_v54, %s3353_s27  ;;  %s2006_s27 = sld [smem:[#allocation5 + $0x1a]]  ;;  %v1432_v53 = vmul.f32 %v1431_v51, %v2877_v60 }
 0x14b   : > { %v1015_v12 = vstv %s1998_s23  ;;  %s2025_s23 = sld [smem:[#allocation5 + $0x2d]] }
 0x14c   : > { %v1016_v14 = vmul.f32 %v1015_v12, %v2893_v21 }
 0x14d   : > { %1528 = vrot.lane.b32.xlu1 %v1526_v57, %s2373_s20  ;;  %1653 = vrot.lane.b32.xlu0 %v1651_v58, %s3349_s7  ;;  %s2002_s7 = sld [smem:[#allocation5 + $0x16]] }
 0x14f   : > { %v1098_v20 = vstv %s2006_s27  ;;  %s2021_s27 = sld [smem:[#allocation5 + $0x29]] }
 0x150   : > { %v1099_v23 = vmul.f32 %v1098_v20, %v2893_v21 }
 0x151   : > { %1611 = vrot.lane.b32.xlu1 %v1609_v0, %s3354_s25  ;;  %1735 = vrot.lane.b32.xlu0 %v1733_v1, %s3351_s18  ;;  %s2005_s18 = sld [smem:[#allocation5 + $0x19]]  ;;  %s2379_s25 = smov 127   ;;  %v1296_v40 = vstv %s2025_s23  ;;  %v1588_v1 = vstv %s2053_s29 }
 0x152   : > { %v1297_v42 = vmul.f32 %v1296_v40, %v2911_v63  ;;  %s2049_s23 = sld [smem:[#allocation5 + $0x45]]  ;;  %v1589_v4 = vmul.f32 %v1588_v1, %v2917_v45  ;;  %s2997_s29 = sld [smem:[#allocation5 + $0x2]] }
 0x153   : > { %v1057_v16 = vstv %s2002_s7  ;;  %s2018_s7 = sld [smem:[#allocation5 + $0x26]] }
 0x154   : > { %v1058_v18 = vmul.f32 %v1057_v16, %v2893_v21 }
 0x155   : > { %1694 = vrot.lane.b32.xlu1 %v1692_v7, %s2377_s6  ;;  %1819 = vrot.lane.b32.xlu0 %v1817_v6, %s2378_s15  ;;  %v1253_v26 = vstv %s2021_s27  ;;  %s2045_s27 = sld [smem:[#allocation5 + $0x41]]  ;;  %v1557_v7 = vmul.f32 %v1556_v2, %v2917_v45 }
 0x156   : > { %v1254_v38 = vmul.f32 %v1253_v26, %v2893_v21 }
 0x157   : > { %v1088_v19 = vstv %s2005_s18  ;;  %s2026_s18 = sld [smem:[#allocation5 + $0x2e]] }
 0x158   : > { %v1089_v22 = vmul.f32 %v1088_v19, %v2893_v21  ;;  %v1546_v58 = vstv %s2049_s23  ;;  %s2065_s23 = sld [smem:[#allocation5 + $0x55]]  ;;  %v860_v20 = vstv %s2997_s29  ;;  %s3394_s29 = smov 18  }
 0x159   : > { %1777 = vrot.lane.b32.xlu1 %v1775_v9, %s2379_s25  ;;  %976 = vrot.lane.b32.xlu0 %v974_v10, %s2362_s12  ;;  %s2014_s12 = sld [smem:[#allocation5 + $0x22]]  ;;  %v1222_v35 = vstv %s2018_s7  ;;  %s3358_s7 = smov 13   ;;  %v1547_v61 = vmul.f32 %v1546_v58, %v2917_v45 }
 0x15a   : > { %v1223_v37 = vmul.f32 %v1222_v35, %v2893_v21 }
 0x15b   : > { %v1505_v54 = vstv %s2045_s27  ;;  %s2061_s27 = sld [smem:[#allocation5 + $0x51]] }
 0x15c   : > { %v1506_v56 = vmul.f32 %v1505_v54, %v2917_v45 }
 0x15d   : > { %1008 = vrot.lane.b32.xlu1 %v1006_v13, %s2366_s5  ;;  %1018 = vrot.lane.b32.xlu0 %v1016_v14, %s2366_s5  ;;  %v1306_v41 = vstv %s2026_s18  ;;  %s2046_s18 = sld [smem:[#allocation5 + $0x42]] }
 0x15e   : > { %v1307_v43 = vmul.f32 %v1306_v41, %v2911_v63 }
 0x15f   : > { %v1180_v30 = vstv %s2014_s12  ;;  %s2041_s12 = sld [smem:[#allocation5 + $0x3d]] }
 0x160   : > { %v1181_v32 = vmul.f32 %v1180_v30, %v2893_v21  ;;  %v861_v30 = vmul.f32 %v860_v20, %v2851_v49 }
 0x161   : > { %1049 = vrot.lane.b32.xlu1 %v1047_v17, %s2363_s21  ;;  %1060 = vrot.lane.b32.xlu0 %v1058_v18, %s2363_s21  ;;  %s2022_s21 = sld [smem:[#allocation5 + $0x2a]]  ;;  %v1671_v12 = vstv %s2061_s27  ;;  %v1712_v18 = vstv %s2065_s23  ;;  %s3019_s27 = sld [smem:[#allocation5 + $0x5d]] }
 0x162   : > { %v1672_v16 = vmul.f32 %v1671_v12, %v2917_v45  ;;  %v1713_v24 = vmul.f32 %v1712_v18, %v2917_v45  ;;  %s3032_s23 = sld [smem:[#allocation5 + $0x61]] }
 0x163   : > { %v1515_v59 = vstv %s2046_s18  ;;  %s2062_s18 = sld [smem:[#allocation5 + $0x52]] }
 0x164   : > { %v1516_v0 = vmul.f32 %v1515_v59, %v2917_v45 }
 0x165   : > { %1091 = vrot.lane.b32.xlu1 %v1089_v22, %s2368_s17  ;;  %1101 = vrot.lane.b32.xlu0 %v1099_v23, %s2368_s17  ;;  %v1462_v50 = vstv %s2041_s12  ;;  %s2057_s12 = sld [smem:[#allocation5 + $0x4d]] }
 0x166   : > { %v1463_v52 = vmul.f32 %v1462_v50, %v2877_v60 }
 0x167   : > { %v1264_v34 = vstv %s2022_s21  ;;  %s2042_s21 = sld [smem:[#allocation5 + $0x3e]] }
 0x168   : > { %v1265_v39 = vmul.f32 %v1264_v34, %v2911_v63  ;;  %v1837_v54 = vstv %s3032_s23  ;;  %s3083_s23 = sld [smem:[#allocation5 + $0x1c]] }
 0x169   : > { %1132 = vrot.lane.b32.xlu1 %v1130_v27, %s2364_s19  ;;  %1142 = vrot.lane.b32.xlu0 %v1140_v28, %s2364_s19  ;;  %v1681_v19 = vstv %s2062_s18  ;;  %v1753_v28 = vstv %s3005_s8  ;;  %s3034_s18 = sld [smem:[#allocation5 + $0x5e]]  ;;  %s3045_s8 = sld [smem:[#allocation5 + $0x4]] }
 0x16a   : > { %v1682_v25 = vmul.f32 %v1681_v19, %v2917_v45 }
 0x16b   : > { %v1629_v6 = vstv %s2057_s12  ;;  %s3007_s12 = sld [smem:[#allocation5 + $0x56]] }
 0x16c   : > { %v1630_v10 = vmul.f32 %v1629_v6, %v2917_v45 }
 0x16d   : > { %1173 = vrot.lane.b32.xlu1 %v1171_v31, %s3359_s28  ;;  %1183 = vrot.lane.b32.xlu0 %v1181_v32, %s3359_s28  ;;  %v1472_v55 = vstv %s2042_s21  ;;  %s2058_s21 = sld [smem:[#allocation5 + $0x4e]]  ;;  %s3392_s28 = smov 64  }
 0x16e   : > { %v1473_v57 = vmul.f32 %v1472_v55, %v2877_v60 }
 0x16f   : > { %v1806_v55 = vstv %s3034_s18  ;;  %s3395_s18 = smov 124  }
 0x170   : > { %v1807_v1 = vmul.f32 %v1806_v55, %v2933_v3 }
 0x171   : > { %1215 = vrot.lane.b32.xlu1 %v1213_v36, %s2365_s30  ;;  %1225 = vrot.lane.b32.xlu0 %v1223_v37, %s2365_s30  ;;  %v1722_v29 = vstv %s3007_s12  ;;  %v1754_v37 = vmul.f32 %v1753_v28, %v2917_v45  ;;  %s2384_s12 = smov 14  }
 0x172   : > { %v1723_v26 = vmul.f32 %v1722_v29, %v2917_v45 }
 0x173   : > { %v2999_v62 = vpop.permute.xlu1 %944  ;;  %v3001_v9 = vpop.permute.xlu0 %902  ;;  %v1640_v13 = vstv %s2058_s21  ;;  %s3021_s21 = sld [smem:[#allocation5 + $0x5a]] }
 0x174   : > { %v1641_v17 = vmul.f32 %v1640_v13, %v2917_v45  ;;  %v904_v2 = vrot.slane %v3001_v9, 2  ;;  %v946_v20 = vrot.slane %v2999_v62, 2 }
 0x175   : > { %1256 = vrot.lane.b32.xlu1 %v1254_v38, %s3358_s7  ;;  %1267 = vrot.lane.b32.xlu0 %v1265_v39, %s3356_s24  ;;  %s2382_s24 = smov 102   ;;  %s3391_s7 = smov 60   ;;  %v1796_v39 = vstv %s3019_s27 }
 0x176   : > { %v1797_v50 = vmul.f32 %v1796_v39, %v2933_v3  ;;  %s3072_s27 = sld [smem:[#allocation5 + $0x14]] }
 0x179   : > { %1299 = vrot.lane.b32.xlu1 %v1297_v42, %s2367_s9  ;;  %1309 = vrot.lane.b32.xlu0 %v1307_v43, %s2367_s9  ;;  %v1763_v40 = vstv %s3021_s21  ;;  %s2385_s21 = smov 119  }
 0x17a   : > { %v1764_v51 = vmul.f32 %v1763_v40, %v2917_v45 }
 0x17c   : > { %v1035_v29 = vstv %s3072_s27  ;;  %s2386_s27 = smov 78  }
 0x17d   : > { %1424 = vrot.lane.b32.xlu1 %v1422_v47, %s3357_s4  ;;  %1393 = vrot.lane.b32.xlu0 %v1391_v48, %s2357_s26 }
 0x181   : > { %1465 = vrot.lane.b32.xlu1 %v1463_v52, %s2382_s24  ;;  %1434 = vrot.lane.b32.xlu0 %v1432_v53, %s3357_s4  ;;  %s2383_s4 = smov 79  }
 0x185   : > { %1508 = vrot.lane.b32.xlu1 %v1506_v56, %s2373_s20  ;;  %1475 = vrot.lane.b32.xlu0 %v1473_v57, %s2382_s24 }
 0x189   : > { %1549 = vrot.lane.b32.xlu1 %v1547_v61, %s2383_s4  ;;  %1518 = vrot.lane.b32.xlu0 %v1516_v0, %s2373_s20  ;;  %v1838_v0 = vmul.f32 %v1837_v54, %v2933_v3 }
 0x18d   : > { %1591 = vrot.lane.b32.xlu1 %v1589_v4, %s3391_s7  ;;  %1559 = vrot.lane.b32.xlu0 %v1557_v7, %s3392_s28  ;;  %s3011_s28 = sld [smem:[#allocation5 + $0x1]]  ;;  %v868_v7 = vstv %s3045_s8  ;;  %s3095_s8 = sld [smem:[#allocation5 + $0x24]] }
 0x18e   : > { %v869_v13 = vmul.f32 %v868_v7, %v2851_v49 }
 0x191   : > { %1632 = vrot.lane.b32.xlu1 %v1630_v10, %s3393_s3  ;;  %1601 = vrot.lane.b32.xlu0 %v1599_v11, %s3391_s7 }
 0x193   : > { %v3013_v14 = vpop.permute.xlu1 %1362  ;;  %v3015_v15 = vpop.permute.xlu0 %1403  ;;  %v856_v32 = vstv %s3011_s28  ;;  %s3060_s28 = sld [smem:[#allocation5 + $0xc]] }
 0x194   : > { %v857_v41 = vmul.f32 %v856_v32, %v2851_v49 }
 0x195   : > { %1674 = vrot.lane.b32.xlu1 %v1672_v16, %s2377_s6  ;;  %1643 = vrot.lane.b32.xlu0 %v1641_v17, %s3393_s3  ;;  %s3050_s3 = sld [smem:[#allocation5 + $0x3]]  ;;  %v906_v16 = vsel %vm905_vm11, %v3001_v9, %v904_v2  ;;  %vm1416_vm11 = vcmask 867328  }
 0x197   : > { %v3026_v22 = vpop.permute.xlu1 %1444  ;;  %v893_v23 = vpop.permute.xlu0 %892 }
 0x198   : > { %v894_v27 = vrot.slane %v893_v23, 2 }
 0x199   : > { %1715 = vrot.lane.b32.xlu1 %v1713_v24, %s3394_s29  ;;  %1684 = vrot.lane.b32.xlu0 %v1682_v25, %s2377_s6  ;;  %v951_v18 = vstv %s3060_s28  ;;  %s3103_s28 = sld [smem:[#allocation5 + $0x2c]] }
 0x19a   : > { %v895_v31 = vsel %vm3362_vm3, %v893_v23, %v894_v27  ;;  %v952_v28 = vmul.f32 %v951_v18, %v2851_v49 }
 0x19b   : > { %v897_v33 = vadd.f32 %v895_v31, %v861_v30  ;;  %v883_v35 = vpop.permute.xlu1 %882  ;;  %v935_v36 = vpop.permute.xlu0 %934  ;;  %v864_v6 = vstv %s3050_s3  ;;  %s3396_s3 = smov 101   ;;  %v947_v30 = vsel %vm3361_vm4, %v2999_v62, %v946_v20 }
 0x19c   : > { %v884_v34 = vrot.slane %v883_v35, 2  ;;  %v936_v38 = vrot.slane %v935_v36, 2  ;;  %v865_v19 = vmul.f32 %v864_v6, %v2851_v49  ;;  %v1118_v49 = vstv %s3083_s23  ;;  %s3109_s23 = sld [smem:[#allocation5 + $0x34]] }
 0x19d   : > { %1756 = vrot.lane.b32.xlu1 %v1754_v37, %s2384_s12  ;;  %1725 = vrot.lane.b32.xlu0 %v1723_v26, %s3394_s29 }
 0x19e   : > { %v885_v42 = vsel %vm3362_vm3, %v883_v35, %v884_v34  ;;  %v937_v43 = vsel %vm3361_vm4, %v935_v36, %v936_v38  ;;  %v908_v25 = vadd.f32 %v906_v16, %v865_v19  ;;  %v1036_v36 = vmul.f32 %v1035_v29, %v2893_v21 }
 0x19f   : > { %v887_v44 = vadd.f32 %v885_v42, %v857_v41  ;;  %v3054_v46 = vadd.f32 %v937_v43, %v897_v33  ;;  %v925_v47 = vpop.permute.xlu1 %924  ;;  %v1353_v48 = vpop.permute.xlu0 %1352  ;;  %v1119_v41 = vmul.f32 %v1118_v49, %v2893_v21  ;;  %v1364_v16 = vrot.slane %v3013_v14, 6 }
 0x1a0   : > { %v926_v52 = vrot.slane %v925_v47, 2  ;;  %v1354_v53 = vrot.slane %v1353_v48, 6  ;;  %v949_v32 = vadd.f32 %v947_v30, %v908_v25  ;;  %v1446_v30 = vrot.slane %v3026_v22, 2 }
 0x1a1   : > { %1799 = vrot.lane.b32.xlu1 %v1797_v50, %s2378_s15  ;;  %1766 = vrot.lane.b32.xlu0 %v1764_v51, %s2384_s12  ;;  %v1365_v29 = vsel %vm1344_vm8, %v1364_v16, %v3013_v14  ;;  %vm3364_vm3 = vcmask 302080  }
 0x1a2   : > { %v927_v56 = vsel %vm3361_vm4, %v925_v47, %v926_v52  ;;  %v3066_v57 = vsel %vm1344_vm8, %v1354_v53, %v1353_v48  ;;  %v1201_v47 = vstv %s3095_s8  ;;  %v1447_v14 = vsel %vm1416_vm11, %v3026_v22, %v1446_v30  ;;  %s3187_s8 = sld [smem:[#allocation5 + $0x18]] }
 0x1a3   : > { %v929_v58 = vadd.f32 %v927_v56, %v887_v44  ;;  %v966_v59 = vpop.permute.xlu1 %965  ;;  %v988_v61 = vpop.permute.xlu0 %987  ;;  %v1202_v54 = vmul.f32 %v1201_v47, %v2893_v21  ;;  %vm1583_vm4 = vcmask 490496  }
 0x1a4   : > { %v967_v4 = vrot.slane %v966_v59, 2  ;;  %v989_v23 = vrot.slane %v988_v61, 2 }
 0x1a5   : > { %1840 = vrot.lane.b32.xlu1 %v1838_v0, %s2385_s21  ;;  %1809 = vrot.lane.b32.xlu0 %v1807_v1, %s2378_s15 }
 0x1a6   : > { %v968_v8 = vsel %vm3360_vm10, %v966_v59, %v967_v4  ;;  %v990_v31 = vsel %vm979_vm14, %v988_v61, %v989_v23  ;;  %v1285_v59 = vstv %s3103_s28  ;;  %v1405_v23 = vrot.slane %v3015_v15, 2  ;;  %s3201_s28 = sld [smem:[#allocation5 + $0x28]] }
 0x1a7   : > { %v3078_v10 = vadd.f32 %v968_v8, %v929_v58  ;;  %v1342_v11 = vpop.permute.xlu1 %1341  ;;  %v1071_v12 = vpop.permute.xlu0 %1070  ;;  %v992_v34 = vadd.f32 %v990_v31, %v949_v32  ;;  %v1286_v7 = vmul.f32 %v1285_v59, %v2911_v63  ;;  %vm3363_vm10 = vcmask 523264  }
 0x1a8   : > { %v1343_v17 = vrot.slane %v1342_v11, 6  ;;  %v1072_v37 = vrot.slane %v1071_v12, 2 }
 0x1a9   : > { %871 = vrot.lane.b32.xlu1 %v869_v13, %s3395_s18  ;;  %s3116_s18 = sld [smem:[#allocation5 + $0x3c]] }
 0x1aa   : > { %v3089_v24 = vsel %vm1344_vm8, %v1343_v17, %v1342_v11  ;;  %v1073_v42 = vsel %vm1052_vm5, %v1071_v12, %v1072_v37  ;;  %v1369_v12 = vstv %s3109_s23  ;;  %vm1500_vm8 = vcmask 678912   ;;  %s2044_s23 = sld [smem:[#allocation5 + $0x40]] }
 0x1ab   : > { %v3091_v27 = vpop.permute.xlu1 %1383  ;;  %v1153_v9 = vpop.permute.xlu0 %1152  ;;  %v1370_v63 = vmul.f32 %v1369_v12, %v2877_v60 }
 0x1ac   : > { %v1154_v43 = vrot.slane %v1153_v9, 2 }
 0x1ad   : > { %954 = vrot.lane.b32.xlu1 %v952_v28, %s3396_s3  ;;  %s3397_s3 = smov 105  }
 0x1ae   : > { %v1155_v55 = vsel %vm1124_vm12, %v1153_v9, %v1154_v43 }
 0x1af   : > { %v1029_v33 = vpop.permute.xlu1 %1028  ;;  %v1236_v35 = vpop.permute.xlu0 %1235  ;;  %v1451_v9 = vstv %s3116_s18  ;;  %s3399_s18 = smov 13  }
 0x1b0   : > { %v1030_v26 = vrot.slane %v1029_v33, 2  ;;  %v1237_v56 = vrot.slane %v1236_v35, 2 }
 0x1b1   : > { %1038 = vrot.lane.b32.xlu1 %v1036_v36, %s2386_s27  ;;  %v1406_v36 = vsel %vm1375_vm7, %v3015_v15, %v1405_v23  ;;  %s3209_s27 = sld [smem:[#allocation5 + $0x30]] }
 0x1b2   : > { %v1031_v62 = vsel %vm1000_vm15, %v1029_v33, %v1030_v26  ;;  %v1238_v6 = vsel %vm3370_vm13, %v1236_v35, %v1237_v56  ;;  %v1452_v35 = vmul.f32 %v1451_v9, %v2877_v60 }
 0x1b3   : > { %v1033_v38 = vadd.f32 %v1031_v62, %v992_v34  ;;  %v1112_v39 = vpop.permute.xlu1 %1111  ;;  %v1320_v40 = vpop.permute.xlu0 %1319 }
 0x1b4   : > { %v1113_v44 = vrot.slane %v1112_v39, 2  ;;  %v1321_v8 = vrot.slane %v1320_v40, 2 }
 0x1b5   : > { %v1075_v48 = vadd.f32 %v1073_v42, %v1033_v38  ;;  %1121 = vrot.lane.b32.xlu1 %v1119_v41, %s2364_s19  ;;  %s3122_s19 = sld [smem:[#allocation5 + $0x44]] }
 0x1b6   : > { %v1114_v50 = vsel %vm3365_vm6, %v1112_v39, %v1113_v44  ;;  %v1322_v25 = vsel %vm3367_vm2, %v1320_v40, %v1321_v8 }
 0x1b7   : > { %v1116_v51 = vadd.f32 %v1114_v50, %v1075_v48  ;;  %v1194_v52 = vpop.permute.xlu1 %1193  ;;  %v1487_v53 = vpop.permute.xlu0 %1486 }
 0x1b8   : > { %v1195_v58 = vrot.slane %v1194_v52, 2  ;;  %v1488_v37 = vrot.slane %v1487_v53, 2 }
 0x1b9   : > { %v1157_v61 = vadd.f32 %v1155_v55, %v1116_v51  ;;  %1204 = vrot.lane.b32.xlu1 %v1202_v54, %s2365_s30  ;;  %s3133_s30 = sld [smem:[#allocation5 + $0x4c]] }
 0x1ba   : > { %v1197_v0 = vsel %vm1196_vm0, %v1194_v52, %v1195_v58  ;;  %vm1489_vm0 = vcmask 711680  }
 0x1bb   : > { %v1199_v1 = vadd.f32 %v1197_v0, %v1157_v61  ;;  %v1279_v2 = vpop.permute.xlu1 %1278  ;;  %v1571_v4 = vpop.permute.xlu0 %1570  ;;  %v1535_v26 = vstv %s3122_s19  ;;  %v1490_v39 = vsel %vm1489_vm0, %v1487_v53, %v1488_v37  ;;  %vm1635_vm0 = vcmask 334848   ;;  %s2052_s19 = sld [smem:[#allocation5 + $0x48]] }
 0x1bc   : > { %v1280_v11 = vrot.slane %v1279_v2, 2  ;;  %v1536_v15 = vmul.f32 %v1535_v26, %v2917_v45  ;;  %v1572_v40 = vrot.slane %v1571_v4, 2 }
 0x1bd   : > { %v1240_v13 = vadd.f32 %v1238_v6, %v1199_v1  ;;  %1288 = vrot.lane.b32.xlu1 %v1286_v7, %s2367_s9  ;;  %s3145_s9 = sld [smem:[#allocation5 + $0x54]] }
 0x1be   : > { %v1281_v17 = vsel %vm3366_vm1, %v1279_v2, %v1280_v11  ;;  %v1573_v51 = vsel %vm3363_vm10, %v1571_v4, %v1572_v40  ;;  %vm1707_vm10 = vcmask 146432  }
 0x1bf   : > { %v1283_v18 = vadd.f32 %v1281_v17, %v1240_v13  ;;  %v1529_v19 = vpop.permute.xlu1 %1528  ;;  %v3127_v20 = vpop.permute.xlu0 %1653  ;;  %v1618_v41 = vstv %s3133_s30  ;;  %s2388_s30 = smov 118  }
 0x1c0   : > { %v1530_v34 = vrot.slane %v1529_v19, 2  ;;  %v1619_v50 = vmul.f32 %v1618_v41, %v2917_v45  ;;  %v1655_v52 = vrot.slane %v3127_v20, 2 }
 0x1c1   : > { %v1324_v28 = vadd.f32 %v1322_v25, %v1283_v18  ;;  %1372 = vrot.lane.b32.xlu1 %v1370_v63, %s2357_s26  ;;  %s3150_s26 = sld [smem:[#allocation5 + $0x5c]] }
 0x1c2   : > { %v1531_v22 = vsel %vm1500_vm8, %v1529_v19, %v1530_v34  ;;  %v1656_v6 = vsel %vm1635_vm0, %v3127_v20, %v1655_v52 }
 0x1c3   : > { %v1367_v31 = vadd.f32 %v1365_v29, %v1324_v28  ;;  %v1612_v32 = vpop.permute.xlu1 %1611  ;;  %v3139_v33 = vpop.permute.xlu0 %1735  ;;  %v1701_v54 = vstv %s3145_s9  ;;  %s2060_s9 = sld [smem:[#allocation5 + $0x50]] }
 0x1c4   : > { %v1613_v43 = vrot.slane %v1612_v32, 2  ;;  %v1702_v7 = vmul.f32 %v1701_v54, %v2917_v45  ;;  %v1737_v8 = vrot.slane %v3139_v33, 2 }
 0x1c5   : > { %v1408_v49 = vadd.f32 %v1406_v36, %v1367_v31  ;;  %1454 = vrot.lane.b32.xlu1 %v1452_v35, %s2382_s24  ;;  %s2387_s24 = smov 56  }
 0x1c6   : > { %v1614_v56 = vsel %vm1583_vm4, %v1612_v32, %v1613_v43  ;;  %v1738_v23 = vsel %vm1707_vm10, %v3139_v33, %v1737_v8 }
 0x1c7   : > { %v1449_v60 = vadd.f32 %v1447_v14, %v1408_v49  ;;  %v1695_v62 = vpop.permute.xlu1 %1694  ;;  %v3152_v38 = vpop.permute.xlu0 %1819  ;;  %v1785_v61 = vstv %s3150_s26  ;;  %s3400_s26 = smov 106  }
 0x1c8   : > { %v1696_v58 = vrot.slane %v1695_v62, 2  ;;  %v1786_v63 = vmul.f32 %v1785_v61, %v2933_v3  ;;  %v1821_v25 = vrot.slane %v3152_v38, 2 }
 0x1c9   : > { %v1492_v42 = vadd.f32 %v1490_v39, %v1449_v60  ;;  %1538 = vrot.lane.b32.xlu1 %v1536_v15, %s2383_s4  ;;  %s3174_s4 = sld [smem:[#allocation5 + $0x8]]  ;;  %v3191_v15 = vld [vmem:[#allocation4] sm:$0x3f] }
 0x1ca   : > { %v1697_v16 = vsel %vm3364_vm3, %v1695_v62, %v1696_v58  ;;  %vm1791_vm3 = vcmask 1006592  }
 0x1cb   : > { %v1533_v44 = vadd.f32 %v1531_v22, %v1492_v42  ;;  %v1778_v47 = vpop.permute.xlu1 %1777  ;;  %v977_v48 = vpop.permute.xlu0 %976  ;;  %v1822_v14 = vsel %vm1791_vm3, %v3152_v38, %v1821_v25  ;;  %v1242_v25 = vstv %s3201_s28 }
 0x1cc   : > { %v978_v53 = vrot.slane %v977_v48, 2  ;;  %v1779_v17 = vrot.slane %v1778_v47, 2 }
 0x1cd   : > { %v1575_v55 = vadd.f32 %v1573_v51, %v1533_v44  ;;  %1621 = vrot.lane.b32.xlu1 %v1619_v50, %s2387_s24  ;;  %s2068_s24 = sld [smem:[#allocation5 + $0x58]] }
 0x1ce   : > { %v980_v59 = vsel %vm979_vm14, %v977_v48, %v978_v53  ;;  %vm3372_vm14 = vcmask 1039360   ;;  %v1077_v48 = vstv %s3187_s8 }
 0x1cf   : > { %v1616_v0 = vadd.f32 %v1614_v56, %v1575_v55  ;;  %v982_v1 = vadd.f32 %v980_v59, %v3054_v46  ;;  %v1009_v2 = vpop.permute.xlu1 %1008  ;;  %v1019_v4 = vpop.permute.xlu0 %1018  ;;  %v1781_v32 = vsel %vm3372_vm14, %v1778_v47, %v1779_v17 }
 0x1d0   : > { %v1010_v11 = vrot.slane %v1009_v2, 2  ;;  %v1020_v12 = vrot.slane %v1019_v4, 2 }
 0x1d1   : > { %v1658_v13 = vadd.f32 %v1656_v6, %v1616_v0  ;;  %1704 = vrot.lane.b32.xlu1 %v1702_v7, %s3394_s29  ;;  %s1996_s29 = sld [smem:[#allocation5 + $0x10]] }
 0x1d2   : > { %v1011_v46 = vsel %vm1000_vm15, %v1009_v2, %v1010_v11  ;;  %v1021_v18 = vsel %vm1000_vm15, %v1019_v4, %v1020_v12 }
 0x1d3   : > { %v1699_v45 = vadd.f32 %v1697_v16, %v1658_v13  ;;  %v1050_v19 = vpop.permute.xlu1 %1049  ;;  %v1061_v20 = vpop.permute.xlu0 %1060  ;;  %v1013_v30 = vadd.f32 %v1011_v46, %v3078_v10  ;;  %v1023_v31 = vadd.f32 %v1021_v18, %v982_v1  ;;  %v910_v10 = vstv %s3174_s4  ;;  %v2226_v1 = vld [vmem:[#allocation4] sm:$0xff]  ;;  %s2076_s4 = sld [smem:[#allocation5 + $0x60]] }
 0x1d4   : > { %v1051_v9 = vrot.slane %v1050_v19, 2  ;;  %v1062_v28 = vrot.slane %v1061_v20, 2  ;;  %v911_v39 = vmul.f32 %v3191_v15, %v910_v10  ;;  %v1078_v2 = vmul.f32 %v2226_v1, %v1077_v48 }
 0x1d5   : > { %v1740_v29 = vadd.f32 %v1738_v23, %v1699_v45  ;;  %1788 = vrot.lane.b32.xlu1 %v1786_v63, %s2378_s15  ;;  %s3194_s15 = sld [smem:[#allocation5 + $0x20]] }
 0x1d6   : > { %v1053_v35 = vsel %vm1052_vm5, %v1050_v19, %v1051_v9  ;;  %v1063_v3 = vsel %vm1052_vm5, %v1061_v20, %v1062_v28  ;;  %vm1165_vm5 = vcmask 293888  }
 0x1d7   : > { %v1783_v33 = vadd.f32 %v1781_v32, %v1740_v29  ;;  %v1055_v36 = vadd.f32 %v1053_v35, %v1013_v30  ;;  %v1065_v37 = vadd.f32 %v1063_v3, %v1023_v31  ;;  %v1092_v26 = vpop.permute.xlu1 %1091  ;;  %v1102_v49 = vpop.permute.xlu0 %1101  ;;  %v994_v42 = vstv %s1996_s29 }
 0x1d8   : > { %v1093_v40 = vrot.slane %v1092_v26, 2  ;;  %v1103_v41 = vrot.slane %v1102_v49, 2  ;;  %v995_v47 = vmul.f32 %v994_v42, %v2893_v21 }
 0x1d9   : > { %v1824_v34 = vadd.f32 %v1822_v14, %v1783_v33  ;;  %v1243_v33 = vmul.f32 %v2226_v1, %v1242_v25 }
 0x1da   : > { %v1094_v50 = vsel %vm3365_vm6, %v1092_v26, %v1093_v40  ;;  %v1104_v51 = vsel %vm3365_vm6, %v1102_v49, %v1103_v41  ;;  %vm3368_vm6 = vcmask 105472   ;;  %v1326_v49 = vstv %s3209_s27 }
 0x1db   : > { %v1133_v60 = vpop.permute.xlu1 %1132  ;;  %1854 = vrot.lane.b32.xlu0 %v1824_v34, %s2379_s25  ;;  %v1143_v62 = vpop.permute.xlu0 %1142  ;;  %v1096_v61 = vadd.f32 %v1094_v50, %v1055_v36  ;;  %v1106_v0 = vadd.f32 %v1104_v51, %v1065_v37  ;;  %v1159_v6 = vstv %s3194_s15  ;;  %v1385_v36 = vrot.slane %v3091_v27, 2 }
 0x1dc   : > { %v1134_v43 = vrot.slane %v1133_v60, 2  ;;  %v1144_v44 = vrot.slane %v1143_v62, 2  ;;  %v1160_v20 = vmul.f32 %v2226_v1, %v1159_v6  ;;  %v1577_v50 = vstv %s2052_s19 }
 0x1dd   : > { %v1386_v41 = vsel %vm1375_vm7, %v3091_v27, %v1385_v36 }
 0x1de   : > { %v1135_v56 = vsel %vm1124_vm12, %v1133_v60, %v1134_v43  ;;  %v1145_v58 = vsel %vm1124_vm12, %v1143_v62, %v1144_v44  ;;  %v2228_v43 = vld [vmem:[#allocation4 + $0x8] sm:$0x3f] }
 0x1df   : > { %v1174_v22 = vpop.permute.xlu1 %1173  ;;  %913 = vrot.lane.b32.xlu0 %v911_v39, %s3397_s3  ;;  %v1184_v38 = vpop.permute.xlu0 %1183  ;;  %v1137_v8 = vadd.f32 %v1135_v56, %v1096_v61  ;;  %v1147_v11 = vadd.f32 %v1145_v58, %v1106_v0  ;;  %v2227_v39 = vld [vmem:[#allocation4 + $0x2] sm:$0x3f]  ;;  %v1742_v58 = vstv %s2068_s24 }
 0x1e0   : > { %v1175_v52 = vrot.slane %v1174_v22, 2  ;;  %v1185_v53 = vrot.slane %v1184_v38, 2  ;;  %v1327_v40 = vmul.f32 %v2227_v39, %v1326_v49 }
 0x1e2   : > { %v1176_v4 = vsel %vm1165_vm5, %v1174_v22, %v1175_v52  ;;  %v1186_v7 = vsel %vm1165_vm5, %v1184_v38, %v1185_v53  ;;  %v1660_v52 = vstv %s2060_s9 }
 0x1e3   : > { %v1216_v54 = vpop.permute.xlu1 %1215  ;;  %997 = vrot.lane.b32.xlu0 %v995_v47, %s2366_s5  ;;  %v1226_v55 = vpop.permute.xlu0 %1225  ;;  %v1178_v45 = vadd.f32 %v1176_v4, %v1137_v8  ;;  %v1188_v19 = vadd.f32 %v1186_v7, %v1147_v11  ;;  %s3217_s5 = sld [smem:[#allocation5 + $0x38]]  ;;  %v1494_v47 = vstv %s2044_s23  ;;  %v1826_v7 = vstv %s2076_s4 }
 0x1e4   : > { %v1217_v21 = vrot.slane %v1216_v54, 2  ;;  %v1227_v59 = vrot.slane %v1226_v55, 2 }
 0x1e6   : > { %v1218_v16 = vsel %vm3370_vm13, %v1216_v54, %v1217_v21  ;;  %v1228_v17 = vsel %vm3370_vm13, %v1226_v55, %v1227_v59  ;;  %vm3371_vm13 = vcmask 973824  }
 0x1e7   : > { %v1257_v12 = vpop.permute.xlu1 %1256  ;;  %1080 = vrot.lane.b32.xlu0 %v1078_v2, %s2368_s17  ;;  %v1268_v13 = vpop.permute.xlu0 %1267  ;;  %v1220_v9 = vadd.f32 %v1218_v16, %v1178_v45  ;;  %v1230_v28 = vadd.f32 %v1228_v17, %v1188_v19  ;;  %s3398_s17 = smov 36   ;;  %v2230_v16 = vld [vmem:[#allocation4 + $0xa] sm:$0x3f] }
 0x1e8   : > { %v1258_v46 = vrot.slane %v1257_v12, 2  ;;  %v1269_v18 = vrot.slane %v1268_v13, 2  ;;  %v1827_v17 = vmul.f32 %v2230_v16, %v1826_v7 }
 0x1e9   : > { %v1410_v42 = vstv %s3217_s5 }
 0x1ea   : > { %v1259_v63 = vsel %vm3368_vm6, %v1257_v12, %v1258_v46  ;;  %v1271_v23 = vsel %vm3366_vm1, %v1268_v13, %v1269_v18  ;;  %v1411_v44 = vmul.f32 %v2228_v43, %v1410_v42  ;;  %vm1457_vm1 = vcmask 834560  }
 0x1eb   : > { %v1300_v29 = vpop.permute.xlu1 %1299  ;;  %1162 = vrot.lane.b32.xlu0 %v1160_v20, %s3398_s17  ;;  %v1310_v30 = vpop.permute.xlu0 %1309  ;;  %v1261_v35 = vadd.f32 %v1259_v63, %v1220_v9  ;;  %v1273_v3 = vadd.f32 %v1271_v23, %v1230_v28  ;;  %vm3401_vm6 = vcmask 302080  }
 0x1ec   : > { %v1301_v31 = vrot.slane %v1300_v29, 2  ;;  %v1311_v32 = vrot.slane %v1310_v30, 2 }
 0x1ee   : > { %v1302_v37 = vsel %vm3367_vm2, %v1300_v29, %v1301_v31  ;;  %v1312_v26 = vsel %vm3367_vm2, %v1310_v30, %v1311_v32  ;;  %vm3369_vm2 = vcmask 646144  }
 0x1ef   : > { %v1304_v14 = vadd.f32 %v1302_v37, %v1261_v35  ;;  %v1314_v34 = vadd.f32 %v1312_v26, %v1273_v3  ;;  %v1425_v10 = vpop.permute.xlu1 %1424  ;;  %1245 = vrot.lane.b32.xlu0 %v1243_v33, %s3399_s18  ;;  %v1394_v12 = vpop.permute.xlu0 %1393 }
 0x1f0   : > { %v1426_v54 = vrot.slane %v1425_v10, 2 }
 0x1f1   : > { %v1347_v60 = vadd.f32 %v3089_v24, %v1304_v14  ;;  %v3227_v62 = vadd.f32 %v3066_v57, %v1314_v34  ;;  %v2229_v57 = vld [vmem:[#allocation4 + $0x8] sm:$0xff] }
 0x1f2   : > { %v1495_v24 = vmul.f32 %v2229_v57, %v1494_v47  ;;  %v1578_v27 = vmul.f32 %v2229_v57, %v1577_v50  ;;  %v1661_v55 = vmul.f32 %v2229_v57, %v1660_v52  ;;  %v1427_v59 = vsel %vm1416_vm11, %v1425_v10, %v1426_v54 }
 0x1f3   : > { %v1388_v22 = vadd.f32 %v1386_v41, %v1347_v60  ;;  %v1466_v38 = vpop.permute.xlu1 %1465  ;;  %1329 = vrot.lane.b32.xlu0 %v1327_v40, %s2388_s30  ;;  %v1743_v1 = vmul.f32 %v2229_v57, %v1742_v58  ;;  %v1435_v28 = vpop.permute.xlu0 %1434 }
 0x1f4   : > { %v1467_v56 = vrot.slane %v1466_v38, 2  ;;  %v1436_v57 = vrot.slane %v1435_v28, 2 }
 0x1f5   : > { %v1429_v0 = vadd.f32 %v1427_v59, %v1388_v22 }
 0x1f6   : > { %v1468_v2 = vsel %vm1457_vm1, %v1466_v38, %v1467_v56 }
 0x1f7   : > { %v1509_v48 = vpop.permute.xlu1 %1508  ;;  %1413 = vrot.lane.b32.xlu0 %v1411_v44, %s3400_s26  ;;  %v1470_v13 = vadd.f32 %v1468_v2, %v1429_v0  ;;  %v1476_v49 = vpop.permute.xlu0 %1475 }
 0x1f8   : > { %v1510_v61 = vrot.slane %v1509_v48, 2  ;;  %v1477_v50 = vrot.slane %v1476_v49, 2 }
 0x1fa   : > { %v1511_v8 = vsel %vm1500_vm8, %v1509_v48, %v1510_v61  ;;  %v1395_v48 = vrot.slane %v1394_v12, 2 }
 0x1fb   : > { %v1550_v51 = vpop.permute.xlu1 %1549  ;;  %1497 = vrot.lane.b32.xlu0 %v1495_v24, %s2373_s20  ;;  %v1513_v45 = vadd.f32 %v1511_v8, %v1470_v13  ;;  %v1519_v42 = vpop.permute.xlu0 %1518  ;;  %s850_s20 = sld [smem:[#allocation5]] }
 0x1fc   : > { %v1551_v4 = vrot.slane %v1550_v51, 2  ;;  %v1396_v24 = vsel %vm1375_vm7, %v1394_v12, %v1395_v48  ;;  %v1520_v52 = vrot.slane %v1519_v42, 2 }
 0x1fe   : > { %v1552_v46 = vsel %vm3369_vm2, %v1550_v51, %v1551_v4  ;;  %vm1748_vm2 = vcmask 113664  }
 0x1ff   : > { %v1592_v53 = vpop.permute.xlu1 %1591  ;;  %1580 = vrot.lane.b32.xlu0 %v1578_v27, %s3391_s7  ;;  %v1554_v23 = vadd.f32 %v1552_v46, %v1513_v45  ;;  %v1560_v38 = vpop.permute.xlu0 %1559  ;;  %v1437_v27 = vsel %vm1416_vm11, %v1435_v28, %v1436_v57 }
 0x200   : > { %v1593_v11 = vrot.slane %v1592_v53, 2  ;;  %v1561_v56 = vrot.slane %v1560_v38, 2 }
 0x202   : > { %v1594_v20 = vsel %vm1583_vm4, %v1592_v53, %v1593_v11  ;;  %v1398_v53 = vadd.f32 %v1396_v24, %v3227_v62 }
 0x203   : > { %v1633_v21 = vpop.permute.xlu1 %1632  ;;  %1663 = vrot.lane.b32.xlu0 %v1661_v55, %s2377_s6  ;;  %v1596_v29 = vadd.f32 %v1594_v20, %v1554_v23  ;;  %v1602_v43 = vpop.permute.xlu0 %1601  ;;  %v1478_v55 = vsel %vm1457_vm1, %v1476_v49, %v1477_v50 }
 0x204   : > { %v1634_v18 = vrot.slane %v1633_v21, 2  ;;  %v1439_v58 = vadd.f32 %v1437_v27, %v1398_v53  ;;  %v1603_v59 = vrot.slane %v1602_v43, 2 }
 0x206   : > { %v1636_v25 = vsel %vm1635_vm0, %v1633_v21, %v1634_v18  ;;  %v1521_v21 = vsel %vm1500_vm8, %v1519_v42, %v1520_v52  ;;  %v1480_v61 = vadd.f32 %v1478_v55, %v1439_v58 }
 0x207   : > { %v1675_v6 = vpop.permute.xlu1 %1674  ;;  %1745 = vrot.lane.b32.xlu0 %v1743_v1, %s2384_s12  ;;  %v1638_v35 = vadd.f32 %v1636_v25, %v1596_v29  ;;  %v1644_v44 = vpop.permute.xlu0 %1643 }
 0x208   : > { %v1676_v63 = vrot.slane %v1675_v6, 2  ;;  %v1645_v2 = vrot.slane %v1644_v44, 2  ;;  %v1523_v4 = vadd.f32 %v1521_v21, %v1480_v61 }
 0x20a   : > { %v1677_v31 = vsel %vm3401_vm6, %v1675_v6, %v1676_v63  ;;  %vm3402_vm6 = vcmask 523264   ;;  %v1604_v6 = vsel %vm1583_vm4, %v1602_v43, %v1603_v59  ;;  %v1646_v62 = vsel %vm1635_vm0, %v1644_v44, %v1645_v2 }
 0x20b   : > { %v1716_v19 = vpop.permute.xlu1 %1715  ;;  %1829 = vrot.lane.b32.xlu0 %v1827_v17, %s2385_s21  ;;  %v1679_v33 = vadd.f32 %v1677_v31, %v1638_v35  ;;  %v1685_v47 = vpop.permute.xlu0 %1684  ;;  %v1563_v1 = vsel %vm3402_vm6, %v1560_v38, %v1561_v56  ;;  %vm3406_vm0 = vcmask 859136   ;;  %vm3407_vm6 = vcmask 826368  }
 0x20c   : > { %v1717_v9 = vrot.slane %v1716_v19, 2  ;;  %v1686_v8 = vrot.slane %v1685_v47, 2  ;;  %v1565_v11 = vadd.f32 %v1563_v1, %v1523_v4 }
 0x20e   : > { %v1718_v3 = vsel %vm1707_vm10, %v1716_v19, %v1717_v9  ;;  %v1606_v13 = vadd.f32 %v1604_v6, %v1565_v11 }
 0x20f   : > { %v1757_v30 = vpop.permute.xlu1 %1756  ;;  %v1720_v14 = vadd.f32 %v1718_v3, %v1679_v33  ;;  %v1726_v51 = vpop.permute.xlu0 %1725 }
 0x210   : > { %v1758_v32 = vrot.slane %v1757_v30, 2  ;;  %v1727_v12 = vrot.slane %v1726_v51, 2  ;;  %v1648_v18 = vadd.f32 %v1646_v62, %v1606_v13 }
 0x212   : > { %v1759_v37 = vsel %vm1748_vm2, %v1757_v30, %v1758_v32  ;;  %v1728_v19 = vsel %vm1707_vm10, %v1726_v51, %v1727_v12  ;;  %v852_v32 = vstv %s850_s20 }
 0x213   : > { %v1800_v36 = vpop.permute.xlu1 %1799  ;;  %v1761_v10 = vadd.f32 %v1759_v37, %v1720_v14  ;;  %v1767_v0 = vpop.permute.xlu0 %1766  ;;  %v853_v37 = vmul.f32 %v3191_v15, %v852_v32 }
 0x214   : > { %v1801_v26 = vrot.slane %v1800_v36, 2  ;;  %v1768_v46 = vrot.slane %v1767_v0, 2 }
 0x216   : > { %v1802_v34 = vsel %vm1791_vm3, %v1800_v36, %v1801_v26  ;;  %v1769_v23 = vsel %vm1748_vm2, %v1767_v0, %v1768_v46 }
 0x217   : > { %v1841_v60 = vpop.permute.xlu1 %1840  ;;  %v1804_v40 = vadd.f32 %v1802_v34, %v1761_v10  ;;  %v1810_v16 = vpop.permute.xlu0 %1809 }
 0x218   : > { %v1842_v39 = vrot.slane %v1841_v60, 2  ;;  %v1811_v20 = vrot.slane %v1810_v16, 2 }
 0x21a   : > { %v1843_v41 = vsel %vm3371_vm13, %v1841_v60, %v1842_v39  ;;  %vm3403_vm13 = vcmask 302080   ;;  %v1812_v9 = vsel %vm1791_vm3, %v1810_v16, %v1811_v20 }
 0x21b   : > { %v1845_v22 = vadd.f32 %v1843_v41, %v1804_v40  ;;  %v872_v54 = vpop.permute.xlu1 %871  ;;  %v1687_v17 = vsel %vm3403_vm13, %v1685_v47, %v1686_v8  ;;  %vm3404_vm13 = vcmask 1014784  }
 0x21c   : > { %v1689_v63 = vadd.f32 %v1687_v17, %v1648_v18  ;;  %v873_v28 = vrot.slane %v872_v54, 2 }
 0x21d   : > { %1847 = vrot.lane.b32.xlu1 %v1845_v22, %s2379_s25  ;;  %s3405_s25 = smov 126  }
 0x21e   : > { %v1730_v25 = vadd.f32 %v1728_v19, %v1689_v63  ;;  %v875_v33 = vsel %vm3404_vm13, %v872_v54, %v873_v28  ;;  %vm1041_vm13 = vcmask 637952  }
 0x21f   : > { %v955_v7 = vpop.permute.xlu1 %954  ;;  %v877_v10 = vadd.f32 %v875_v33, %v853_v37 }
 0x220   : > { %v1771_v29 = vadd.f32 %v1769_v23, %v1730_v25  ;;  %v956_v14 = vrot.slane %v955_v7, 2 }
 0x222   : > { %v1814_v3 = vadd.f32 %v1812_v9, %v1771_v29  ;;  %v958_v42 = vsel %vm3407_vm6, %v955_v7, %v956_v14 }
 0x223   : > { %v1039_v45 = vpop.permute.xlu1 %1038 }
 0x224   : > { %v1040_v22 = vrot.slane %v1039_v45, 2 }
 0x226   : > { %v1042_v57 = vsel %vm1041_vm13, %v1039_v45, %v1040_v22 }
 0x227   : > { %v1122_v30 = vpop.permute.xlu1 %1121 }
 0x228   : > { %v1123_v24 = vrot.slane %v1122_v30, 2 }
 0x22a   : > { %v1125_v54 = vsel %vm1124_vm12, %v1122_v30, %v1123_v24  ;;  %vm3411_vm12 = vcmask 998400  }
 0x22b   : > { %v1205_v60 = vpop.permute.xlu1 %1204 }
 0x22c   : > { %v1206_v55 = vrot.slane %v1205_v60, 2 }
 0x22f   : > { %v1289_v44 = vpop.permute.xlu1 %1288 }
 0x230   : > { %v1290_v2 = vrot.slane %v1289_v44, 2 }
 0x232   : > { %v1292_v12 = vsel %vm3411_vm12, %v1289_v44, %v1290_v2 }
 0x233   : > { %v1373_v58 = vpop.permute.xlu1 %1372 }
 0x234   : > { %v1374_v13 = vrot.slane %v1373_v58, 2 }
 0x236   : > { %v1376_v19 = vsel %vm1375_vm7, %v1373_v58, %v1374_v13  ;;  %vm1624_vm7 = vcmask 457728  }
 0x237   : > { %v1455_v8 = vpop.permute.xlu1 %1454 }
 0x238   : > { %v1456_v20 = vrot.slane %v1455_v8, 2 }
 0x23a   : > { %v1458_v30 = vsel %vm1457_vm1, %v1455_v8, %v1456_v20  ;;  %vm3413_vm1 = vcmask 302080  }
 0x23b   : > { %v1539_v23 = vpop.permute.xlu1 %1538 }
 0x23f   : > { %v1622_v14 = vpop.permute.xlu1 %1621 }
 0x24d   : > { %v1855_v31 = vpop.permute.xlu0 %1854 }
 0x24e   : > { %v1856_v35 = vrot.slane %v1855_v31, 2 }
 0x250   : > { %v1857_v36 = vsel %vm3372_vm14, %v1855_v31, %v1856_v35  ;;  %vm3408_vm14 = vcmask 482304   ;;  %v1540_v31 = vrot.slane %v1539_v23, 2 }
 0x251   : > { %v1859_v26 = vadd.f32 %v1857_v36, %v1814_v3  ;;  %v914_v49 = vpop.permute.xlu0 %913 }
 0x252   : > { %v915_v34 = vrot.slane %v914_v49, 2 }
 0x253   : > { %1861 = vrot.lane.b32.xlu0 %v1859_v26, %s3405_s25 }
 0x254   : > { %v917_v39 = vsel %vm3406_vm0, %v914_v49, %v915_v34  ;;  %vm3410_vm0 = vcmask 105472  }
 0x255   : > { %v919_v40 = vadd.f32 %v917_v39, %v877_v10  ;;  %v998_v41 = vpop.permute.xlu0 %997 }
 0x256   : > { %v999_v38 = vrot.slane %v998_v41, 2 }
 0x257   : > { %v960_v43 = vadd.f32 %v958_v42, %v919_v40  ;;  %v1705_v42 = vpop.permute.xlu1 %1704 }
 0x258   : > { %v1001_v15 = vsel %vm1000_vm15, %v998_v41, %v999_v38  ;;  %vm3409_vm15 = vcmask 138240  }
 0x259   : > { %v1003_v47 = vadd.f32 %v1001_v15, %v960_v43  ;;  %v1081_v48 = vpop.permute.xlu0 %1080  ;;  %v1208_v1 = vsel %vm3409_vm15, %v1205_v60, %v1206_v55  ;;  %v1623_v60 = vrot.slane %v1622_v14, 2  ;;  %v1706_v15 = vrot.slane %v1705_v42, 2 }
 0x25a   : > { %v1082_v50 = vrot.slane %v1081_v48, 2 }
 0x25b   : > { %v1044_v51 = vadd.f32 %v1042_v57, %v1003_v47  ;;  %v1625_v41 = vsel %vm1624_vm7, %v1622_v14, %v1623_v60  ;;  %v1789_v57 = vpop.permute.xlu1 %1788 }
 0x25c   : > { %v1084_v27 = vsel %vm3408_vm14, %v1081_v48, %v1082_v50  ;;  %vm1332_vm14 = vcmask 965632   ;;  %v1708_v48 = vsel %vm1707_vm10, %v1705_v42, %v1706_v15  ;;  %vm3416_vm10 = vcmask 1031168  }
 0x25d   : > { %v1086_v52 = vadd.f32 %v1084_v27, %v1044_v51  ;;  %v1163_v53 = vpop.permute.xlu0 %1162  ;;  %v1790_v27 = vrot.slane %v1789_v57, 2 }
 0x25e   : > { %v1164_v56 = vrot.slane %v1163_v53, 2 }
 0x25f   : > { %v1127_v21 = vadd.f32 %v1125_v54, %v1086_v52  ;;  %v1792_v55 = vsel %vm1791_vm3, %v1789_v57, %v1790_v27  ;;  %vm1876_vm3 = vcmask 783364  }
 0x260   : > { %v1166_v59 = vsel %vm1165_vm5, %v1163_v53, %v1164_v56  ;;  %vm3412_vm5 = vcmask 646144  }
 0x261   : > { %v1168_v61 = vadd.f32 %v1166_v59, %v1127_v21  ;;  %v1246_v0 = vpop.permute.xlu0 %1245  ;;  %v1542_v36 = vsel %vm3412_vm5, %v1539_v23, %v1540_v31 }
 0x262   : > { %v1247_v4 = vrot.slane %v1246_v0, 2 }
 0x263   : > { %v1210_v7 = vadd.f32 %v1208_v1, %v1168_v61 }
 0x264   : > { %v1249_v6 = vsel %vm3410_vm0, %v1246_v0, %v1247_v4 }
 0x265   : > { %v1251_v11 = vadd.f32 %v1249_v6, %v1210_v7  ;;  %v1330_v62 = vpop.permute.xlu0 %1329 }
 0x266   : > { %v1331_v16 = vrot.slane %v1330_v62, 2 }
 0x267   : > { %v1294_v17 = vadd.f32 %v1292_v12, %v1251_v11 }
 0x268   : > { %v1333_v46 = vsel %vm1332_vm14, %v1330_v62, %v1331_v16 }
 0x269   : > { %v1335_v18 = vadd.f32 %v1333_v46, %v1294_v17  ;;  %v1414_v45 = vpop.permute.xlu0 %1413 }
 0x26a   : > { %v1415_v63 = vrot.slane %v1414_v45, 2 }
 0x26b   : > { %v1378_v25 = vadd.f32 %v1376_v19, %v1335_v18 }
 0x26c   : > { %v1417_v9 = vsel %vm1416_vm11, %v1414_v45, %v1415_v63  ;;  %vm3415_vm11 = vcmask 1039360  }
 0x26d   : > { %v1419_v28 = vadd.f32 %v1417_v9, %v1378_v25  ;;  %v1498_v29 = vpop.permute.xlu0 %1497 }
 0x26e   : > { %v1499_v32 = vrot.slane %v1498_v29, 2 }
 0x26f   : > { %v1460_v35 = vadd.f32 %v1458_v30, %v1419_v28 }
 0x270   : > { %v1501_v3 = vsel %vm1500_vm8, %v1498_v29, %v1499_v32  ;;  %vm1877_vm8 = vmor %vm1876_vm3, %vm2561_vm9 }
 0x271   : > { %v1503_v33 = vadd.f32 %v1501_v3, %v1460_v35  ;;  %v1581_v26 = vpop.permute.xlu0 %1580 }
 0x272   : > { %v1582_v49 = vrot.slane %v1581_v26, 2 }
 0x273   : > { %v1544_v37 = vadd.f32 %v1542_v36, %v1503_v33 }
 0x274   : > { %v1584_v34 = vsel %vm1583_vm4, %v1581_v26, %v1582_v49  ;;  %vm3414_vm4 = vcmask 973824  }
 0x275   : > { %v1664_v10 = vpop.permute.xlu0 %1663  ;;  %v1586_v39 = vadd.f32 %v1584_v34, %v1544_v37 }
 0x276   : > { %v1665_v40 = vrot.slane %v1664_v10, 2 }
 0x277   : > { %v1627_v22 = vadd.f32 %v1625_v41, %v1586_v39 }
 0x278   : > { %v1667_v38 = vsel %vm3413_vm1, %v1664_v10, %v1665_v40 }
 0x279   : > { %v1746_v43 = vpop.permute.xlu0 %1745  ;;  %v1669_v44 = vadd.f32 %v1667_v38, %v1627_v22 }
 0x27a   : > { %v1747_v47 = vrot.slane %v1746_v43, 2 }
 0x27b   : > { %v1710_v24 = vadd.f32 %v1708_v48, %v1669_v44 }
 0x27c   : > { %v1749_v50 = vsel %vm1748_vm2, %v1746_v43, %v1747_v47 }
 0x27d   : > { %v1830_v51 = vpop.permute.xlu0 %1829  ;;  %v1751_v52 = vadd.f32 %v1749_v50, %v1710_v24 }
 0x27e   : > { %v1831_v54 = vrot.slane %v1830_v51, 2 }
 0x27f   : > { %v1794_v58 = vadd.f32 %v1792_v55, %v1751_v52 }
 0x280   : > { %v1833_v21 = vsel %vm3414_vm4, %v1830_v51, %v1831_v54 }
 0x281   : > { %v1835_v61 = vadd.f32 %v1833_v21, %v1794_v58 }
 0x28f   : > { %v1848_v53 = vpop.permute.xlu1 %1847 }
 0x290   : > { %v1849_v56 = vrot.slane %v1848_v53, 2 }
 0x292   : > { %v1850_v59 = vsel %vm3415_vm11, %v1848_v53, %v1849_v56 }
 0x293   : > { %v1852_v2 = vadd.f32 %v1850_v59, %v1835_v61 }
 0x2c5   : > { %v1862_v0 = vpop.permute.xlu0 %1861 }
 0x2c6   : > { %v1863_v1 = vrot.slane %v1862_v0, 2 }
 0x2c8   : > { %v1864_v4 = vsel %vm3416_vm10, %v1862_v0, %v1863_v1 }
 0x2c9   : > { %v1866_v7 = vadd.f32 %v1864_v4, %v1852_v2 }
 0x2cb   : > { %v1867_v6 = vand.u32 2147483647, %v1866_v7  ;;  %vm1871_vm2 = vcmp.ge.f32.partialorder %v1866_v7, 0.0 }
 0x2cd   : > { %v1868_v8 = vsub.f32 0.0, %v1867_v6 }
 0x2cf   : > { %v1869_v11 = vmul.f32 1.442695, %v1868_v8 }
 0x2d1   : > { %2221 = vpow2.f32 %v1869_v11 }
 0x2db   : > { %v2222_v62 = vpop.eup %2221 }
 0x2dc   : > { %v1873_v12 = vadd.f32 1.0, %v2222_v62  ;;  %v1872_v16 = vsel %vm1871_vm2, 1.0, %v2222_v62 }
 0x2de   : > { %2223 = vrcp.f32 %v1873_v12 }
 0x2e8   : > { %v2224_v13 = vpop.eup %2223 }
 0x2e9   : > { %v1875_v17 = vmul.f32 %v2224_v13, %v1872_v16 }
 0x2eb   : > { %1878 = vst.msk [vmem:[#allocation10] sm:$0x3f] %vm1877_vm8, %v1875_v17 }
 0x2ec PF: > { %s3417_s6 = sadd.s32 4294967295, %s2328_s14   ;;  %s2389_s12 = smov [#allocation10]  }
 0x2ed   : > { %p3292_p9 = scmp.eq.s32.totalorder %s3417_s6, 1  ;;  %s1889_s21 = sshll.u32 %s2389_s12, 4  ;;  %s1890_s21 = int_to_ptr.vmem [resolvable:$true] %s1889_s21 }
 0x2ee   : > { %s2244_s29 = scalar_lea.vmem %s1890_s21, 96  ;;  %p2251_p13 = scmp.lt.s32.totalorder %s1890_s21, %s1890_s21 }
 0x2ef   : > { %p2245_p10 = scmp.ne.s32.totalorder %s1890_s21, %s2244_s29  ;;  %p2252_p0 = scmp.lt.s32.totalorder %s2244_s29, %s2244_s29 }
 0x2f1   : > { %p2246_p11 = pnand %p2245_p10, %p3292_p9  ;;  %p2253_p1 = por %p2252_p0, %p2251_p13 }
 0x2f3   : > { %p2247_p12 = pneg %p2246_p11 }
 0x2f5   : > { %p2254_p2 = pnand %p2253_p1, %p2247_p12 }
 0x2f7   : > { %2257 = shalt.err (!%p2254_p2)
}
 0x2f8   : > { %s2258_s3 = scalar_lea.hbm %s3338_s2, 96 }
 0x2f9   : > { %p2259_p4 = scmp.ne.s32.totalorder %s3338_s2, %s2258_s3  ;;  %p2264_p3 = scmp.lt.u32.totalorder %s2258_s3, %s3338_s2 }
 0x2fb   : > { %p2260_p6 = pnand %p2259_p4, %p3292_p9 }
 0x2fd   : > { %p2261_p7 = pneg %p2260_p6 }
 0x2ff   : > { %p2266_p5 = pnand %p2264_p3, %p2261_p7 }
 0x301   : > { %2269 = shalt.err (!%p2266_p5)
}
 0x302   : > { %2098 = dma.vmem_to_hbm [thread:$0]  (%p3292_p9), %s1890_s21, 96, %s3338_s2, [#allocation7]  }
 0x303   : > { %2303 = dma.done.wait (%p3292_p9), [#allocation7], 96  }
 0x304   : > { %2305 = vsyncadd (%p3292_p9), [#allocation7], 4294967200 }
 0x305 PF: > { %s17_s14 = sadd.s32 1, %s2328_s14   ;;  %s3419_s9 = smov %s2312_s10 }
 0x306   : > { %p14_p8 = scmp.ge.s32.totalorder %s17_s14, 4   ;;  %s3420_s10 = smov %s2316_s11 }
 0x307   : > { %s3421_s11 = smov %s2463_s22  ;;  %s3422_s12 = smov %s2324_s13 }
 0x308   : > { %s3423_s13 = smov %s3425_s16  ;;  %16 = sbr.rel (!%p14_p8) target bundleno = 6 (0x6), region = 89 }
 0x30f   :  { %1902 = vsyncpa [#allocation6], 1 }
 0x310   :  { %1904 = vsyncpa [#allocation6 + $0x1], 1 }
 0x311   :  { %1905 = vsyncpa [#allocation7], 1 }
 0x312   :  { %1907 = vsyncpa [#allocation7 + $0x1], 1 }
 0x313   :  { %1908 = vsyncpa [#allocation8], 1 }
 0x314   :  { %1910 = vsyncpa [#allocation8 + $0x1], 1 }

</bundles_post_ra>
